<compile_context>
chip_gen: v6e
topology: v6e:2x2x1
jax: 0.10.0
libtpu: 0.0.40
codegen_flags: <defaults>
</compile_context>

<pallas_src>
import functools

import jax
import jax.numpy as jnp
from jax.experimental import pallas as pl
from jax.experimental.pallas import tpu as pltpu


# ---------------------------------------------------------------------------
# Helpers
# ---------------------------------------------------------------------------
def _round_up(x, m):
    return (x + m - 1) // m * m


def _pick_tile(dim, cap, align):
    """Largest divisor of `dim` that is <= cap and a multiple of `align`.
    Falls back to the full dim (always a legal BlockSpec) if none exists."""
    if dim <= cap:
        return dim
    t = (cap // align) * align
    while t >= align:
        if dim % t == 0:
            return t
        t -= align
    return dim


# ---------------------------------------------------------------------------
# Pallas kernels
# ---------------------------------------------------------------------------
def _matmul_bias_single_kernel(a_ref, b_ref, bias_ref, o_ref, *, apply_relu):
    """Single K-tile matmul + bias (+ReLU) epilogue in f32. No scratch."""
    out = jnp.dot(a_ref[...], b_ref[...], preferred_element_type=jnp.float32)
    out = out + bias_ref[...]
    if apply_relu:
        out = jnp.maximum(out, 0.0)
    o_ref[...] = out.astype(o_ref.dtype)


def _matmul_bias_acc_kernel(a_ref, b_ref, bias_ref, o_ref, acc_ref, *, apply_relu):
    """K-tiled matmul with f32 VMEM accumulator; bias/ReLU in last-k epilogue."""
    @pl.when(pl.program_id(2) == 0)
    def _():
        acc_ref[...] = jnp.zeros_like(acc_ref)

    acc_ref[...] += jnp.dot(a_ref[...], b_ref[...],
                            preferred_element_type=jnp.float32)

    @pl.when(pl.program_id(2) == pl.num_programs(2) - 1)
    def _():
        out = acc_ref[...] + bias_ref[...]
        if apply_relu:
            out = jnp.maximum(out, 0.0)
        o_ref[...] = out.astype(o_ref.dtype)


def _fused_head_kernel(x_ref, a1_ref, b1_ref, bias1_ref,
                       a2_ref, b2_ref, bias2_ref,
                       w3_ref, bias3_ref, o_ref,
                       h1_ref, h2_ref):
    """Whole classifier head in one kernel:
         h1 = relu((x  @ A1) @ B1 + b1)
         h2 = relu((h1 @ A2) @ B2 + b2)
         y  =        h2 @ W3       + b3
    Intermediates (h1, h2) live in VMEM scratch (bf16); all accumulation f32."""
    # classifier1
    t1 = jnp.dot(x_ref[...], a1_ref[...], preferred_element_type=jnp.float32)
    h1 = jnp.dot(t1.astype(jnp.bfloat16), b1_ref[...],
                 preferred_element_type=jnp.float32)
    h1 = jnp.maximum(h1 + bias1_ref[...], 0.0)
    h1_ref[...] = h1.astype(h1_ref.dtype)

    # classifier2
    t2 = jnp.dot(h1_ref[...], a2_ref[...], preferred_element_type=jnp.float32)
    h2 = jnp.dot(t2.astype(jnp.bfloat16), b2_ref[...],
                 preferred_element_type=jnp.float32)
    h2 = jnp.maximum(h2 + bias2_ref[...], 0.0)
    h2_ref[...] = h2.astype(h2_ref.dtype)

    # classifier3 (lane-padded output columns; sliced in the wrapper)
    out = jnp.dot(h2_ref[...], w3_ref[...], preferred_element_type=jnp.float32)
    o_ref[...] = (out + bias3_ref[...]).astype(o_ref.dtype)


# ---------------------------------------------------------------------------
# Pallas wrappers
# ---------------------------------------------------------------------------
def pallas_matmul(a, b, bias=None, *, relu=False, out_dtype=jnp.float32,
                  tm_cap=256, tn_cap=512, tk_cap=2048):
    """relu?(a @ b + bias) with bf16 operands, f32 accumulation."""
    M, K = a.shape
    K2, N = b.shape
    assert K == K2
    a = a.astype(jnp.bfloat16)
    b = b.astype(jnp.bfloat16)
    if bias is None:
        bias = jnp.zeros((N,), jnp.float32)
    bias2d = bias.reshape(1, N).astype(jnp.float32)

    tm = _pick_tile(M, tm_cap, 8)
    tn = _pick_tile(N, tn_cap, 128)
    tk = _pick_tile(K, tk_cap, 128)
    n_k = K // tk
    grid = (M // tm, N // tn, n_k)

    if n_k == 1:
        kernel = functools.partial(_matmul_bias_single_kernel, apply_relu=relu)
        scratch = []
    else:
        kernel = functools.partial(_matmul_bias_acc_kernel, apply_relu=relu)
        scratch = [pltpu.VMEM((tm, tn), jnp.float32)]

    return pl.pallas_call(
        kernel,
        out_shape=jax.ShapeDtypeStruct((M, N), out_dtype),
        grid_spec=pltpu.PrefetchScalarGridSpec(
            num_scalar_prefetch=0,
            grid=grid,
            in_specs=[
                pl.BlockSpec((tm, tk), lambda i, j, k: (i, k)),
                pl.BlockSpec((tk, tn), lambda i, j, k: (k, j)),
                pl.BlockSpec((1, tn), lambda i, j, k: (0, j)),
            ],
            out_specs=pl.BlockSpec((tm, tn), lambda i, j, k: (i, j)),
            scratch_shapes=scratch,
        ),
        compiler_params=pltpu.CompilerParams(
            dimension_semantics=("parallel", "parallel", "arbitrary")),
    )(a, b, bias2d)


def pallas_classifier_head(x, A1, B1, b1, A2, B2, b2, W3p, b3p):
    """Fused classifier1+ReLU+classifier2+ReLU+classifier3 in ONE pallas_call.
    x:(M,64)  A1:(64,64) B1:(64,H)  A2:(H,64) B2:(64,H)  W3p:(H,Ncp).
    Returns (M, Ncp) f32 logits (column-padded)."""
    M, _ = x.shape
    Mp = _round_up(max(M, 8), 8)          # full-sublane rows -> unmasked stores
    if Mp != M:
        x = jnp.pad(x, ((0, Mp - M), (0, 0)))
    x = x.astype(jnp.bfloat16)
    A1 = A1.astype(jnp.bfloat16)
    B1 = B1.astype(jnp.bfloat16)
    A2 = A2.astype(jnp.bfloat16)
    B2 = B2.astype(jnp.bfloat16)
    W3p = W3p.astype(jnp.bfloat16)
    b1_2d = b1.reshape(1, -1).astype(jnp.float32)
    b2_2d = b2.reshape(1, -1).astype(jnp.float32)
    b3_2d = b3p.reshape(1, -1).astype(jnp.float32)
    hidden = B1.shape[1]
    ncp = W3p.shape[1]

    def full_spec(shape):
        nd = len(shape)
        return pl.BlockSpec(shape, lambda i: (0,) * nd)

    out = pl.pallas_call(
        _fused_head_kernel,
        out_shape=jax.ShapeDtypeStruct((Mp, ncp), jnp.float32),
        grid_spec=pltpu.PrefetchScalarGridSpec(
            num_scalar_prefetch=0,
            grid=(1,),
            in_specs=[
                full_spec(x.shape),
                full_spec(A1.shape), full_spec(B1.shape), full_spec(b1_2d.shape),
                full_spec(A2.shape), full_spec(B2.shape), full_spec(b2_2d.shape),
                full_spec(W3p.shape), full_spec(b3_2d.shape),
            ],
            out_specs=full_spec((Mp, ncp)),
            scratch_shapes=[pltpu.VMEM((Mp, hidden), jnp.bfloat16),
                            pltpu.VMEM((Mp, hidden), jnp.bfloat16)],
        ),
        compiler_params=pltpu.CompilerParams(
            dimension_semantics=("arbitrary",)),
    )(x, A1, B1, b1_2d, A2, B2, b2_2d, W3p, b3_2d)
    return out[:M]


# ---------------------------------------------------------------------------
# Feature-extractor ops (NHWC; conv lowered to lane-dense matmul; channel
# width stays lane-padded to 128 through ReLU / maxpool — padded lanes are 0).
# ---------------------------------------------------------------------------
def conv3x3_relu_nhwc(x, wmat_padded, bias_padded, *, tm_cap=256, tk_cap=2048):
    """3x3, stride 1, pad 1 conv + fused ReLU on NHWC input.
    wmat_padded: (round_up(9*Cin,128), round_up(Cout,128)) bf16, zero-padded.
    Output keeps the padded channel width (padded lanes are exactly 0)."""
    N, H, W, C = x.shape
    Kp, Np = wmat_padded.shape
    K = 9 * C
    x = x.astype(jnp.bfloat16)                              # bf16 patches
    xp = jnp.pad(x, ((0, 0), (1, 1), (1, 1), (0, 0)))
    cols = [xp[:, i:i + H, j:j + W, :] for i in range(3) for j in range(3)]
    patches = jnp.concatenate(cols, axis=-1).reshape(N * H * W, K)
    if Kp != K:
        patches = jnp.pad(patches, ((0, 0), (0, Kp - K)))   # lane-pad K
    out = pallas_matmul(patches, wmat_padded, bias_padded, relu=True,
                        out_dtype=jnp.bfloat16, tm_cap=tm_cap, tk_cap=tk_cap)
    return out.reshape(N, H, W, Np)


def maxpool2_nhwc(x):
    N, H, W, C = x.shape
    return x.reshape(N, H // 2, 2, W // 2, 2, C).max(axis=(2, 4))


def adaptive_avgpool_2x2_nhwc(x):
    N, H, W, C = x.shape
    return x.astype(jnp.float32).reshape(
        N, 2, H // 2, 2, W // 2, C).mean(axis=(2, 4))       # (N, 2, 2, C)


# ---------------------------------------------------------------------------
# VGG_ARLST module (parameters initialized deterministically in-script).
# ---------------------------------------------------------------------------
class VGGARLSTPallas:
    def __init__(self, key, in_ch=3, mid_ch=8, last_conv_channels_len=16,
                 num_classes=10, rank=64, hidden=4096):
        ks = jax.random.split(key, 11)
        s = 0.05
        self.conv1_w = s * jax.random.normal(ks[0], (mid_ch, in_ch, 3, 3), jnp.float32)
        self.conv1_b = s * jax.random.normal(ks[1], (mid_ch,), jnp.float32)
        self.conv2_w = s * jax.random.normal(ks[2], (last_conv_channels_len, mid_ch, 3, 3), jnp.float32)
        self.conv2_b = s * jax.random.normal(ks[3], (last_conv_channels_len,), jnp.float32)

        # Pre-packed, lane-padded bf16 conv weight matrices (im2col layout).
        # conv2's matrix is built for the 128-lane-padded input width so the
        # activation never gets sliced / re-padded between conv stages.
        self.conv1_wmat, self.conv1_bp, c1_np = self._pack_conv(self.conv1_w, self.conv1_b)
        self.conv2_wmat, self.conv2_bp, _ = self._pack_conv(
            self.conv2_w, self.conv2_b, cin_padded=c1_np)

        in1 = last_conv_channels_len * 2 * 2
        # classifier1 = linear_layer(in1, 4096, 64, 32, 64, 64)
        self.cls1_A = s * jax.random.normal(ks[4], (in1, rank), jnp.float32)
        self.cls1_B = s * jax.random.normal(ks[5], (rank, hidden), jnp.float32)
        self.cls1_b = s * jax.random.normal(ks[6], (hidden,), jnp.float32)
        # classifier2 = linear_layer(4096, 4096, 64, 64, 64, 64)
        self.cls2_A = s * jax.random.normal(ks[7], (hidden, rank), jnp.float32)
        self.cls2_B = s * jax.random.normal(ks[8], (rank, hidden), jnp.float32)
        self.cls2_b = s * jax.random.normal(ks[9], (hidden,), jnp.float32)
        # classifier3 = nn.Linear(4096, num_classes); padded to 128 lanes.
        k10, k11 = jax.random.split(ks[10])
        self.cls3_W = s * jax.random.normal(k10, (hidden, num_classes), jnp.float32)
        self.cls3_b = s * jax.random.normal(k11, (num_classes,), jnp.float32)
        ncp = _round_up(num_classes, 128)
        self.cls3_Wp = jnp.pad(self.cls3_W, ((0, 0), (0, ncp - num_classes)))
        self.cls3_bp = jnp.pad(self.cls3_b, (0, ncp - num_classes))
        self.num_classes = num_classes
        self.hidden = hidden
        self.last_conv_channels_len = last_conv_channels_len

    @staticmethod
    def _pack_conv(w, b, cin_padded=None):
        cout, cin, kh, kw = w.shape
        cin_p = cin if cin_padded is None else cin_padded
        K = kh * kw * cin_p
        Kp = _round_up(K, 128)
        Np = _round_up(cout, 128)
        # zero rows for padded input channels, zero cols for padded outputs
        wp = jnp.pad(w, ((0, 0), (0, cin_p - cin), (0, 0), (0, 0)))
        # row ordering (i, j, cin_p) must match the im2col patch ordering.
        wmat = wp.transpose(2, 3, 1, 0).reshape(K, cout)
        wmat = jnp.pad(wmat, ((0, Kp - K), (0, Np - cout))).astype(jnp.bfloat16)
        bp = jnp.pad(b, (0, Np - cout)).astype(jnp.float32)
        return wmat, bp, Np

    def __call__(self, x, training=False):
        in_size = x.shape[0]
        loss_l1 = jnp.zeros((1,), jnp.float32)
        loss_l2 = jnp.zeros((1,), jnp.float32)
        loss_l3 = jnp.zeros((1,), jnp.float32)

        # NCHW -> NHWC once; features stay NHWC at 128-padded channel width.
        h = x.transpose(0, 2, 3, 1)

        # features: conv3x3-relu -> maxpool -> conv3x3-relu -> maxpool
        h = conv3x3_relu_nhwc(h, self.conv1_wmat, self.conv1_bp)   # (N,16,16,128)
        h = maxpool2_nhwc(h)                                       # (N, 8, 8,128)
        h = conv3x3_relu_nhwc(h, self.conv2_wmat, self.conv2_bp)   # (N, 8, 8,128)
        h = maxpool2_nhwc(h)                                       # (N, 4, 4,128)

        # avgpool, single channel slice, channel-major flatten (PyTorch order)
        h = adaptive_avgpool_2x2_nhwc(h)                           # (N, 2, 2,128)
        h = h[..., :self.last_conv_channels_len]                   # (N, 2, 2, 16)
        h = h.transpose(0, 3, 1, 2).reshape(in_size, -1)           # (N, 64)

        w1_1, w1_2 = self.cls1_A, self.cls1_B
        w2_1, w2_2 = self.cls2_A, self.cls2_B

        # Entire classifier head in a single fused Pallas kernel.
        logits_p = pallas_classifier_head(
            h, w1_1, w1_2, self.cls1_b, w2_1, w2_2, self.cls2_b,
            self.cls3_Wp, self.cls3_bp)
        out = logits_p[:, :self.num_classes]

        AA = [w1_1, w2_1]
        BB = [w1_2, w2_2]
        if training:
            # TODO(synk): det/log regularizer terms computed in plain JAX
            # (no Pallas determinant primitive); weights stay f32 here.
            for A_1, B_1 in zip(AA, BB):
                # NOTE: min(w1_1.shape) (not min(A_1.shape)) in loss_l1 matches
                # the original PyTorch spec exactly.
                loss_l1 = loss_l1 + 1.0 / (2 * 2 * min(w1_1.shape) ** 2) * (
                    jnp.sum(jnp.abs(A_1)) + jnp.sum(jnp.abs(B_1)))
                loss_l2 = loss_l2 + 1.0 / (4 * 2 * min(A_1.shape)) * (
                    jnp.log(1e-05 + jnp.abs(jnp.linalg.det(A_1.T @ A_1))) ** 2
                    + jnp.log(1e-05 + jnp.abs(jnp.linalg.det(B_1.T @ B_1))) ** 2)

        return out, loss_l1, loss_l2, loss_l3


if __name__ == "__main__":
    key = jax.random.PRNGKey(0)
    pkey, xkey = jax.random.split(key)
    model = VGGARLSTPallas(pkey, in_ch=3, mid_ch=8, last_conv_channels_len=16,
                           num_classes=10)
    # NCHW input, small shapes: batch=2, channels=3, spatial=16x16
    x = jax.random.normal(xkey, (2, 3, 16, 16), jnp.float32)

    fwd = jax.jit(lambda inp: model(inp, training=False))
    logits, l1, l2, l3 = fwd(x)
    jax.block_until_ready((logits, l1, l2, l3))
    assert logits.shape == (2, 10)
    assert l1.shape == (1,) and l2.shape == (1,) and l3.shape == (1,)
    assert bool(jnp.all(jnp.isfinite(logits)))
    print("KERNEL_OK")
</pallas_src>

<mosaic_0001>
module attributes {stable_mosaic.version = 11 : i64} {
  func.func @_matmul_bias_single_kernel(%arg0: i32, %arg1: i32, %arg2: i32, %arg3: memref<256x128xbf16, #tpu.memory_space<vmem>>, %arg4: memref<128x128xbf16, #tpu.memory_space<vmem>>, %arg5: memref<1x128xf32, #tpu.memory_space<vmem>>, %arg6: memref<256x128xbf16, #tpu.memory_space<vmem>>) attributes {dimension_semantics = [#tpu.dimension_semantics<parallel>, #tpu.dimension_semantics<parallel>, #tpu.dimension_semantics<arbitrary>], iteration_bounds = array<i64: 2, 1, 1>, scalar_prefetch = 0 : i64, scratch_operands = 0 : i64, tpu.core_type = #tpu.core_type<tc>, window_params = [{transform_indices = @transform_0, window_bounds = array<i64: 256, 128>}, {transform_indices = @transform_1, window_bounds = array<i64: 128, 128>}, {transform_indices = @transform_2, window_bounds = array<i64: 1, 128>}, {transform_indices = @transform_3, window_bounds = array<i64: 256, 128>}]} {
    %c0 = arith.constant 0 : index
    %c0_0 = arith.constant 0 : index
    %0 = vector.load %arg3[%c0, %c0_0] : memref<256x128xbf16, #tpu.memory_space<vmem>>, vector<256x128xbf16>
    %c0_1 = arith.constant 0 : index
    %c0_2 = arith.constant 0 : index
    %1 = vector.load %arg4[%c0_1, %c0_2] : memref<128x128xbf16, #tpu.memory_space<vmem>>, vector<128x128xbf16>
    %cst = arith.constant dense<0.000000e+00> : vector<256x128xf32>
    %2 = tpu.matmul %0, %1, %cst {dimension_numbers = #tpu.dot_dimension_numbers<[1], [0], [0], [1], [0, 0, 1, 1], [], []>} : vector<256x128xbf16>, vector<128x128xbf16>, vector<256x128xf32> -> vector<256x128xf32>
    %c0_3 = arith.constant 0 : index
    %c0_4 = arith.constant 0 : index
    %3 = vector.load %arg5[%c0_3, %c0_4] : memref<1x128xf32, #tpu.memory_space<vmem>>, vector<1x128xf32>
    %4 = vector.broadcast %3 : vector<1x128xf32> to vector<256x128xf32>
    %5 = arith.addf %2, %4 : vector<256x128xf32>
    %cst_5 = arith.constant 0.000000e+00 : f32
    %6 = vector.broadcast %cst_5 : f32 to vector<256x128xf32>
    %7 = arith.maximumf %5, %6 : vector<256x128xf32>
    %8 = arith.truncf %7 : vector<256x128xf32> to vector<256x128xbf16>
    %c0_6 = arith.constant 0 : index
    %c0_7 = arith.constant 0 : index
    %9 = vector.load %arg6[%c0_6, %c0_7] : memref<256x128xbf16, #tpu.memory_space<vmem>>, vector<256x128xbf16>
    tpu.vector_store %arg6[%c0_6, %c0_7], %8 {strides = array<i32>} : memref<256x128xbf16, #tpu.memory_space<vmem>>, vector<256x128xbf16>,
    return
  }
  func.func @transform_0(%arg0: i32, %arg1: i32, %arg2: i32) -> (i32, i32) {
    %c0_i32 = arith.constant 0 : i32
    return %arg0, %arg2 : i32, i32
  }
  func.func @transform_1(%arg0: i32, %arg1: i32, %arg2: i32) -> (i32, i32) {
    %c0_i32 = arith.constant 0 : i32
    return %arg2, %arg1 : i32, i32
  }
  func.func @transform_2(%arg0: i32, %arg1: i32, %arg2: i32) -> (i32, i32) {
    %c0_i32 = arith.constant 0 : i32
    %c0_i32_0 = arith.constant 0 : i32
    return %c0_i32, %arg1 : i32, i32
  }
  func.func @transform_3(%arg0: i32, %arg1: i32, %arg2: i32) -> (i32, i32) {
    %c0_i32 = arith.constant 0 : i32
    return %arg0, %arg1 : i32, i32
  }
}

module attributes {stable_mosaic.version = 11 : i64} {
  func.func @_matmul_bias_single_kernel(%arg0: i32, %arg1: i32, %arg2: i32, %arg3: memref<128x1152xbf16, #tpu.memory_space<vmem>>, %arg4: memref<1152x128xbf16, #tpu.memory_space<vmem>>, %arg5: memref<1x128xf32, #tpu.memory_space<vmem>>, %arg6: memref<128x128xbf16, #tpu.memory_space<vmem>>) attributes {dimension_semantics = [#tpu.dimension_semantics<parallel>, #tpu.dimension_semantics<parallel>, #tpu.dimension_semantics<arbitrary>], iteration_bounds = array<i64: 1, 1, 1>, scalar_prefetch = 0 : i64, scratch_operands = 0 : i64, tpu.core_type = #tpu.core_type<tc>, window_params = [{transform_indices = @transform_0, window_bounds = array<i64: 128, 1152>}, {transform_indices = @transform_1, window_bounds = array<i64: 1152, 128>}, {transform_indices = @transform_2, window_bounds = array<i64: 1, 128>}, {transform_indices = @transform_3, window_bounds = array<i64: 128, 128>}]} {
    %c0 = arith.constant 0 : index
    %c0_0 = arith.constant 0 : index
    %0 = vector.load %arg3[%c0, %c0_0] : memref<128x1152xbf16, #tpu.memory_space<vmem>>, vector<128x1152xbf16>
    %c0_1 = arith.constant 0 : index
    %c0_2 = arith.constant 0 : index
    %1 = vector.load %arg4[%c0_1, %c0_2] : memref<1152x128xbf16, #tpu.memory_space<vmem>>, vector<1152x128xbf16>
    %cst = arith.constant dense<0.000000e+00> : vector<128x128xf32>
    %2 = tpu.matmul %0, %1, %cst {dimension_numbers = #tpu.dot_dimension_numbers<[1], [0], [0], [1], [0, 0, 1, 1], [], []>} : vector<128x1152xbf16>, vector<1152x128xbf16>, vector<128x128xf32> -> vector<128x128xf32>
    %c0_3 = arith.constant 0 : index
    %c0_4 = arith.constant 0 : index
    %3 = vector.load %arg5[%c0_3, %c0_4] : memref<1x128xf32, #tpu.memory_space<vmem>>, vector<1x128xf32>
    %4 = vector.broadcast %3 : vector<1x128xf32> to vector<128x128xf32>
    %5 = arith.addf %2, %4 : vector<128x128xf32>
    %cst_5 = arith.constant 0.000000e+00 : f32
    %6 = vector.broadcast %cst_5 : f32 to vector<128x128xf32>
    %7 = arith.maximumf %5, %6 : vector<128x128xf32>
    %8 = arith.truncf %7 : vector<128x128xf32> to vector<128x128xbf16>
    %c0_6 = arith.constant 0 : index
    %c0_7 = arith.constant 0 : index
    %9 = vector.load %arg6[%c0_6, %c0_7] : memref<128x128xbf16, #tpu.memory_space<vmem>>, vector<128x128xbf16>
    tpu.vector_store %arg6[%c0_6, %c0_7], %8 {strides = array<i32>} : memref<128x128xbf16, #tpu.memory_space<vmem>>, vector<128x128xbf16>,
    return
  }
  func.func @transform_0(%arg0: i32, %arg1: i32, %arg2: i32) -> (i32, i32) {
    %c0_i32 = arith.constant 0 : i32
    return %arg0, %arg2 : i32, i32
  }
  func.func @transform_1(%arg0: i32, %arg1: i32, %arg2: i32) -> (i32, i32) {
    %c0_i32 = arith.constant 0 : i32
    return %arg2, %arg1 : i32, i32
  }
  func.func @transform_2(%arg0: i32, %arg1: i32, %arg2: i32) -> (i32, i32) {
    %c0_i32 = arith.constant 0 : i32
    %c0_i32_0 = arith.constant 0 : i32
    return %c0_i32, %arg1 : i32, i32
  }
  func.func @transform_3(%arg0: i32, %arg1: i32, %arg2: i32) -> (i32, i32) {
    %c0_i32 = arith.constant 0 : i32
    return %arg0, %arg1 : i32, i32
  }
}

module attributes {stable_mosaic.version = 11 : i64} {
  func.func @_fused_head_kernel(%arg0: i32, %arg1: memref<8x64xbf16, #tpu.memory_space<vmem>>, %arg2: memref<64x64xbf16, #tpu.memory_space<vmem>>, %arg3: memref<64x4096xbf16, #tpu.memory_space<vmem>>, %arg4: memref<1x4096xf32, #tpu.memory_space<vmem>>, %arg5: memref<4096x64xbf16, #tpu.memory_space<vmem>>, %arg6: memref<64x4096xbf16, #tpu.memory_space<vmem>>, %arg7: memref<1x4096xf32, #tpu.memory_space<vmem>>, %arg8: memref<4096x128xbf16, #tpu.memory_space<vmem>>, %arg9: memref<1x128xf32, #tpu.memory_space<vmem>>, %arg10: memref<8x128xf32, #tpu.memory_space<vmem>>, %arg11: memref<8x4096xbf16, #tpu.memory_space<vmem>>, %arg12: memref<8x4096xbf16, #tpu.memory_space<vmem>>) attributes {dimension_semantics = [#tpu.dimension_semantics<arbitrary>], iteration_bounds = array<i64: 1>, scalar_prefetch = 0 : i64, scratch_operands = 2 : i64, tpu.core_type = #tpu.core_type<tc>, window_params = [{pipeline_mode = #tpu.pipeline_mode<synchronous>, transform_indices = @transform_0, window_bounds = array<i64: 8, 64>}, {pipeline_mode = #tpu.pipeline_mode<synchronous>, transform_indices = @transform_1, window_bounds = array<i64: 64, 64>}, {pipeline_mode = #tpu.pipeline_mode<synchronous>, transform_indices = @transform_2, window_bounds = array<i64: 64, 4096>}, {pipeline_mode = #tpu.pipeline_mode<synchronous>, transform_indices = @transform_3, window_bounds = array<i64: 1, 4096>}, {pipeline_mode = #tpu.pipeline_mode<synchronous>, transform_indices = @transform_4, window_bounds = array<i64: 4096, 64>}, {pipeline_mode = #tpu.pipeline_mode<synchronous>, transform_indices = @transform_5, window_bounds = array<i64: 64, 4096>}, {pipeline_mode = #tpu.pipeline_mode<synchronous>, transform_indices = @transform_6, window_bounds = array<i64: 1, 4096>}, {pipeline_mode = #tpu.pipeline_mode<synchronous>, transform_indices = @transform_7, window_bounds = array<i64: 4096, 128>}, {pipeline_mode = #tpu.pipeline_mode<synchronous>, transform_indices = @transform_8, window_bounds = array<i64: 1, 128>}, {pipeline_mode = #tpu.pipeline_mode<synchronous>, transform_indices = @transform_9, window_bounds = array<i64: 8, 128>}]} {
    %c0 = arith.constant 0 : index
    %c0_0 = arith.constant 0 : index
    %0 = vector.load %arg1[%c0, %c0_0] : memref<8x64xbf16, #tpu.memory_space<vmem>>, vector<8x64xbf16>
    %c0_1 = arith.constant 0 : index
    %c0_2 = arith.constant 0 : index
    %1 = vector.load %arg2[%c0_1, %c0_2] : memref<64x64xbf16, #tpu.memory_space<vmem>>, vector<64x64xbf16>
    %cst = arith.constant dense<0.000000e+00> : vector<8x64xf32>
    %2 = tpu.matmul %0, %1, %cst {dimension_numbers = #tpu.dot_dimension_numbers<[1], [0], [0], [1], [0, 0, 1, 1], [], []>} : vector<8x64xbf16>, vector<64x64xbf16>, vector<8x64xf32> -> vector<8x64xf32>
    %3 = arith.truncf %2 : vector<8x64xf32> to vector<8x64xbf16>
    %c0_3 = arith.constant 0 : index
    %c0_4 = arith.constant 0 : index
    %4 = vector.load %arg3[%c0_3, %c0_4] : memref<64x4096xbf16, #tpu.memory_space<vmem>>, vector<64x4096xbf16>
    %cst_5 = arith.constant dense<0.000000e+00> : vector<8x4096xf32>
    %5 = tpu.matmul %3, %4, %cst_5 {dimension_numbers = #tpu.dot_dimension_numbers<[1], [0], [0], [1], [0, 0, 1, 1], [], []>} : vector<8x64xbf16>, vector<64x4096xbf16>, vector<8x4096xf32> -> vector<8x4096xf32>
    %c0_6 = arith.constant 0 : index
    %c0_7 = arith.constant 0 : index
    %6 = vector.load %arg4[%c0_6, %c0_7] : memref<1x4096xf32, #tpu.memory_space<vmem>>, vector<1x4096xf32>
    %7 = vector.broadcast %6 : vector<1x4096xf32> to vector<8x4096xf32>
    %8 = arith.addf %5, %7 : vector<8x4096xf32>
    %cst_8 = arith.constant 0.000000e+00 : f32
    %9 = vector.broadcast %cst_8 : f32 to vector<8x4096xf32>
    %10 = arith.maximumf %8, %9 : vector<8x4096xf32>
    %11 = arith.truncf %10 : vector<8x4096xf32> to vector<8x4096xbf16>
    %c0_9 = arith.constant 0 : index
    %c0_10 = arith.constant 0 : index
    %12 = vector.load %arg11[%c0_9, %c0_10] : memref<8x4096xbf16, #tpu.memory_space<vmem>>, vector<8x4096xbf16>
    tpu.vector_store %arg11[%c0_9, %c0_10], %11 {strides = array<i32>} : memref<8x4096xbf16, #tpu.memory_space<vmem>>, vector<8x4096xbf16>,
    %c0_11 = arith.constant 0 : index
    %c0_12 = arith.constant 0 : index
    %13 = vector.load %arg11[%c0_11, %c0_12] : memref<8x4096xbf16, #tpu.memory_space<vmem>>, vector<8x4096xbf16>
    %c0_13 = arith.constant 0 : index
    %c0_14 = arith.constant 0 : index
    %14 = vector.load %arg5[%c0_13, %c0_14] : memref<4096x64xbf16, #tpu.memory_space<vmem>>, vector<4096x64xbf16>
    %cst_15 = arith.constant dense<0.000000e+00> : vector<8x64xf32>
    %15 = tpu.matmul %13, %14, %cst_15 {dimension_numbers = #tpu.dot_dimension_numbers<[1], [0], [0], [1], [0, 0, 1, 1], [], []>} : vector<8x4096xbf16>, vector<4096x64xbf16>, vector<8x64xf32> -> vector<8x64xf32>
    %16 = arith.truncf %15 : vector<8x64xf32> to vector<8x64xbf16>
    %c0_16 = arith.constant 0 : index
    %c0_17 = arith.constant 0 : index
    %17 = vector.load %arg6[%c0_16, %c0_17] : memref<64x4096xbf16, #tpu.memory_space<vmem>>, vector<64x4096xbf16>
    %cst_18 = arith.constant dense<0.000000e+00> : vector<8x4096xf32>
    %18 = tpu.matmul %16, %17, %cst_18 {dimension_numbers = #tpu.dot_dimension_numbers<[1], [0], [0], [1], [0, 0, 1, 1], [], []>} : vector<8x64xbf16>, vector<64x4096xbf16>, vector<8x4096xf32> -> vector<8x4096xf32>
    %c0_19 = arith.constant 0 : index
    %c0_20 = arith.constant 0 : index
    %19 = vector.load %arg7[%c0_19, %c0_20] : memref<1x4096xf32, #tpu.memory_space<vmem>>, vector<1x4096xf32>
    %20 = vector.broadcast %19 : vector<1x4096xf32> to vector<8x4096xf32>
    %21 = arith.addf %18, %20 : vector<8x4096xf32>
    %cst_21 = arith.constant 0.000000e+00 : f32
    %22 = vector.broadcast %cst_21 : f32 to vector<8x4096xf32>
    %23 = arith.maximumf %21, %22 : vector<8x4096xf32>
    %24 = arith.truncf %23 : vector<8x4096xf32> to vector<8x4096xbf16>
    %c0_22 = arith.constant 0 : index
    %c0_23 = arith.constant 0 : index
    %25 = vector.load %arg12[%c0_22, %c0_23] : memref<8x4096xbf16, #tpu.memory_space<vmem>>, vector<8x4096xbf16>
    tpu.vector_store %arg12[%c0_22, %c0_23], %24 {strides = array<i32>} : memref<8x4096xbf16, #tpu.memory_space<vmem>>, vector<8x4096xbf16>,
    %c0_24 = arith.constant 0 : index
    %c0_25 = arith.constant 0 : index
    %26 = vector.load %arg12[%c0_24, %c0_25] : memref<8x4096xbf16, #tpu.memory_space<vmem>>, vector<8x4096xbf16>
    %c0_26 = arith.constant 0 : index
    %c0_27 = arith.constant 0 : index
    %27 = vector.load %arg8[%c0_26, %c0_27] : memref<4096x128xbf16, #tpu.memory_space<vmem>>, vector<4096x128xbf16>
    %cst_28 = arith.constant dense<0.000000e+00> : vector<8x128xf32>
    %28 = tpu.matmul %26, %27, %cst_28 {dimension_numbers = #tpu.dot_dimension_numbers<[1], [0], [0], [1], [0, 0, 1, 1], [], []>} : vector<8x4096xbf16>, vector<4096x128xbf16>, vector<8x128xf32> -> vector<8x128xf32>
    %c0_29 = arith.constant 0 : index
    %c0_30 = arith.constant 0 : index
    %29 = vector.load %arg9[%c0_29, %c0_30] : memref<1x128xf32, #tpu.memory_space<vmem>>, vector<1x128xf32>
    %30 = vector.broadcast %29 : vector<1x128xf32> to vector<8x128xf32>
    %31 = arith.addf %28, %30 : vector<8x128xf32>
    %c0_31 = arith.constant 0 : index
    %c0_32 = arith.constant 0 : index
    %32 = vector.load %arg10[%c0_31, %c0_32] : memref<8x128xf32, #tpu.memory_space<vmem>>, vector<8x128xf32>
    tpu.vector_store %arg10[%c0_31, %c0_32], %31 {strides = array<i32>} : memref<8x128xf32, #tpu.memory_space<vmem>>, vector<8x128xf32>,
    return
  }
  func.func @transform_0(%arg0: i32) -> (i32, i32) {
    %c0_i32 = arith.constant 0 : i32
    %c0_i32_0 = arith.constant 0 : i32
    %c0_i32_1 = arith.constant 0 : i32
    return %c0_i32, %c0_i32_0 : i32, i32
  }
  func.func @transform_1(%arg0: i32) -> (i32, i32) {
    %c0_i32 = arith.constant 0 : i32
    %c0_i32_0 = arith.constant 0 : i32
    %c0_i32_1 = arith.constant 0 : i32
    return %c0_i32, %c0_i32_0 : i32, i32
  }
  func.func @transform_2(%arg0: i32) -> (i32, i32) {
    %c0_i32 = arith.constant 0 : i32
    %c0_i32_0 = arith.constant 0 : i32
    %c0_i32_1 = arith.constant 0 : i32
    return %c0_i32, %c0_i32_0 : i32, i32
  }
  func.func @transform_3(%arg0: i32) -> (i32, i32) {
    %c0_i32 = arith.constant 0 : i32
    %c0_i32_0 = arith.constant 0 : i32
    %c0_i32_1 = arith.constant 0 : i32
    return %c0_i32, %c0_i32_0 : i32, i32
  }
  func.func @transform_4(%arg0: i32) -> (i32, i32) {
    %c0_i32 = arith.constant 0 : i32
    %c0_i32_0 = arith.constant 0 : i32
    %c0_i32_1 = arith.constant 0 : i32
    return %c0_i32, %c0_i32_0 : i32, i32
  }
  func.func @transform_5(%arg0: i32) -> (i32, i32) {
    %c0_i32 = arith.constant 0 : i32
    %c0_i32_0 = arith.constant 0 : i32
    %c0_i32_1 = arith.constant 0 : i32
    return %c0_i32, %c0_i32_0 : i32, i32
  }
  func.func @transform_6(%arg0: i32) -> (i32, i32) {
    %c0_i32 = arith.constant 0 : i32
    %c0_i32_0 = arith.constant 0 : i32
    %c0_i32_1 = arith.constant 0 : i32
    return %c0_i32, %c0_i32_0 : i32, i32
  }
  func.func @transform_7(%arg0: i32) -> (i32, i32) {
    %c0_i32 = arith.constant 0 : i32
    %c0_i32_0 = arith.constant 0 : i32
    %c0_i32_1 = arith.constant 0 : i32
    return %c0_i32, %c0_i32_0 : i32, i32
  }
  func.func @transform_8(%arg0: i32) -> (i32, i32) {
    %c0_i32 = arith.constant 0 : i32
    %c0_i32_0 = arith.constant 0 : i32
    %c0_i32_1 = arith.constant 0 : i32
    return %c0_i32, %c0_i32_0 : i32, i32
  }
  func.func @transform_9(%arg0: i32) -> (i32, i32) {
    %c0_i32 = arith.constant 0 : i32
    %c0_i32_0 = arith.constant 0 : i32
    %c0_i32_1 = arith.constant 0 : i32
    return %c0_i32, %c0_i32_0 : i32, i32
  }
}

</mosaic_0001>

<bundles_post_ra>
// kernel: _lambda_.3
= control target key start
LH: loop header
LB: loop body
LE: loop exit
PB: predicated region body
PF: predicated region fallthrough
CT: control target
= control target key end

     0   :  { %s1300_s12 = smov 0   ;;  %s1302_s13 = smov 0   ;;  %s1437_s0 = inlined_call_operand.vmem [shape: bf16[512,128], index: 0, kind: input, shape index: {}]   ;;  %s1438_s1 = inlined_call_operand.vmem [shape: bf16[128,128], index: 1, kind: input, shape index: {}]   ;;  %s1439_s2 = inlined_call_operand.vmem [shape: f32[1,128], index: 2, kind: input, shape index: {}]   ;;  %s1440_s3 = inlined_call_operand.vmem [shape: bf16[512,128], index: 3, kind: output, shape index: {}]  }
   0x1   :  { %s1304_s14 = smov 0  }
   0x2 LB: > { %s32_s15 = sadd.s32 1, %s1274_s13  ;;  %p929_p0 = scmp.ge.s32.totalorder %s1278_s14, 1  ;;  %s1278_s14 = sphi %s1304_s14, %s13_s14   ;;  %s1274_s13 = sphi %s1302_s13, %s1442_s13   ;;  %s1270_s12 = sphi %s1300_s12, %s1441_s12  }
   0x3   : > { %p34_p1 = scmp.ge.s32.totalorder %s32_s15, 2  ;;  %p188_p2 = scmp.lt.s32.totalorder %s1278_s14, 3 }
   0x5   : > { %s1444_s15 = smov (%p34_p1, %s32_s15), 0  ;;  %p189_p3 = pnand %p929_p0, %p188_p2 }
   0x6   : > { %s930_s18 = sshll.u32 (!%p189_p3), %s1270_s12, 5 }
   0x7   : > { %192 = sbr.rel (%p189_p3) target bundleno = 275 (0x113), region = 32  ;;  %p230_p4 = scmp.lt.s32.totalorder (!%p189_p3), %s930_s18, 63 }
   0xc   : > { %v1232_v0 = vld [vmem:[%s1438_s1 + $0x38] sm:$0xff]   ;;  %v1233_v1 = vld [vmem:[%s1438_s1 + $0x30] sm:$0xff]   ;;  %s1446_s18 = smov (!%p230_p4, %s930_s18), 63  ;;  %v1234_v2 = vld [vmem:[%s1438_s1 + $0x28] sm:$0xff]  }
   0xd   : > { %1144 = vmatprep.subr.bf16.mxu0 %v1232_v0  ;;  %1192 = vmatprep.subr.bf16.mxu1 %v1232_v0  ;;  %s931_s23 = sshll.u32 %s1446_s18, 2  ;;  %v1235_v3 = vld [vmem:[%s1438_s1 + $0x20] sm:$0xff]   ;;  %v1236_v6 = vld [vmem:[%s1438_s1 + $0x18] sm:$0xff]   ;;  %v1237_v7 = vld [vmem:[%s1438_s1 + $0x10] sm:$0xff]  }
   0xe   : > { %1145 = vmatpush3.bf16.msra.mxu0 %v1232_v0  ;;  %1200 = vmatpush3.bf16.msra.mxu1 %v1232_v0  ;;  %s1335_s26 = scalar_lea.vmem %s1437_s0, %s931_s23  ;;  %v1238_v8 = vld [vmem:[%s1438_s1 + $0x8] sm:$0xff]   ;;  %v1239_v9 = vld [vmem:[%s1438_s1] sm:$0xff]   ;;  %s1386_s17 = scalar_lea.vmem %s1440_s3, %s931_s23 }
   0xf   : > { %1146 = vmatprep.subr.bf16.mxu0 %v1233_v1  ;;  %1193 = vmatprep.subr.bf16.mxu1 %v1233_v1  ;;  %v1240_v4 = vld [vmem:[%s1335_s26] sm:$0xff]   ;;  %v1242_v10 = vld [vmem:[%s1335_s26 + $0x8] sm:$0xff]   ;;  %v1244_v12 = vld [vmem:[%s1335_s26 + $0x10] sm:$0xff]  }
  0x10   : > { %v1241_v5 = vld [vmem:[%s1335_s26 + $0x40] sm:$0xff]   ;;  %1160 = vmatprep.mubr.bf16.mxu0 %v1240_v4  ;;  %v1243_v11 = vld [vmem:[%s1335_s26 + $0x48] sm:$0xff]   ;;  %v1245_v13 = vld [vmem:[%s1335_s26 + $0x50] sm:$0xff]  }
  0x11   : > { %1176 = vmatprep.mubr.bf16.mxu1 %v1241_v5  ;;  %v1246_v14 = vld [vmem:[%s1335_s26 + $0x18] sm:$0xff]   ;;  %v1248_v16 = vld [vmem:[%s1335_s26 + $0x20] sm:$0xff]   ;;  %v1250_v18 = vld [vmem:[%s1335_s26 + $0x28] sm:$0xff]  }
  0x12   : > { %1147 = vmatpush3.bf16.msra.mxu0 %v1233_v1  ;;  %1201 = vmatpush3.bf16.msra.mxu1 %v1233_v1  ;;  %v1247_v15 = vld [vmem:[%s1335_s26 + $0x58] sm:$0xff]   ;;  %v1249_v17 = vld [vmem:[%s1335_s26 + $0x60] sm:$0xff]   ;;  %v1251_v19 = vld [vmem:[%s1335_s26 + $0x68] sm:$0xff]  }
  0x13   : > { %1148 = vmatprep.subr.bf16.mxu0 %v1234_v2  ;;  %1194 = vmatprep.subr.bf16.mxu1 %v1234_v2  ;;  %v1252_v20 = vld [vmem:[%s1335_s26 + $0x30] sm:$0xff]   ;;  %v1254_v22 = vld [vmem:[%s1335_s26 + $0x38] sm:$0xff]   ;;  %v1371_v24 = vld [vmem:[%s1439_s2] ss:$0 sm:$0xff] }
  0x14   : > { %v1253_v21 = vld [vmem:[%s1335_s26 + $0x70] sm:$0xff]   ;;  %v1255_v23 = vld [vmem:[%s1335_s26 + $0x78] sm:$0xff]  }
  0x16   : > { %1149 = vmatpush3.bf16.msra.mxu0 %v1234_v2  ;;  %1202 = vmatpush3.bf16.msra.mxu1 %v1234_v2 }
  0x17   : > { %1150 = vmatprep.subr.bf16.mxu0 %v1235_v3  ;;  %1195 = vmatprep.subr.bf16.mxu1 %v1235_v3 }
  0x1a   : > { %1151 = vmatpush3.bf16.msra.mxu0 %v1235_v3  ;;  %1203 = vmatpush3.bf16.msra.mxu1 %v1235_v3 }
  0x1b   : > { %1152 = vmatprep.subr.bf16.mxu0 %v1236_v6  ;;  %1196 = vmatprep.subr.bf16.mxu1 %v1236_v6 }
  0x1e   : > { %1153 = vmatpush3.bf16.msra.mxu0 %v1236_v6  ;;  %1204 = vmatpush3.bf16.msra.mxu1 %v1236_v6 }
  0x1f   : > { %1154 = vmatprep.subr.bf16.mxu0 %v1237_v7  ;;  %1197 = vmatprep.subr.bf16.mxu1 %v1237_v7 }
  0x22   : > { %1155 = vmatpush3.bf16.msra.mxu0 %v1237_v7  ;;  %1205 = vmatpush3.bf16.msra.mxu1 %v1237_v7 }
  0x23   : > { %1156 = vmatprep.subr.bf16.mxu0 %v1238_v8  ;;  %1198 = vmatprep.subr.bf16.mxu1 %v1238_v8 }
  0x26   : > { %1157 = vmatpush3.bf16.msra.mxu0 %v1238_v8  ;;  %1206 = vmatpush3.bf16.msra.mxu1 %v1238_v8 }
  0x27   : > { %1158 = vmatprep.subr.bf16.mxu0 %v1239_v9  ;;  %1199 = vmatprep.subr.bf16.mxu1 %v1239_v9 }
  0x2a   : > { %1159 = vmatpush3.bf16.msra.mxu0 %v1239_v9  ;;  %1207 = vmatpush3.bf16.msra.mxu1 %v1239_v9 }
  0x2d   : > { %1161 = vmatmul.mubr.bf16.vlgmr.msra.gmra.mxu0 %v1242_v10  ;;  %1177 = vmatmul.mubr.bf16.vlgmr.msra.gmra.mxu1 %v1243_v11 }
  0x2e   : > { %1164 = vmatprep.mubr.bf16.mxu0 %v1244_v12  ;;  %1180 = vmatprep.mubr.bf16.mxu1 %v1245_v13 }
  0x35   : > { %1165 = vmatmul.mubr.bf16.gmra.mxu0 %v1246_v14  ;;  %1181 = vmatmul.mubr.bf16.gmra.mxu1 %v1247_v15 }
  0x36   : > { %1168 = vmatprep.mubr.bf16.mxu0 %v1248_v16  ;;  %1184 = vmatprep.mubr.bf16.mxu1 %v1249_v17 }
  0x3d   : > { %1169 = vmatmul.mubr.bf16.gmra.mxu0 %v1250_v18  ;;  %1185 = vmatmul.mubr.bf16.gmra.mxu1 %v1251_v19 }
  0x3e   : > { %1172 = vmatprep.mubr.bf16.mxu0 %v1252_v20  ;;  %1188 = vmatprep.mubr.bf16.mxu1 %v1253_v21 }
  0x45   : > { %1173 = vmatmul.mubr.bf16.gmra.mxu0 %v1254_v22  ;;  %1189 = vmatmul.mubr.bf16.gmra.mxu1 %v1255_v23 }
  0xed   : > { %v1162_v25 = vpop.f32.mrf.mxu0  ;;  %v1178_v26 = vpop.f32.mrf.mxu1 }
  0xee   : > { %v502_v27 = vadd.f32 %v1162_v25, %v1371_v24  ;;  %v566_v28 = vadd.f32 %v1178_v26, %v1371_v24 }
  0xef   : > { %v493_v29 = vpop.f32.mrf.mxu0  ;;  %v557_v30 = vpop.f32.mrf.mxu1 }
  0xf0   : > { %v494_v31 = vadd.f32 %v1371_v24, %v493_v29  ;;  %v558_v32 = vadd.f32 %v1371_v24, %v557_v30  ;;  %v622_v37 = vmax.f32 %v502_v27, 0.0  ;;  %v638_v38 = vmax.f32 %v566_v28, 0.0 }
  0xf1   : > { %v1163_v33 = vpop.f32.mrf.mxu0  ;;  %v1179_v34 = vpop.f32.mrf.mxu1 }
  0xf2   : > { %v505_v35 = vadd.f32 %v1163_v33, %v1371_v24  ;;  %v569_v36 = vadd.f32 %v1179_v34, %v1371_v24  ;;  %v620_v45 = vmax.f32 %v494_v31, 0.0  ;;  %v636_v46 = vmax.f32 %v558_v32, 0.0 }
  0xf3   : > { %v496_v39 = vpop.f32.mrf.mxu0  ;;  %v560_v40 = vpop.f32.mrf.mxu1 }
  0xf4   : > { %v623_v41 = vmax.f32 %v505_v35, 0.0  ;;  %v639_v42 = vmax.f32 %v569_v36, 0.0  ;;  %v497_v43 = vadd.f32 %v1371_v24, %v496_v39  ;;  %v561_v44 = vadd.f32 %v1371_v24, %v560_v40 }
  0xf5   : > { %v1166_v47 = vpop.f32.mrf.mxu0  ;;  %v1182_v48 = vpop.f32.mrf.mxu1 }
  0xf6   : > { %v1033_v49 = vpack.c.bf16 %v623_v41, %v622_v37  ;;  %v1073_v50 = vpack.c.bf16 %v639_v42, %v638_v38  ;;  %v621_v51 = vmax.f32 %v497_v43, 0.0  ;;  %v637_v52 = vmax.f32 %v561_v44, 0.0 }
  0xf7   : > { %v518_v53 = vadd.f32 %v1166_v47, %v1371_v24  ;;  %v582_v54 = vadd.f32 %v1182_v48, %v1371_v24  ;;  %v509_v55 = vpop.f32.mrf.mxu0  ;;  %v573_v56 = vpop.f32.mrf.mxu1 }
  0xf8   : > { %1105 = vst [vmem:[%s1386_s17 + $0x8] sm:$0xff] %v1033_v49   ;;  %1113 = vst [vmem:[%s1386_s17 + $0x48] sm:$0xff] %v1073_v50   ;;  %v1028_v57 = vpack.c.bf16 %v621_v51, %v620_v45  ;;  %v1068_v58 = vpack.c.bf16 %v637_v52, %v636_v46  ;;  %v510_v59 = vadd.f32 %v1371_v24, %v509_v55 }
  0xf9   : > { %v574_v60 = vadd.f32 %v1371_v24, %v573_v56  ;;  %v1167_v61 = vpop.f32.mrf.mxu0  ;;  %v1183_v62 = vpop.f32.mrf.mxu1  ;;  %v626_v1 = vmax.f32 %v518_v53, 0.0  ;;  %v642_v2 = vmax.f32 %v582_v54, 0.0 }
  0xfa   : > { %1029 = vst [vmem:[%s1386_s17] sm:$0xff] %v1028_v57   ;;  %1112 = vst [vmem:[%s1386_s17 + $0x40] sm:$0xff] %v1068_v58   ;;  %v521_v63 = vadd.f32 %v1167_v61, %v1371_v24  ;;  %v585_v0 = vadd.f32 %v1183_v62, %v1371_v24  ;;  %v624_v9 = vmax.f32 %v510_v59, 0.0 }
  0xfb   : > { %v512_v3 = vpop.f32.mrf.mxu0  ;;  %v576_v4 = vpop.f32.mrf.mxu1  ;;  %v640_v10 = vmax.f32 %v574_v60, 0.0 }
  0xfc   : > { %v627_v5 = vmax.f32 %v521_v63, 0.0  ;;  %v643_v6 = vmax.f32 %v585_v0, 0.0  ;;  %v513_v7 = vadd.f32 %v1371_v24, %v512_v3  ;;  %v577_v8 = vadd.f32 %v1371_v24, %v576_v4 }
  0xfd   : > { %v1170_v11 = vpop.f32.mrf.mxu0  ;;  %v1186_v12 = vpop.f32.mrf.mxu1 }
  0xfe   : > { %v1043_v13 = vpack.c.bf16 %v627_v5, %v626_v1  ;;  %v1083_v14 = vpack.c.bf16 %v643_v6, %v642_v2  ;;  %v625_v15 = vmax.f32 %v513_v7, 0.0  ;;  %v641_v16 = vmax.f32 %v577_v8, 0.0 }
  0xff   : > { %v534_v17 = vadd.f32 %v1170_v11, %v1371_v24  ;;  %v598_v18 = vadd.f32 %v1186_v12, %v1371_v24  ;;  %v525_v19 = vpop.f32.mrf.mxu0  ;;  %v589_v20 = vpop.f32.mrf.mxu1 }
 0x100   : > { %1107 = vst [vmem:[%s1386_s17 + $0x18] sm:$0xff] %v1043_v13   ;;  %1115 = vst [vmem:[%s1386_s17 + $0x58] sm:$0xff] %v1083_v14   ;;  %v1038_v21 = vpack.c.bf16 %v625_v15, %v624_v9  ;;  %v1078_v22 = vpack.c.bf16 %v641_v16, %v640_v10  ;;  %v526_v23 = vadd.f32 %v1371_v24, %v525_v19 }
 0x101   : > { %v590_v25 = vadd.f32 %v1371_v24, %v589_v20  ;;  %v1171_v26 = vpop.f32.mrf.mxu0  ;;  %v1187_v27 = vpop.f32.mrf.mxu1  ;;  %v630_v30 = vmax.f32 %v534_v17, 0.0  ;;  %v646_v31 = vmax.f32 %v598_v18, 0.0 }
 0x102   : > { %1106 = vst [vmem:[%s1386_s17 + $0x10] sm:$0xff] %v1038_v21   ;;  %1114 = vst [vmem:[%s1386_s17 + $0x50] sm:$0xff] %v1078_v22   ;;  %v537_v28 = vadd.f32 %v1171_v26, %v1371_v24  ;;  %v601_v29 = vadd.f32 %v1187_v27, %v1371_v24  ;;  %v628_v38 = vmax.f32 %v526_v23, 0.0 }
 0x103   : > { %v528_v32 = vpop.f32.mrf.mxu0  ;;  %v592_v33 = vpop.f32.mrf.mxu1  ;;  %v644_v39 = vmax.f32 %v590_v25, 0.0 }
 0x104   : > { %v631_v34 = vmax.f32 %v537_v28, 0.0  ;;  %v647_v35 = vmax.f32 %v601_v29, 0.0  ;;  %v529_v36 = vadd.f32 %v1371_v24, %v528_v32  ;;  %v593_v37 = vadd.f32 %v1371_v24, %v592_v33 }
 0x105   : > { %v1174_v40 = vpop.f32.mrf.mxu0  ;;  %v1190_v41 = vpop.f32.mrf.mxu1 }
 0x106   : > { %v1053_v42 = vpack.c.bf16 %v631_v34, %v630_v30  ;;  %v1093_v43 = vpack.c.bf16 %v647_v35, %v646_v31  ;;  %v629_v44 = vmax.f32 %v529_v36, 0.0  ;;  %v645_v45 = vmax.f32 %v593_v37, 0.0 }
 0x107   : > { %v550_v46 = vadd.f32 %v1174_v40, %v1371_v24  ;;  %v614_v47 = vadd.f32 %v1190_v41, %v1371_v24  ;;  %v541_v48 = vpop.f32.mrf.mxu0  ;;  %v605_v49 = vpop.f32.mrf.mxu1 }
 0x108   : > { %1109 = vst [vmem:[%s1386_s17 + $0x28] sm:$0xff] %v1053_v42   ;;  %1117 = vst [vmem:[%s1386_s17 + $0x68] sm:$0xff] %v1093_v43   ;;  %v1048_v50 = vpack.c.bf16 %v629_v44, %v628_v38  ;;  %v1088_v51 = vpack.c.bf16 %v645_v45, %v644_v39  ;;  %v542_v52 = vadd.f32 %v1371_v24, %v541_v48 }
 0x109   : > { %v606_v53 = vadd.f32 %v1371_v24, %v605_v49  ;;  %v1175_v54 = vpop.f32.mrf.mxu0  ;;  %v1191_v55 = vpop.f32.mrf.mxu1  ;;  %v634_v58 = vmax.f32 %v550_v46, 0.0  ;;  %v650_v59 = vmax.f32 %v614_v47, 0.0 }
 0x10a   : > { %1108 = vst [vmem:[%s1386_s17 + $0x20] sm:$0xff] %v1048_v50   ;;  %1116 = vst [vmem:[%s1386_s17 + $0x60] sm:$0xff] %v1088_v51   ;;  %v553_v56 = vadd.f32 %v1175_v54, %v1371_v24  ;;  %v617_v57 = vadd.f32 %v1191_v55, %v1371_v24  ;;  %v632_v2 = vmax.f32 %v542_v52, 0.0 }
 0x10b   : > { %v544_v60 = vpop.f32.mrf.mxu0  ;;  %v608_v61 = vpop.f32.mrf.mxu1  ;;  %v648_v3 = vmax.f32 %v606_v53, 0.0 }
 0x10c   : > { %v635_v62 = vmax.f32 %v553_v56, 0.0  ;;  %v651_v63 = vmax.f32 %v617_v57, 0.0  ;;  %v545_v0 = vadd.f32 %v1371_v24, %v544_v60  ;;  %v609_v1 = vadd.f32 %v1371_v24, %v608_v61 }
 0x10e   : > { %v1063_v4 = vpack.c.bf16 %v635_v62, %v634_v58  ;;  %v1103_v5 = vpack.c.bf16 %v651_v63, %v650_v59  ;;  %v633_v6 = vmax.f32 %v545_v0, 0.0  ;;  %v649_v7 = vmax.f32 %v609_v1, 0.0 }
 0x110   : > { %1111 = vst [vmem:[%s1386_s17 + $0x38] sm:$0xff] %v1063_v4   ;;  %1119 = vst [vmem:[%s1386_s17 + $0x78] sm:$0xff] %v1103_v5   ;;  %v1058_v8 = vpack.c.bf16 %v633_v6, %v632_v2  ;;  %v1098_v9 = vpack.c.bf16 %v649_v7, %v648_v3 }
 0x112   : > { %1110 = vst [vmem:[%s1386_s17 + $0x30] sm:$0xff] %v1058_v8   ;;  %1118 = vst [vmem:[%s1386_s17 + $0x70] sm:$0xff] %v1098_v9  }
 0x113 PF: > { %s13_s14 = sadd.s32 1, %s1278_s14   ;;  %s1441_s12 = smov %s1274_s13 }
 0x114   : > { %p10_p5 = scmp.ge.s32.totalorder %s13_s14, 4   ;;  %s1442_s13 = smov %s1444_s15 }
 0x116   :  { %12 = sbr.rel (!%p10_p5) target bundleno = 2 (0x2), region = 68 }

// kernel: _lambda_.4
= control target key start
LH: loop header
LB: loop body
LE: loop exit
PB: predicated region body
PF: predicated region fallthrough
CT: control target
= control target key end

     0   :  { %s2950_s1 = inlined_call_operand.vmem [shape: bf16[1152,128], index: 1, kind: input, shape index: {}]   ;;  %s2951_s0 = inlined_call_operand.vmem [shape: bf16[128,1152], index: 0, kind: input, shape index: {}]   ;;  %s2952_s2 = inlined_call_operand.vmem [shape: f32[1,128], index: 2, kind: input, shape index: {}]   ;;  %s2953_s3 = inlined_call_operand.vmem [shape: bf16[128,128], index: 3, kind: output, shape index: {}]  }
   0x1   :  { %v2175_v0 = vld [vmem:[%s2950_s1 + $0x78] sm:$0xff]   ;;  %v2179_v4 = vld [vmem:[%s2950_s1 + $0x70] sm:$0xff]   ;;  %v2183_v8 = vld [vmem:[%s2950_s1 + $0x68] sm:$0xff]  }
   0x2   :  { %v2176_v1 = vld [vmem:[%s2950_s1 + $0xf8] sm:$0xff]   ;;  %1855 = vmatprep.subr.bf16.mxu0 %v2175_v0  ;;  %v2180_v5 = vld [vmem:[%s2950_s1 + $0xf0] sm:$0xff]   ;;  %v2184_v9 = vld [vmem:[%s2950_s1 + $0xe8] sm:$0xff]  }
   0x3   :  { %v2177_v2 = vld [vmem:[%s2950_s1 + $0x38] sm:$0xff]   ;;  %1919 = vmatprep.subr.bf16.mxu1 %v2176_v1  ;;  %v2181_v6 = vld [vmem:[%s2950_s1 + $0x30] sm:$0xff]   ;;  %v2185_v10 = vld [vmem:[%s2950_s1 + $0x28] sm:$0xff]  }
   0x4   :  { %v2178_v3 = vld [vmem:[%s2950_s1 + $0xb8] sm:$0xff]   ;;  %1856 = vmatpush3.bf16.msra.mxu0 %v2177_v2  ;;  %v2182_v7 = vld [vmem:[%s2950_s1 + $0xb0] sm:$0xff]   ;;  %v2186_v11 = vld [vmem:[%s2950_s1 + $0xa8] sm:$0xff]  }
   0x5   :  { %1920 = vmatpush3.bf16.msra.mxu1 %v2178_v3  ;;  %1857 = vmatprep.subr.bf16.mxu0 %v2179_v4  ;;  %v2187_v12 = vld [vmem:[%s2950_s1 + $0x60] sm:$0xff]   ;;  %v2191_v16 = vld [vmem:[%s2950_s1 + $0x58] sm:$0xff]   ;;  %v2195_v20 = vld [vmem:[%s2950_s1 + $0x50] sm:$0xff]  }
   0x6   :  { %1921 = vmatprep.subr.bf16.mxu1 %v2180_v5  ;;  %v2188_v13 = vld [vmem:[%s2950_s1 + $0xe0] sm:$0xff]   ;;  %v2192_v17 = vld [vmem:[%s2950_s1 + $0xd8] sm:$0xff]   ;;  %v2196_v21 = vld [vmem:[%s2950_s1 + $0xd0] sm:$0xff]  }
   0x7   :  { %v2189_v14 = vld [vmem:[%s2950_s1 + $0x20] sm:$0xff]   ;;  %v2193_v18 = vld [vmem:[%s2950_s1 + $0x18] sm:$0xff]   ;;  %v2197_v22 = vld [vmem:[%s2950_s1 + $0x10] sm:$0xff]  }
   0x8   :  { %1858 = vmatpush3.bf16.msra.mxu0 %v2181_v6  ;;  %v2190_v15 = vld [vmem:[%s2950_s1 + $0xa0] sm:$0xff]   ;;  %v2194_v19 = vld [vmem:[%s2950_s1 + $0x98] sm:$0xff]   ;;  %v2198_v23 = vld [vmem:[%s2950_s1 + $0x90] sm:$0xff]  }
   0x9   :  { %1922 = vmatpush3.bf16.msra.mxu1 %v2182_v7  ;;  %1859 = vmatprep.subr.bf16.mxu0 %v2183_v8  ;;  %v2199_v24 = vld [vmem:[%s2950_s1 + $0x48] sm:$0xff]   ;;  %v2203_v28 = vld [vmem:[%s2950_s1 + $0x40] sm:$0xff]   ;;  %v2213_v36 = vld [vmem:[%s2950_s1 + $0x178] sm:$0xff]  }
   0xa   :  { %1923 = vmatprep.subr.bf16.mxu1 %v2184_v9  ;;  %v2200_v25 = vld [vmem:[%s2950_s1 + $0xc8] sm:$0xff]   ;;  %v2204_v29 = vld [vmem:[%s2950_s1 + $0xc0] sm:$0xff]   ;;  %v2214_v37 = vld [vmem:[%s2950_s1 + $0x1f8] sm:$0xff]  }
   0xb   :  { %v2201_v26 = vld [vmem:[%s2950_s1 + $0x8] sm:$0xff]   ;;  %v2205_v30 = vld [vmem:[%s2950_s1] sm:$0xff]   ;;  %v2215_v38 = vld [vmem:[%s2950_s1 + $0x138] sm:$0xff]  }
   0xc   :  { %1860 = vmatpush3.bf16.msra.mxu0 %v2185_v10  ;;  %v2202_v27 = vld [vmem:[%s2950_s1 + $0x88] sm:$0xff]   ;;  %v2206_v31 = vld [vmem:[%s2950_s1 + $0x80] sm:$0xff]   ;;  %v2216_v39 = vld [vmem:[%s2950_s1 + $0x1b8] sm:$0xff]  }
   0xd   :  { %1924 = vmatpush3.bf16.msra.mxu1 %v2186_v11  ;;  %1861 = vmatprep.subr.bf16.mxu0 %v2187_v12  ;;  %v2207_v32 = vld [vmem:[%s2951_s0] ss:$36 sps:$4 sm:$0xff]   ;;  %v2210_v34 = vld [vmem:[%s2951_s0 + $0x8] ss:$36 sps:$4 sm:$0xff]   ;;  %v2219_v41 = vld [vmem:[%s2951_s0 + $0x54] ss:$36 sps:$4 sm:$0xff]  }
   0xe   :  { %1925 = vmatprep.subr.bf16.mxu1 %v2188_v13  ;;  %v2209_v33 = vld [vmem:[%s2951_s0 + $0x4] ss:$36 sps:$4 sm:$0xff]   ;;  %v2212_v35 = vld [vmem:[%s2951_s0 + $0xc] ss:$36 sps:$4 sm:$0xff]   ;;  %v2227_v48 = vld [vmem:[%s2951_s0 + $0x94] ss:$36 sps:$4 sm:$0xff]  }
   0xf   :  { %1078 = vmatprep.mubr.bf16.mxu0 %v2209_v33  ;;  %1175 = vmatprep.mubr.bf16.mxu1 %v2212_v35  ;;  %v2217_v40 = vld [vmem:[%s2951_s0 + $0x4c] ss:$36 sps:$4 sm:$0xff]   ;;  %v2229_v49 = vld [vmem:[%s2951_s0 + $0x9c] ss:$36 sps:$4 sm:$0xff]   ;;  %v2239_v57 = vld [vmem:[%s2951_s0 + $0xe4] ss:$36 sps:$4 sm:$0xff]  }
  0x10   :  { %1862 = vmatpush3.bf16.msra.mxu0 %v2189_v14  ;;  %v2221_v42 = vld [vmem:[%s2951_s0 + $0x48] ss:$36 sps:$4 sm:$0xff]   ;;  %v2222_v43 = vld [vmem:[%s2951_s0 + $0x50] ss:$36 sps:$4 sm:$0xff]   ;;  %v2232_v51 = vld [vmem:[%s2951_s0 + $0x98] ss:$36 sps:$4 sm:$0xff]  }
  0x11   :  { %1926 = vmatpush3.bf16.msra.mxu1 %v2190_v15  ;;  %1863 = vmatprep.subr.bf16.mxu0 %v2191_v16  ;;  %v2223_v44 = vld [vmem:[%s2950_s1 + $0x170] sm:$0xff]   ;;  %v2233_v52 = vld [vmem:[%s2950_s1 + $0x168] sm:$0xff]   ;;  %v2237_v56 = vld [vmem:[%s2951_s0 + $0xdc] ss:$36 sps:$4 sm:$0xff]  }
  0x12   :  { %1927 = vmatprep.subr.bf16.mxu1 %v2192_v17  ;;  %v2224_v45 = vld [vmem:[%s2950_s1 + $0x1f0] sm:$0xff]   ;;  %v2234_v53 = vld [vmem:[%s2950_s1 + $0x1e8] sm:$0xff]   ;;  %v2241_v58 = vld [vmem:[%s2951_s0 + $0xd8] ss:$36 sps:$4 sm:$0xff]  }
  0x13   :  { %v2225_v46 = vld [vmem:[%s2950_s1 + $0x130] sm:$0xff]   ;;  %v2235_v54 = vld [vmem:[%s2950_s1 + $0x128] sm:$0xff]   ;;  %v2242_v59 = vld [vmem:[%s2951_s0 + $0xe0] ss:$36 sps:$4 sm:$0xff]  }
  0x14   :  { %1864 = vmatpush3.bf16.msra.mxu0 %v2193_v18  ;;  %v2226_v47 = vld [vmem:[%s2950_s1 + $0x1b0] sm:$0xff]   ;;  %v2236_v55 = vld [vmem:[%s2950_s1 + $0x1a8] sm:$0xff]   ;;  %v2243_v60 = vld [vmem:[%s2950_s1 + $0x160] sm:$0xff]  }
  0x15   :  { %1928 = vmatpush3.bf16.msra.mxu1 %v2194_v19  ;;  %1865 = vmatprep.subr.bf16.mxu0 %v2195_v20  ;;  %v2231_v50 = vld [vmem:[%s2951_s0 + $0x90] ss:$36 sps:$4 sm:$0xff]   ;;  %v2244_v61 = vld [vmem:[%s2950_s1 + $0x1e0] sm:$0xff]   ;;  %v2253_v3 = vld [vmem:[%s2950_s1 + $0x158] sm:$0xff]  }
  0x16   :  { %1929 = vmatprep.subr.bf16.mxu1 %v2196_v21  ;;  %v2245_v62 = vld [vmem:[%s2950_s1 + $0x120] sm:$0xff]   ;;  %v2249_v1 = vld [vmem:[%s2951_s0 + $0x12c] ss:$36 sps:$4 sm:$0xff]   ;;  %v2254_v5 = vld [vmem:[%s2950_s1 + $0x1d8] sm:$0xff]  }
  0x17   :  { %v2246_v63 = vld [vmem:[%s2950_s1 + $0x1a0] sm:$0xff]   ;;  %v2252_v4 = vld [vmem:[%s2951_s0 + $0x128] ss:$36 sps:$4 sm:$0xff]   ;;  %v2255_v6 = vld [vmem:[%s2950_s1 + $0x118] sm:$0xff]  }
  0x18   :  { %1866 = vmatpush3.bf16.msra.mxu0 %v2197_v22  ;;  %v2247_v0 = vld [vmem:[%s2951_s0 + $0x124] ss:$36 sps:$4 sm:$0xff]   ;;  %v2256_v7 = vld [vmem:[%s2950_s1 + $0x198] sm:$0xff]   ;;  %v2257_v8 = vld [vmem:[%s2951_s0 + $0x16c] ss:$36 sps:$4 sm:$0xff]  }
  0x19   :  { %1930 = vmatpush3.bf16.msra.mxu1 %v2198_v23  ;;  %1867 = vmatprep.subr.bf16.mxu0 %v2199_v24  ;;  %v2251_v2 = vld [vmem:[%s2951_s0 + $0x120] ss:$36 sps:$4 sm:$0xff]   ;;  %v2259_v9 = vld [vmem:[%s2951_s0 + $0x174] ss:$36 sps:$4 sm:$0xff]   ;;  %v2261_v12 = vld [vmem:[%s2951_s0 + $0x168] ss:$36 sps:$4 sm:$0xff]  }
  0x1a   :  { %1931 = vmatprep.subr.bf16.mxu1 %v2200_v25  ;;  %v2263_v10 = vld [vmem:[%s2950_s1 + $0x150] sm:$0xff]   ;;  %v2269_v17 = vld [vmem:[%s2951_s0 + $0x1bc] ss:$36 sps:$4 sm:$0xff]   ;;  %v2273_v18 = vld [vmem:[%s2950_s1 + $0x148] sm:$0xff]  }
  0x1b   :  { %v2264_v11 = vld [vmem:[%s2950_s1 + $0x1d0] sm:$0xff]   ;;  %v2274_v19 = vld [vmem:[%s2950_s1 + $0x1c8] sm:$0xff]   ;;  %v2272_v23 = vld [vmem:[%s2951_s0 + $0x1b8] ss:$36 sps:$4 sm:$0xff]  }
  0x1c   :  { %1868 = vmatpush3.bf16.msra.mxu0 %v2201_v26  ;;  %v2265_v13 = vld [vmem:[%s2950_s1 + $0x110] sm:$0xff]   ;;  %v2275_v20 = vld [vmem:[%s2950_s1 + $0x108] sm:$0xff]   ;;  %v2277_v24 = vld [vmem:[%s2951_s0 + $0x1fc] ss:$36 sps:$4 sm:$0xff]  }
  0x1d   :  { %1932 = vmatpush3.bf16.msra.mxu1 %v2202_v27  ;;  %1869 = vmatprep.subr.bf16.mxu0 %v2203_v28  ;;  %v2266_v14 = vld [vmem:[%s2950_s1 + $0x190] sm:$0xff]   ;;  %v2276_v21 = vld [vmem:[%s2950_s1 + $0x188] sm:$0xff]   ;;  %v2283_v26 = vld [vmem:[%s2950_s1 + $0x140] sm:$0xff]  }
  0x1e   :  { %1933 = vmatprep.subr.bf16.mxu1 %v2204_v29  ;;  %v2262_v15 = vld [vmem:[%s2951_s0 + $0x170] ss:$36 sps:$4 sm:$0xff]   ;;  %v2279_v25 = vld [vmem:[%s2951_s0 + $0x204] ss:$36 sps:$4 sm:$0xff]  }
  0x1f   :  { %v2267_v16 = vld [vmem:[%s2951_s0 + $0x1b4] ss:$36 sps:$4 sm:$0xff]   ;;  %v2284_v27 = vld [vmem:[%s2950_s1 + $0x1c0] sm:$0xff]  }
  0x20   :  { %1870 = vmatpush3.bf16.msra.mxu0 %v2205_v30  ;;  %v2271_v22 = vld [vmem:[%s2951_s0 + $0x1b0] ss:$36 sps:$4 sm:$0xff]   ;;  %v2285_v28 = vld [vmem:[%s2950_s1 + $0x100] sm:$0xff]   ;;  %v2281_v30 = vld [vmem:[%s2951_s0 + $0x1f8] ss:$36 sps:$4 sm:$0xff]  }
  0x21   :  { %1934 = vmatpush3.bf16.msra.mxu1 %v2206_v31  ;;  %1983 = vmatprep.subr.bf16.mxu0 %v2213_v36  ;;  %v2286_v29 = vld [vmem:[%s2950_s1 + $0x180] sm:$0xff]   ;;  %v2289_v33 = vld [vmem:[%s2951_s0 + $0x14] ss:$36 sps:$4 sm:$0xff]  }
  0x22   :  { %2047 = vmatprep.subr.bf16.mxu1 %v2214_v37  ;;  %v2282_v31 = vld [vmem:[%s2951_s0 + $0x200] ss:$36 sps:$4 sm:$0xff]   ;;  %v2287_v35 = vld [vmem:[%s2951_s0 + $0x10] ss:$36 sps:$4 sm:$0xff]   ;;  %v2290_v36 = vld [vmem:[%s2951_s0 + $0x18] ss:$36 sps:$4 sm:$0xff]  }
  0x23   :  { %1079 = vmatmul.mubr.bf16.vlgmr.msra.gmra.mxu0 %v2207_v32  ;;  %v2293_v32 = vld [vmem:[%s2950_s1 + $0x238] sm:$0xff]  }
  0x24   :  { %1176 = vmatmul.mubr.bf16.vlgmr.msra.gmra.mxu1 %v2210_v34  ;;  %1984 = vmatpush3.bf16.msra.mxu0 %v2215_v38  ;;  %v2292_v34 = vld [vmem:[%s2951_s0 + $0x1c] ss:$36 sps:$4 sm:$0xff]   ;;  %v2296_v38 = vld [vmem:[%s2951_s0 + $0x64] ss:$36 sps:$4 sm:$0xff]  }
  0x25   :  { %2048 = vmatpush3.bf16.msra.mxu1 %v2216_v39  ;;  %1086 = vmatprep.mubr.bf16.mxu0 %v2217_v40  ;;  %v2294_v37 = vld [vmem:[%s2951_s0 + $0x5c] ss:$36 sps:$4 sm:$0xff]   ;;  %v2300_v39 = vld [vmem:[%s2950_s1 + $0x230] sm:$0xff]   ;;  %v2307_v40 = vld [vmem:[%s2950_s1 + $0x228] sm:$0xff]  }
  0x26   :  { %1183 = vmatprep.mubr.bf16.mxu1 %v2219_v41  ;;  %1985 = vmatprep.subr.bf16.mxu0 %v2223_v44  ;;  %v2298_v41 = vld [vmem:[%s2951_s0 + $0x58] ss:$36 sps:$4 sm:$0xff]   ;;  %v2303_v44 = vld [vmem:[%s2951_s0 + $0xac] ss:$36 sps:$4 sm:$0xff]  }
  0x27   :  { %2049 = vmatprep.subr.bf16.mxu1 %v2224_v45  ;;  %v2314_v45 = vld [vmem:[%s2950_s1 + $0x220] sm:$0xff]  }
  0x28   :  { %1986 = vmatpush3.bf16.msra.mxu0 %v2225_v46  ;;  %v2321_v46 = vld [vmem:[%s2950_s1 + $0x218] sm:$0xff]  }
  0x29   :  { %2050 = vmatpush3.bf16.msra.mxu1 %v2226_v47  ;;  %1987 = vmatprep.subr.bf16.mxu0 %v2233_v52  ;;  %v2305_v47 = vld [vmem:[%s2951_s0 + $0xa0] ss:$36 sps:$4 sm:$0xff]   ;;  %v2312_v52 = vld [vmem:[%s2951_s0 + $0xe8] ss:$36 sps:$4 sm:$0xff]  }
  0x2a   :  { %2051 = vmatprep.subr.bf16.mxu1 %v2234_v53  ;;  %v2335_v53 = vld [vmem:[%s2950_s1 + $0x208] sm:$0xff]  }
  0x2b   :  { %1087 = vmatmul.mubr.bf16.gmra.mxu0 %v2221_v42  ;;  %v2299_v42 = vld [vmem:[%s2951_s0 + $0x60] ss:$36 sps:$4 sm:$0xff]  }
  0x2c   :  { %1184 = vmatmul.mubr.bf16.gmra.mxu1 %v2222_v43  ;;  %1094 = vmatprep.mubr.bf16.mxu0 %v2227_v48  ;;  %v2301_v43 = vld [vmem:[%s2951_s0 + $0xa4] ss:$36 sps:$4 sm:$0xff]  }
  0x2d   :  { %1191 = vmatprep.mubr.bf16.mxu1 %v2229_v49  ;;  %1988 = vmatpush3.bf16.msra.mxu0 %v2235_v54  ;;  %v2306_v48 = vld [vmem:[%s2951_s0 + $0xa8] ss:$36 sps:$4 sm:$0xff]   ;;  %v2313_v54 = vld [vmem:[%s2951_s0 + $0xf0] ss:$36 sps:$4 sm:$0xff]  }
  0x2e   :  { %2052 = vmatpush3.bf16.msra.mxu1 %v2236_v55  ;;  %1989 = vmatprep.subr.bf16.mxu0 %v2243_v60  ;;  %v2308_v49 = vld [vmem:[%s2951_s0 + $0xec] ss:$36 sps:$4 sm:$0xff]   ;;  %v2315_v55 = vld [vmem:[%s2951_s0 + $0x134] ss:$36 sps:$4 sm:$0xff]   ;;  %v2322_v60 = vld [vmem:[%s2951_s0 + $0x17c] ss:$36 sps:$4 sm:$0xff]  }
  0x2f   :  { %2053 = vmatprep.subr.bf16.mxu1 %v2244_v61  ;;  %v2324_v61 = vld [vmem:[%s2951_s0 + $0x184] ss:$36 sps:$4 sm:$0xff]  }
  0x31   :  { %1990 = vmatpush3.bf16.msra.mxu0 %v2245_v62  ;;  %v2326_v62 = vld [vmem:[%s2951_s0 + $0x178] ss:$36 sps:$4 sm:$0xff]  }
  0x32   :  { %2054 = vmatpush3.bf16.msra.mxu1 %v2246_v63  ;;  %1991 = vmatprep.subr.bf16.mxu0 %v2253_v3  ;;  %v2327_v63 = vld [vmem:[%s2951_s0 + $0x180] ss:$36 sps:$4 sm:$0xff]   ;;  %v2334_v3 = vld [vmem:[%s2951_s0 + $0x1c8] ss:$36 sps:$4 sm:$0xff]  }
  0x33   :  { %1095 = vmatmul.mubr.bf16.gmra.mxu0 %v2231_v50  ;;  %2055 = vmatprep.subr.bf16.mxu1 %v2254_v5  ;;  %v2310_v50 = vld [vmem:[%s2951_s0 + $0xf4] ss:$36 sps:$4 sm:$0xff]  }
  0x34   :  { %1192 = vmatmul.mubr.bf16.gmra.mxu1 %v2232_v51  ;;  %1102 = vmatprep.mubr.bf16.mxu0 %v2237_v56  ;;  %v2328_v51 = vld [vmem:[%s2950_s1 + $0x210] sm:$0xff]   ;;  %v2317_v56 = vld [vmem:[%s2951_s0 + $0x13c] ss:$36 sps:$4 sm:$0xff]  }
  0x35   :  { %1199 = vmatprep.mubr.bf16.mxu1 %v2239_v57  ;;  %1992 = vmatpush3.bf16.msra.mxu0 %v2255_v6  ;;  %v2342_v57 = vld [vmem:[%s2950_s1 + $0x200] sm:$0xff]   ;;  %v2338_v5 = vld [vmem:[%s2951_s0 + $0x214] ss:$36 sps:$4 sm:$0xff]   ;;  %v2340_v6 = vld [vmem:[%s2951_s0 + $0x208] ss:$36 sps:$4 sm:$0xff]  }
  0x36   :  { %2056 = vmatpush3.bf16.msra.mxu1 %v2256_v7  ;;  %1993 = vmatprep.subr.bf16.mxu0 %v2263_v10  ;;  %v2341_v7 = vld [vmem:[%s2951_s0 + $0x210] ss:$36 sps:$4 sm:$0xff]   ;;  %v2345_v10 = vld [vmem:[%s2951_s0 + $0x68] ss:$36 sps:$4 sm:$0xff]  }
  0x37   :  { %2057 = vmatprep.subr.bf16.mxu1 %v2264_v11  ;;  %v2346_v11 = vld [vmem:[%s2951_s0 + $0x188] ss:$36 sps:$4 sm:$0xff]  }
  0x39   :  { %1994 = vmatpush3.bf16.msra.mxu0 %v2265_v13  ;;  %v2348_v13 = vld [vmem:[%s2951_s0 + $0x1d0] ss:$36 sps:$4 sm:$0xff]  }
  0x3a   :  { %2058 = vmatpush3.bf16.msra.mxu1 %v2266_v14  ;;  %1995 = vmatprep.subr.bf16.mxu0 %v2273_v18  ;;  %v2349_v14 = vld [vmem:[%s2951_s0 + $0xf8] ss:$36 sps:$4 sm:$0xff]   ;;  %v2806_v18 = vld [vmem:[%s2952_s2] ss:$0 sm:$0xff] }
  0x3b   :  { %1103 = vmatmul.mubr.bf16.gmra.mxu0 %v2241_v58  ;;  %2059 = vmatprep.subr.bf16.mxu1 %v2274_v19  ;;  %v2319_v58 = vld [vmem:[%s2951_s0 + $0x130] ss:$36 sps:$4 sm:$0xff]  }
  0x3c   :  { %1200 = vmatmul.mubr.bf16.gmra.mxu1 %v2242_v59  ;;  %1110 = vmatprep.mubr.bf16.mxu0 %v2247_v0  ;;  %v2320_v59 = vld [vmem:[%s2951_s0 + $0x138] ss:$36 sps:$4 sm:$0xff]   ;;  %v2329_v0 = vld [vmem:[%s2951_s0 + $0x1c4] ss:$36 sps:$4 sm:$0xff]  }
  0x3d   :  { %1207 = vmatprep.mubr.bf16.mxu1 %v2249_v1  ;;  %1996 = vmatpush3.bf16.msra.mxu0 %v2275_v20  ;;  %v2331_v1 = vld [vmem:[%s2951_s0 + $0x1cc] ss:$36 sps:$4 sm:$0xff]  }
  0x3e   :  { %2060 = vmatpush3.bf16.msra.mxu1 %v2276_v21  ;;  %1997 = vmatprep.subr.bf16.mxu0 %v2283_v26 }
  0x3f   :  { %2061 = vmatprep.subr.bf16.mxu1 %v2284_v27 }
  0x41   :  { %1998 = vmatpush3.bf16.msra.mxu0 %v2285_v28 }
  0x42   :  { %2062 = vmatpush3.bf16.msra.mxu1 %v2286_v29  ;;  %2127 = vmatprep.subr.bf16.mxu0 %v2293_v32 }
  0x43   :  { %1111 = vmatmul.mubr.bf16.gmra.mxu0 %v2251_v2  ;;  %2159 = vmatprep.subr.bf16.mxu1 %v2293_v32  ;;  %v2333_v2 = vld [vmem:[%s2951_s0 + $0x1c0] ss:$36 sps:$4 sm:$0xff]  }
  0x44   :  { %1208 = vmatmul.mubr.bf16.gmra.mxu1 %v2252_v4  ;;  %1118 = vmatprep.mubr.bf16.mxu0 %v2257_v8  ;;  %v2336_v4 = vld [vmem:[%s2951_s0 + $0x20c] ss:$36 sps:$4 sm:$0xff]   ;;  %v2343_v8 = vld [vmem:[%s2951_s0 + $0x20] ss:$36 sps:$4 sm:$0xff]  }
  0x45   :  { %1215 = vmatprep.mubr.bf16.mxu1 %v2259_v9  ;;  %v2344_v9 = vld [vmem:[%s2951_s0 + $0x140] ss:$36 sps:$4 sm:$0xff]  }
  0x4b   :  { %1119 = vmatmul.mubr.bf16.gmra.mxu0 %v2261_v12  ;;  %v2347_v12 = vld [vmem:[%s2951_s0 + $0xb0] ss:$36 sps:$4 sm:$0xff]  }
  0x4c   :  { %1216 = vmatmul.mubr.bf16.gmra.mxu1 %v2262_v15  ;;  %1126 = vmatprep.mubr.bf16.mxu0 %v2267_v16  ;;  %v2350_v15 = vld [vmem:[%s2951_s0 + $0x218] ss:$36 sps:$4 sm:$0xff]  }
  0x4d   :  { %1223 = vmatprep.mubr.bf16.mxu1 %v2269_v17 }
  0x53   :  { %1127 = vmatmul.mubr.bf16.gmra.mxu0 %v2271_v22 }
  0x54   :  { %1224 = vmatmul.mubr.bf16.gmra.mxu1 %v2272_v23  ;;  %1134 = vmatprep.mubr.bf16.mxu0 %v2277_v24 }
  0x55   :  { %1231 = vmatprep.mubr.bf16.mxu1 %v2279_v25 }
  0x5b   :  { %1135 = vmatmul.mubr.bf16.gmra.mxu0 %v2281_v30 }
  0x5c   :  { %1232 = vmatmul.mubr.bf16.gmra.mxu1 %v2282_v31  ;;  %1272 = vmatprep.mubr.bf16.mxu0 %v2289_v33 }
  0x5d   :  { %1369 = vmatprep.mubr.bf16.mxu1 %v2292_v34 }
  0x63   :  { %1273 = vmatmul.mubr.bf16.vlgmr.msra.gmra.mxu0 %v2287_v35 }
  0x64   :  { %1370 = vmatmul.mubr.bf16.vlgmr.msra.gmra.mxu1 %v2290_v36  ;;  %2128 = vmatpush3.bf16.msra.mxu0 %v2293_v32 }
  0x65   :  { %2167 = vmatpush3.bf16.msra.mxu1 %v2293_v32  ;;  %1280 = vmatprep.mubr.bf16.mxu0 %v2294_v37 }
  0x66   :  { %1377 = vmatprep.mubr.bf16.mxu1 %v2296_v38  ;;  %2129 = vmatprep.subr.bf16.mxu0 %v2300_v39 }
  0x67   :  { %2160 = vmatprep.subr.bf16.mxu1 %v2300_v39 }
  0x68   :  { %2130 = vmatpush3.bf16.msra.mxu0 %v2300_v39 }
  0x69   :  { %2168 = vmatpush3.bf16.msra.mxu1 %v2300_v39  ;;  %2131 = vmatprep.subr.bf16.mxu0 %v2307_v40 }
  0x6a   :  { %2161 = vmatprep.subr.bf16.mxu1 %v2307_v40 }
  0x6b   :  { %1281 = vmatmul.mubr.bf16.gmra.mxu0 %v2298_v41 }
  0x6c   :  { %1378 = vmatmul.mubr.bf16.gmra.mxu1 %v2299_v42  ;;  %1288 = vmatprep.mubr.bf16.mxu0 %v2301_v43 }
  0x6d   :  { %1385 = vmatprep.mubr.bf16.mxu1 %v2303_v44  ;;  %2132 = vmatpush3.bf16.msra.mxu0 %v2307_v40 }
  0x6e   :  { %2169 = vmatpush3.bf16.msra.mxu1 %v2307_v40  ;;  %2133 = vmatprep.subr.bf16.mxu0 %v2314_v45 }
  0x6f   :  { %2162 = vmatprep.subr.bf16.mxu1 %v2314_v45 }
  0x71   :  { %2134 = vmatpush3.bf16.msra.mxu0 %v2314_v45 }
  0x72   :  { %2170 = vmatpush3.bf16.msra.mxu1 %v2314_v45  ;;  %2135 = vmatprep.subr.bf16.mxu0 %v2321_v46 }
  0x73   :  { %1289 = vmatmul.mubr.bf16.gmra.mxu0 %v2305_v47  ;;  %2163 = vmatprep.subr.bf16.mxu1 %v2321_v46 }
  0x74   :  { %1386 = vmatmul.mubr.bf16.gmra.mxu1 %v2306_v48  ;;  %1296 = vmatprep.mubr.bf16.mxu0 %v2308_v49 }
  0x75   :  { %1393 = vmatprep.mubr.bf16.mxu1 %v2310_v50  ;;  %2136 = vmatpush3.bf16.msra.mxu0 %v2321_v46 }
  0x76   :  { %2171 = vmatpush3.bf16.msra.mxu1 %v2321_v46  ;;  %2137 = vmatprep.subr.bf16.mxu0 %v2328_v51 }
  0x77   :  { %2164 = vmatprep.subr.bf16.mxu1 %v2328_v51 }
  0x79   :  { %2138 = vmatpush3.bf16.msra.mxu0 %v2328_v51 }
  0x7a   :  { %2172 = vmatpush3.bf16.msra.mxu1 %v2328_v51  ;;  %2139 = vmatprep.subr.bf16.mxu0 %v2335_v53 }
  0x7b   :  { %1297 = vmatmul.mubr.bf16.gmra.mxu0 %v2312_v52  ;;  %2165 = vmatprep.subr.bf16.mxu1 %v2335_v53 }
  0x7c   :  { %1394 = vmatmul.mubr.bf16.gmra.mxu1 %v2313_v54  ;;  %1304 = vmatprep.mubr.bf16.mxu0 %v2315_v55 }
  0x7d   :  { %1401 = vmatprep.mubr.bf16.mxu1 %v2317_v56  ;;  %2140 = vmatpush3.bf16.msra.mxu0 %v2335_v53 }
  0x7e   :  { %2173 = vmatpush3.bf16.msra.mxu1 %v2335_v53  ;;  %2141 = vmatprep.subr.bf16.mxu0 %v2342_v57 }
  0x7f   :  { %2166 = vmatprep.subr.bf16.mxu1 %v2342_v57 }
  0x81   :  { %2142 = vmatpush3.bf16.msra.mxu0 %v2342_v57 }
  0x82   :  { %2174 = vmatpush3.bf16.msra.mxu1 %v2342_v57 }
  0x83   :  { %1305 = vmatmul.mubr.bf16.gmra.mxu0 %v2319_v58 }
  0x84   :  { %1402 = vmatmul.mubr.bf16.gmra.mxu1 %v2320_v59  ;;  %1312 = vmatprep.mubr.bf16.mxu0 %v2322_v60 }
  0x85   :  { %1409 = vmatprep.mubr.bf16.mxu1 %v2324_v61 }
  0x8b   :  { %1313 = vmatmul.mubr.bf16.gmra.mxu0 %v2326_v62 }
  0x8c   :  { %1410 = vmatmul.mubr.bf16.gmra.mxu1 %v2327_v63  ;;  %1320 = vmatprep.mubr.bf16.mxu0 %v2329_v0 }
  0x8d   :  { %1417 = vmatprep.mubr.bf16.mxu1 %v2331_v1 }
  0x93   :  { %1321 = vmatmul.mubr.bf16.gmra.mxu0 %v2333_v2 }
  0x94   :  { %1418 = vmatmul.mubr.bf16.gmra.mxu1 %v2334_v3  ;;  %1328 = vmatprep.mubr.bf16.mxu0 %v2336_v4 }
  0x95   :  { %1425 = vmatprep.mubr.bf16.mxu1 %v2338_v5 }
  0x9b   :  { %1329 = vmatmul.mubr.bf16.gmra.mxu0 %v2340_v6 }
  0x9c   :  { %1426 = vmatmul.mubr.bf16.gmra.mxu1 %v2341_v7  ;;  %2143 = vmatprep.mubr.bf16.mxu0 %v2343_v8 }
  0x9d   :  { %2151 = vmatprep.mubr.bf16.mxu1 %v2344_v9 }
  0xa3   :  { %2144 = vmatmul.mubr.bf16.vlgmr.msra.gmra.mxu0 %v2345_v10 }
  0xa4   :  { %2152 = vmatmul.mubr.bf16.vlgmr.msra.gmra.mxu1 %v2346_v11  ;;  %2147 = vmatprep.mubr.bf16.mxu0 %v2347_v12 }
  0xa5   :  { %2155 = vmatprep.mubr.bf16.mxu1 %v2348_v13 }
  0xab   :  { %2148 = vmatmul.mubr.bf16.gmra.mxu0 %v2349_v14 }
  0xac   :  { %2156 = vmatmul.mubr.bf16.gmra.mxu1 %v2350_v15 }
  0xe3   :  { %v1871_v16 = vpop.f32.mrf.mxu0 }
  0xe4   :  { %v1935_v17 = vpop.f32.mrf.mxu1 }
  0xe5   :  { %v1872_v19 = vpop.f32.mrf.mxu0 }
  0xe6   :  { %v1873_v20 = vadd.f32 %v1872_v19, %v1871_v16  ;;  %v1936_v21 = vpop.f32.mrf.mxu1 }
  0xe7   :  { %v1937_v22 = vadd.f32 %v1936_v21, %v1935_v17  ;;  %v1874_v23 = vpop.f32.mrf.mxu0 }
  0xe8   :  { %v1081_v24 = vadd.f32 %v1873_v20, %v2806_v18  ;;  %v1938_v25 = vpop.f32.mrf.mxu1 }
  0xe9   :  { %v1875_v26 = vpop.f32.mrf.mxu0 }
  0xea   :  { %v2809_v27 = vadd.f32 %v1937_v22, %v1081_v24  ;;  %v1876_v28 = vadd.f32 %v1875_v26, %v1874_v23  ;;  %v1939_v29 = vpop.f32.mrf.mxu1 }
  0xeb   :  { %v1940_v30 = vadd.f32 %v1939_v29, %v1938_v25  ;;  %v1877_v31 = vpop.f32.mrf.mxu0 }
  0xec   :  { %v1084_v32 = vadd.f32 %v1876_v28, %v2806_v18  ;;  %v1941_v33 = vpop.f32.mrf.mxu1 }
  0xed   :  { %v1878_v34 = vpop.f32.mrf.mxu0 }
  0xee   :  { %v2812_v35 = vadd.f32 %v1940_v30, %v1084_v32  ;;  %v1879_v36 = vadd.f32 %v1878_v34, %v1877_v31  ;;  %v1942_v37 = vpop.f32.mrf.mxu1 }
  0xef   :  { %v1943_v38 = vadd.f32 %v1942_v37, %v1941_v33  ;;  %v1880_v39 = vpop.f32.mrf.mxu0 }
  0xf0   :  { %v1089_v40 = vadd.f32 %v1879_v36, %v2806_v18  ;;  %v1944_v41 = vpop.f32.mrf.mxu1 }
  0xf1   :  { %v1881_v42 = vpop.f32.mrf.mxu0 }
  0xf2   :  { %v2815_v43 = vadd.f32 %v1943_v38, %v1089_v40  ;;  %v1882_v44 = vadd.f32 %v1881_v42, %v1880_v39  ;;  %v1945_v45 = vpop.f32.mrf.mxu1 }
  0xf3   :  { %v1946_v46 = vadd.f32 %v1945_v45, %v1944_v41  ;;  %v1883_v47 = vpop.f32.mrf.mxu0 }
  0xf4   :  { %v1092_v48 = vadd.f32 %v1882_v44, %v2806_v18  ;;  %v1947_v49 = vpop.f32.mrf.mxu1 }
  0xf5   :  { %v1884_v50 = vpop.f32.mrf.mxu0 }
  0xf6   :  { %v2818_v51 = vadd.f32 %v1946_v46, %v1092_v48  ;;  %v1885_v52 = vadd.f32 %v1884_v50, %v1883_v47  ;;  %v1948_v53 = vpop.f32.mrf.mxu1 }
  0xf7   :  { %v1949_v54 = vadd.f32 %v1948_v53, %v1947_v49  ;;  %v1886_v55 = vpop.f32.mrf.mxu0 }
  0xf8   :  { %v1097_v56 = vadd.f32 %v1885_v52, %v2806_v18  ;;  %v1950_v57 = vpop.f32.mrf.mxu1 }
  0xf9   :  { %v1887_v58 = vpop.f32.mrf.mxu0 }
  0xfa   :  { %v2821_v59 = vadd.f32 %v1949_v54, %v1097_v56  ;;  %v1888_v60 = vadd.f32 %v1887_v58, %v1886_v55  ;;  %v1951_v61 = vpop.f32.mrf.mxu1 }
  0xfb   :  { %v1952_v62 = vadd.f32 %v1951_v61, %v1950_v57  ;;  %v1889_v63 = vpop.f32.mrf.mxu0 }
  0xfc   :  { %v1100_v0 = vadd.f32 %v1888_v60, %v2806_v18  ;;  %v1953_v1 = vpop.f32.mrf.mxu1 }
  0xfd   :  { %v1890_v2 = vpop.f32.mrf.mxu0 }
  0xfe   :  { %v2824_v3 = vadd.f32 %v1952_v62, %v1100_v0  ;;  %v1891_v4 = vadd.f32 %v1890_v2, %v1889_v63  ;;  %v1954_v5 = vpop.f32.mrf.mxu1 }
  0xff   :  { %v1955_v6 = vadd.f32 %v1954_v5, %v1953_v1  ;;  %v1892_v7 = vpop.f32.mrf.mxu0 }
 0x100   :  { %2954 = vst [vmem:[#allocation2_spill] sm:$0xff] %v2824_v3  ;;  %v1105_v8 = vadd.f32 %v1891_v4, %v2806_v18  ;;  %v1956_v9 = vpop.f32.mrf.mxu1 }
 0x101   :  { %v1893_v10 = vpop.f32.mrf.mxu0 }
 0x102   :  { %v2827_v11 = vadd.f32 %v1955_v6, %v1105_v8  ;;  %v1894_v12 = vadd.f32 %v1893_v10, %v1892_v7  ;;  %v1957_v13 = vpop.f32.mrf.mxu1 }
 0x103   :  { %v1958_v14 = vadd.f32 %v1957_v13, %v1956_v9  ;;  %v1895_v15 = vpop.f32.mrf.mxu0 }
 0x104   :  { %v1108_v16 = vadd.f32 %v1894_v12, %v2806_v18  ;;  %v1959_v17 = vpop.f32.mrf.mxu1 }
 0x105   :  { %v1896_v19 = vpop.f32.mrf.mxu0 }
 0x106   :  { %v2830_v20 = vadd.f32 %v1958_v14, %v1108_v16  ;;  %v1897_v21 = vadd.f32 %v1896_v19, %v1895_v15  ;;  %v1960_v22 = vpop.f32.mrf.mxu1 }
 0x107   :  { %v1961_v23 = vadd.f32 %v1960_v22, %v1959_v17  ;;  %v1898_v24 = vpop.f32.mrf.mxu0 }
 0x108   :  { %2955 = vst [vmem:[#allocation3_spill] sm:$0xff] %v2830_v20  ;;  %v1113_v25 = vadd.f32 %v1897_v21, %v2806_v18  ;;  %v1962_v26 = vpop.f32.mrf.mxu1 }
 0x109   :  { %v1899_v28 = vpop.f32.mrf.mxu0 }
 0x10a   :  { %v2833_v29 = vadd.f32 %v1961_v23, %v1113_v25  ;;  %v1900_v30 = vadd.f32 %v1899_v28, %v1898_v24  ;;  %v1963_v31 = vpop.f32.mrf.mxu1 }
 0x10b   :  { %v1964_v32 = vadd.f32 %v1963_v31, %v1962_v26  ;;  %v1901_v33 = vpop.f32.mrf.mxu0 }
 0x10c   :  { %v1116_v34 = vadd.f32 %v1900_v30, %v2806_v18  ;;  %v1965_v36 = vpop.f32.mrf.mxu1 }
 0x10d   :  { %v1902_v37 = vpop.f32.mrf.mxu0 }
 0x10e   :  { %v2836_v38 = vadd.f32 %v1964_v32, %v1116_v34  ;;  %v1903_v39 = vadd.f32 %v1902_v37, %v1901_v33  ;;  %v1966_v40 = vpop.f32.mrf.mxu1 }
 0x10f   :  { %v1967_v41 = vadd.f32 %v1966_v40, %v1965_v36  ;;  %v1904_v42 = vpop.f32.mrf.mxu0 }
 0x110   :  { %2956 = vst [vmem:[#allocation4_spill] sm:$0xff] %v2836_v38  ;;  %v1121_v44 = vadd.f32 %v1903_v39, %v2806_v18  ;;  %v1968_v45 = vpop.f32.mrf.mxu1 }
 0x111   :  { %v1905_v46 = vpop.f32.mrf.mxu0 }
 0x112   :  { %v2839_v47 = vadd.f32 %v1967_v41, %v1121_v44  ;;  %v1906_v48 = vadd.f32 %v1905_v46, %v1904_v42  ;;  %v1969_v49 = vpop.f32.mrf.mxu1 }
 0x113   :  { %v1970_v50 = vadd.f32 %v1969_v49, %v1968_v45  ;;  %v1907_v52 = vpop.f32.mrf.mxu0 }
 0x114   :  { %v1124_v53 = vadd.f32 %v1906_v48, %v2806_v18  ;;  %v1971_v54 = vpop.f32.mrf.mxu1 }
 0x115   :  { %v1908_v55 = vpop.f32.mrf.mxu0 }
 0x116   :  { %v2842_v56 = vadd.f32 %v1970_v50, %v1124_v53  ;;  %v1909_v57 = vadd.f32 %v1908_v55, %v1907_v52  ;;  %v1972_v58 = vpop.f32.mrf.mxu1 }
 0x117   :  { %v1973_v60 = vadd.f32 %v1972_v58, %v1971_v54  ;;  %v1910_v61 = vpop.f32.mrf.mxu0 }
 0x118   :  { %2957 = vst [vmem:[#allocation5_spill] sm:$0xff] %v2842_v56  ;;  %v1129_v62 = vadd.f32 %v1909_v57, %v2806_v18  ;;  %v1974_v63 = vpop.f32.mrf.mxu1 }
 0x119   :  { %v1911_v0 = vpop.f32.mrf.mxu0 }
 0x11a   :  { %v2845_v1 = vadd.f32 %v1973_v60, %v1129_v62  ;;  %v1912_v2 = vadd.f32 %v1911_v0, %v1910_v61  ;;  %v1975_v4 = vpop.f32.mrf.mxu1 }
 0x11b   :  { %v1976_v5 = vadd.f32 %v1975_v4, %v1974_v63  ;;  %v1913_v6 = vpop.f32.mrf.mxu0 }
 0x11c   :  { %2958 = vst [vmem:[#allocation6_spill] sm:$0xff] %v2845_v1  ;;  %v1132_v7 = vadd.f32 %v1912_v2, %v2806_v18  ;;  %v1977_v8 = vpop.f32.mrf.mxu1 }
 0x11d   :  { %v1914_v9 = vpop.f32.mrf.mxu0 }
 0x11e   :  { %v2848_v10 = vadd.f32 %v1976_v5, %v1132_v7  ;;  %v1915_v12 = vadd.f32 %v1914_v9, %v1913_v6  ;;  %v1978_v13 = vpop.f32.mrf.mxu1 }
 0x11f   :  { %v1979_v14 = vadd.f32 %v1978_v13, %v1977_v8  ;;  %v1916_v15 = vpop.f32.mrf.mxu0 }
 0x120   :  { %2959 = vst [vmem:[#allocation7_spill] sm:$0xff] %v2848_v10  ;;  %v1137_v16 = vadd.f32 %v1915_v12, %v2806_v18  ;;  %v1980_v17 = vpop.f32.mrf.mxu1 }
 0x121   :  { %v1917_v19 = vpop.f32.mrf.mxu0 }
 0x122   :  { %v2851_v21 = vadd.f32 %v1979_v14, %v1137_v16  ;;  %v1918_v22 = vadd.f32 %v1917_v19, %v1916_v15  ;;  %v1981_v23 = vpop.f32.mrf.mxu1 }
 0x123   :  { %v1982_v24 = vadd.f32 %v1981_v23, %v1980_v17  ;;  %v1999_v25 = vpop.f32.mrf.mxu0 }
 0x124   :  { %2960 = vst [vmem:[#allocation8_spill] sm:$0xff] %v2851_v21  ;;  %v1140_v26 = vadd.f32 %v1918_v22, %v2806_v18  ;;  %v2063_v28 = vpop.f32.mrf.mxu1 }
 0x125   :  { %v2000_v30 = vpop.f32.mrf.mxu0 }
 0x126   :  { %v2854_v31 = vadd.f32 %v1982_v24, %v1140_v26  ;;  %v2001_v32 = vadd.f32 %v2000_v30, %v1999_v25  ;;  %v2064_v33 = vpop.f32.mrf.mxu1 }
 0x127   :  { %v2002_v34 = vpop.f32.mrf.mxu0  ;;  %v2065_v37 = vadd.f32 %v2064_v33, %v2063_v28 }
 0x128   :  { %2961 = vst [vmem:[#allocation9_spill] sm:$0xff] %v2854_v31  ;;  %v1275_v36 = vadd.f32 %v2001_v32, %v2809_v27  ;;  %v2857_v39 = vpop.f32.mrf.mxu1 }
 0x129   :  { %v2003_v40 = vpop.f32.mrf.mxu0 }
 0x12a   :  { %v2859_v41 = vpop.f32.mrf.mxu1  ;;  %v2861_v42 = vadd.f32 %v2065_v37, %v1275_v36  ;;  %v2004_v10 = vadd.f32 %v2003_v40, %v2002_v34 }
 0x12b   :  { %v2005_v44 = vpop.f32.mrf.mxu0 }
 0x12c   :  { %2962 = vst [vmem:[#allocation10_spill] sm:$0xff] %v2861_v42  ;;  %v2069_v45 = vpop.f32.mrf.mxu1  ;;  %v1278_v56 = vadd.f32 %v2004_v10, %v2812_v35 }
 0x12d   :  { %v2006_v18 = vpop.f32.mrf.mxu0 }
 0x12e   :  { %v2070_v46 = vpop.f32.mrf.mxu1  ;;  %v2007_v42 = vadd.f32 %v2006_v18, %v2005_v44  ;;  %v2068_v44 = vadd.f32 %v2859_v41, %v2857_v39 }
 0x12f   :  { %v2008_v48 = vpop.f32.mrf.mxu0  ;;  %v2071_v18 = vadd.f32 %v2070_v46, %v2069_v45 }
 0x130   :  { %v2072_v49 = vpop.f32.mrf.mxu1 }
 0x131   :  { %v2009_v50 = vpop.f32.mrf.mxu0 }
 0x132   :  { %v2073_v52 = vpop.f32.mrf.mxu1  ;;  %v2010_v21 = vadd.f32 %v2009_v50, %v2008_v48 }
 0x133   :  { %v2011_v53 = vpop.f32.mrf.mxu0  ;;  %v2074_v48 = vadd.f32 %v2073_v52, %v2072_v49 }
 0x134   :  { %v2075_v54 = vpop.f32.mrf.mxu1 }
 0x135   :  { %v2012_v55 = vpop.f32.mrf.mxu0 }
 0x136   :  { %v2076_v27 = vpop.f32.mrf.mxu1 }
 0x137   :  { %v2014_v57 = vpop.f32.mrf.mxu0 }
 0x138   :  { %v2863_v58 = vpop.f32.mrf.mxu1 }
 0x139   :  { %v2015_v60 = vpop.f32.mrf.mxu0 }
 0x13a   :  { %v2865_v61 = vpop.f32.mrf.mxu1  ;;  %v2016_v35 = vadd.f32 %v2015_v60, %v2014_v57 }
 0x13b   :  { %v2017_v62 = vpop.f32.mrf.mxu0  ;;  %v2899_v41 = vadd.f32 %v2865_v61, %v2863_v58 }
 0x13c   :  { %v2867_v63 = vpop.f32.mrf.mxu1 }
 0x13d   :  { %v2018_v0 = vpop.f32.mrf.mxu0 }
 0x13e   :  { %v2082_v2 = vpop.f32.mrf.mxu1  ;;  %v2019_v38 = vadd.f32 %v2018_v0, %v2017_v62 }
 0x13f   :  { %v2020_v4 = vpop.f32.mrf.mxu0  ;;  %v2083_v45 = vadd.f32 %v2082_v2, %v2867_v63 }
 0x140   :  { %v2869_v5 = vpop.f32.mrf.mxu1 }
 0x141   :  { %2963 = vst [vmem:[#allocation11_spill] sm:$0xff] %v2869_v5  ;;  %v2021_v6 = vpop.f32.mrf.mxu0 }
 0x142   :  { %v2871_v7 = vpop.f32.mrf.mxu1  ;;  %v2022_v46 = vadd.f32 %v2021_v6, %v2020_v4 }
 0x143   :  { %2964 = vst [vmem:[#allocation12_spill] sm:$0xff] %v2871_v7  ;;  %v2023_v8 = vpop.f32.mrf.mxu0  ;;  %v2013_v7 = vadd.f32 %v2012_v55, %v2011_v53  ;;  %v2077_v55 = vadd.f32 %v2076_v27, %v2075_v54  ;;  %v2971_v27 = vld [vmem:[#allocation5_spill] sm:$0xff] }
 0x144   :  { %v2873_v9 = vpop.f32.mrf.mxu1 }
 0x145   :  { %2965 = vst [vmem:[#allocation13_spill] sm:$0xff] %v2873_v9  ;;  %v2024_v12 = vpop.f32.mrf.mxu0  ;;  %v1291_v34 = vadd.f32 %v2013_v7, %v2821_v59 }
 0x146   :  { %v2088_v13 = vpop.f32.mrf.mxu1  ;;  %v2025_v50 = vadd.f32 %v2024_v12, %v2023_v8 }
 0x147   :  { %v2026_v14 = vpop.f32.mrf.mxu0  ;;  %v2895_v39 = vadd.f32 %v2077_v55, %v1291_v34  ;;  %v2981_v55 = vld [vmem:[#allocation7_spill] sm:$0xff] }
 0x148   :  { %v2090_v15 = vpop.f32.mrf.mxu1  ;;  %v1307_v49 = vadd.f32 %v2025_v50, %v2833_v29 }
 0x149   :  { %v2027_v16 = vpop.f32.mrf.mxu0 }
 0x14a   :  { %v2091_v17 = vpop.f32.mrf.mxu1  ;;  %v2028_v10 = vadd.f32 %v2027_v16, %v2026_v14 }
 0x14b   :  { %v2029_v19 = vpop.f32.mrf.mxu0  ;;  %v2092_v14 = vadd.f32 %v2091_v17, %v2090_v15 }
 0x14c   :  { %v2093_v22 = vpop.f32.mrf.mxu1  ;;  %v2972_v8 = vld [vmem:[#allocation13_spill] sm:$0xff] }
 0x14d   :  { %v2030_v23 = vpop.f32.mrf.mxu0  ;;  %v2089_v12 = vadd.f32 %v2088_v13, %v2972_v8 }
 0x14e   :  { %v2094_v24 = vpop.f32.mrf.mxu1  ;;  %v2031_v40 = vadd.f32 %v2030_v23, %v2029_v19  ;;  %v2973_v23 = vld [vmem:[#allocation3_spill] sm:$0xff] }
 0x14f   :  { %v2032_v25 = vpop.f32.mrf.mxu0  ;;  %v2095_v54 = vadd.f32 %v2094_v24, %v2093_v22  ;;  %v1404_v24 = vadd.f32 %v2089_v12, %v1307_v49 }
 0x150   :  { %v2096_v26 = vpop.f32.mrf.mxu1  ;;  %v1315_v59 = vadd.f32 %v2031_v40, %v2839_v47 }
 0x151   :  { %v2033_v28 = vpop.f32.mrf.mxu0 }
 0x152   :  { %v2097_v30 = vpop.f32.mrf.mxu1  ;;  %v2034_v62 = vadd.f32 %v2033_v28, %v2032_v25  ;;  %v1412_v29 = vadd.f32 %v2095_v54, %v1315_v59  ;;  %v1302_v25 = vadd.f32 %v2022_v46, %v2973_v23  ;;  %v2974_v28 = vld [vmem:[#allocation11_spill] sm:$0xff]  ;;  %v2982_v46 = vld [vmem:[#allocation9_spill] sm:$0xff] }
 0x153   :  { %v2035_v32 = vpop.f32.mrf.mxu0  ;;  %v2098_v63 = vadd.f32 %v2097_v30, %v2096_v26  ;;  %v2978_v30 = vld [vmem:[#allocation8_spill] sm:$0xff] }
 0x154   :  { %v2875_v33 = vpop.f32.mrf.mxu1  ;;  %v1318_v57 = vadd.f32 %v2034_v62, %v2971_v27 }
 0x155   :  { %2966 = vst [vmem:[#allocation14_spill] sm:$0xff] %v2875_v33  ;;  %v2036_v36 = vpop.f32.mrf.mxu0  ;;  %v1283_v33 = vadd.f32 %v2007_v42, %v2815_v43  ;;  %v1299_v43 = vadd.f32 %v2019_v38, %v2827_v11  ;;  %v2969_v38 = vld [vmem:[#allocation2_spill] sm:$0xff] }
 0x156   :  { %v2877_v37 = vpop.f32.mrf.mxu1  ;;  %v2904_v52 = vadd.f32 %v2016_v35, %v2969_v38  ;;  %v2037_v2 = vadd.f32 %v2036_v36, %v2035_v32  ;;  %v1415_v15 = vadd.f32 %v2098_v63, %v1318_v57 }
 0x157   :  { %2967 = vst [vmem:[#allocation15_spill] sm:$0xff] %v2877_v37  ;;  %v2038_v31 = vpop.f32.mrf.mxu0  ;;  %v1286_v37 = vadd.f32 %v2010_v21, %v2818_v51  ;;  %v1375_v51 = vadd.f32 %v2068_v44, %v1278_v56  ;;  %v1380_v7 = vadd.f32 %v2071_v18, %v1283_v33  ;;  %v2970_v56 = vld [vmem:[#allocation4_spill] sm:$0xff]  ;;  %v1396_v16 = vadd.f32 %v2083_v45, %v1299_v43 }
 0x158   :  { %v2879_v1 = vpop.f32.mrf.mxu1  ;;  %v1310_v47 = vadd.f32 %v2028_v10, %v2970_v56  ;;  %v2975_v33 = vld [vmem:[#allocation12_spill] sm:$0xff] }
 0x159   :  { %2968 = vst [vmem:[#allocation16_spill] sm:$0xff] %v2879_v1  ;;  %v2039_v5 = vpop.f32.mrf.mxu0  ;;  %v1383_v19 = vadd.f32 %v2074_v48, %v1286_v37  ;;  %v2086_v37 = vadd.f32 %v2975_v33, %v2974_v28  ;;  %v2980_v48 = vld [vmem:[#allocation6_spill] sm:$0xff] }
 0x15a   :  { %v2881_v20 = vpop.f32.mrf.mxu1  ;;  %v2040_v4 = vadd.f32 %v2039_v5, %v2038_v31  ;;  %v2979_v5 = vld [vmem:[#allocation10_spill] sm:$0xff]  ;;  %v1323_v50 = vadd.f32 %v2037_v2, %v2980_v48 }
 0x15b   :  { %v2041_v9 = vpop.f32.mrf.mxu0 }
 0x15c   :  { %v2884_v3 = vpop.f32.mrf.mxu1  ;;  %v1326_v35 = vadd.f32 %v2040_v4, %v2981_v55  ;;  %v1399_v4 = vadd.f32 %v2086_v37, %v1302_v25  ;;  %v1391_v25 = vadd.f32 %v2899_v41, %v2904_v52 }
 0x15d   :  { %v2042_v1 = vpop.f32.mrf.mxu0 }
 0x15e   :  { %v2106_v53 = vpop.f32.mrf.mxu1  ;;  %v2043_v58 = vadd.f32 %v2042_v1, %v2041_v9  ;;  %v1407_v1 = vadd.f32 %v2092_v14, %v1310_v47  ;;  %v2976_v9 = vld [vmem:[#allocation14_spill] sm:$0xff]  ;;  %v2977_v17 = vld [vmem:[#allocation15_spill] sm:$0xff] }
 0x15f   :  { %v2044_v0 = vpop.f32.mrf.mxu0  ;;  %v2101_v26 = vadd.f32 %v2977_v17, %v2976_v9  ;;  %v2107_v43 = vadd.f32 %v2106_v53, %v2884_v3 }
 0x160   :  { %v2892_v42 = vpop.f32.mrf.mxu1  ;;  %v1331_v31 = vadd.f32 %v2043_v58, %v2978_v30 }
 0x161   :  { %v2045_v21 = vpop.f32.mrf.mxu0  ;;  %v1420_v63 = vadd.f32 %v2101_v26, %v1323_v50 }
 0x162   :  { %v2109_v11 = vpop.f32.mrf.mxu1  ;;  %v2046_v40 = vadd.f32 %v2045_v21, %v2044_v0 }
 0x163   :  { %v2145_v60 = vpop.f32.mrf.mxu0  ;;  %v2110_v12 = vadd.f32 %v2109_v11, %v2892_v42 }
 0x164   :  { %v2153_v61 = vpop.f32.mrf.mxu1  ;;  %v1477_v22 = vadd.f32 %v2145_v60, %v1380_v7  ;;  %v1334_v49 = vadd.f32 %v2046_v40, %v2982_v46  ;;  %v1428_v60 = vadd.f32 %v2107_v43, %v1331_v31 }
 0x165   :  { %v1468_v6 = vpop.f32.mrf.mxu0  ;;  %v1509_v44 = vadd.f32 %v2153_v61, %v1412_v29  ;;  %v2983_v29 = vld [vmem:[#allocation16_spill] sm:$0xff] }
 0x166   :  { %v1500_v34 = vpop.f32.mrf.mxu1  ;;  %v1469_v32 = vadd.f32 %v1468_v6, %v2979_v5  ;;  %v1533_v59 = vmax.f32 %v1477_v22, 0.0  ;;  %v2104_v6 = vadd.f32 %v2881_v20, %v2983_v29  ;;  %v1431_v28 = vadd.f32 %v2110_v12, %v1334_v49 }
 0x167   :  { %v2146_v13 = vpop.f32.mrf.mxu0  ;;  %v1501_v10 = vadd.f32 %v1500_v34, %v1404_v24  ;;  %v1541_v38 = vmax.f32 %v1509_v44, 0.0 }
 0x168   :  { %v1480_v36 = vadd.f32 %v2146_v13, %v1383_v19  ;;  %v2154_v18 = vpop.f32.mrf.mxu1  ;;  %v1531_v54 = vmax.f32 %v1469_v32, 0.0  ;;  %v1423_v34 = vadd.f32 %v2104_v6, %v1326_v35 }
 0x169   :  { %v1512_v62 = vadd.f32 %v2154_v18, %v1415_v15  ;;  %v1471_v0 = vpop.f32.mrf.mxu0  ;;  %v1539_v14 = vmax.f32 %v1501_v10, 0.0 }
 0x16a   :  { %v1534_v21 = vmax.f32 %v1480_v36, 0.0  ;;  %v1472_v7 = vadd.f32 %v1471_v0, %v1375_v51  ;;  %v1503_v45 = vpop.f32.mrf.mxu1 }
 0x16b   :  { %v1542_v56 = vmax.f32 %v1512_v62, 0.0  ;;  %v1504_v47 = vadd.f32 %v1503_v45, %v1407_v1  ;;  %v2149_v19 = vpop.f32.mrf.mxu0 }
 0x16c   :  { %v1816_v27 = vpack.c.bf16 %v1534_v21, %v1533_v59  ;;  %v1532_v57 = vmax.f32 %v1472_v7, 0.0  ;;  %v2157_v8 = vpop.f32.mrf.mxu1  ;;  %v1493_v61 = vadd.f32 %v2149_v19, %v1396_v16 }
 0x16d   :  { %v1836_v58 = vpack.c.bf16 %v1542_v56, %v1541_v38  ;;  %v1540_v3 = vmax.f32 %v1504_v47, 0.0  ;;  %v1484_v53 = vpop.f32.mrf.mxu0  ;;  %v1525_v11 = vadd.f32 %v2157_v8, %v1428_v60 }
 0x16e   :  { %1848 = vst [vmem:[%s2953_s3 + $0x8] sm:$0xff] %v1816_v27   ;;  %v1811_v51 = vpack.c.bf16 %v1532_v57, %v1531_v54  ;;  %v1516_v2 = vpop.f32.mrf.mxu1  ;;  %v1485_v16 = vadd.f32 %v1484_v53, %v2895_v39  ;;  %v1537_v40 = vmax.f32 %v1493_v61, 0.0 }
 0x16f   :  { %1852 = vst [vmem:[%s2953_s3 + $0x28] sm:$0xff] %v1836_v58   ;;  %v1831_v42 = vpack.c.bf16 %v1540_v3, %v1539_v14  ;;  %v2150_v23 = vpop.f32.mrf.mxu0  ;;  %v1517_v20 = vadd.f32 %v1516_v2, %v1420_v63  ;;  %v1545_v1 = vmax.f32 %v1525_v11, 0.0 }
 0x170   :  { %1812 = vst [vmem:[%s2953_s3] sm:$0xff] %v1811_v51   ;;  %v1496_v33 = vadd.f32 %v2150_v23, %v1399_v4  ;;  %v2158_v22 = vpop.f32.mrf.mxu1  ;;  %v1535_v17 = vmax.f32 %v1485_v16, 0.0 }
 0x171   :  { %1851 = vst [vmem:[%s2953_s3 + $0x20] sm:$0xff] %v1831_v42   ;;  %v1528_v37 = vadd.f32 %v2158_v22, %v1431_v28  ;;  %v1487_v24 = vpop.f32.mrf.mxu0  ;;  %v1543_v31 = vmax.f32 %v1517_v20, 0.0 }
 0x172   :  { %v1538_v44 = vmax.f32 %v1496_v33, 0.0  ;;  %v1488_v13 = vadd.f32 %v1487_v24, %v1391_v25  ;;  %v1519_v15 = vpop.f32.mrf.mxu1 }
 0x173   :  { %v1546_v9 = vmax.f32 %v1528_v37, 0.0  ;;  %v1520_v39 = vadd.f32 %v1519_v15, %v1423_v34 }
 0x174   :  { %v1826_v26 = vpack.c.bf16 %v1538_v44, %v1537_v40  ;;  %v1536_v30 = vmax.f32 %v1488_v13, 0.0 }
 0x175   :  { %v1846_v41 = vpack.c.bf16 %v1546_v9, %v1545_v1  ;;  %v1544_v52 = vmax.f32 %v1520_v39, 0.0 }
 0x176   :  { %1850 = vst [vmem:[%s2953_s3 + $0x18] sm:$0xff] %v1826_v26   ;;  %v1821_v5 = vpack.c.bf16 %v1536_v30, %v1535_v17 }
 0x177   :  { %1854 = vst [vmem:[%s2953_s3 + $0x38] sm:$0xff] %v1846_v41   ;;  %v1841_v32 = vpack.c.bf16 %v1544_v52, %v1543_v31 }
 0x178   :  { %1849 = vst [vmem:[%s2953_s3 + $0x10] sm:$0xff] %v1821_v5  }
 0x179   :  { %1853 = vst [vmem:[%s2953_s3 + $0x30] sm:$0xff] %v1841_v32  }

// kernel: _lambda_.5
= control target key start
LH: loop header
LB: loop body
LE: loop exit
PB: predicated region body
PF: predicated region fallthrough
CT: control target
= control target key end

     0   :  { %14 = vsyncpa [#allocation5], 0  ;;  %s14102_s0 = inlined_call_operand.vmem [shape: bf16[8,64], index: 0, kind: input, shape index: {}]   ;;  %s14103_s1 = inlined_call_operand.hbm [shape: bf16[64,64], index: 1, kind: input, shape index: {}]   ;;  %s14104_s2 = inlined_call_operand.vmem [shape: bf16[64,4096], index: 2, kind: input, shape index: {}]   ;;  %s14105_s3 = inlined_call_operand.hbm [shape: f32[1,4096], index: 3, kind: input, shape index: {}]   ;;  %s14106_s4 = inlined_call_operand.vmem [shape: bf16[4096,64], index: 4, kind: input, shape index: {}]   ;;  %s14107_s5 = inlined_call_operand.hbm [shape: bf16[64,4096], index: 5, kind: input, shape index: {}]   ;;  %s14108_s6 = inlined_call_operand.hbm [shape: f32[1,4096], index: 6, kind: input, shape index: {}]   ;;  %s14109_s7 = inlined_call_operand.vmem [shape: bf16[4096,128], index: 7, kind: input, shape index: {}]   ;;  %s14110_s8 = inlined_call_operand.vmem [shape: f32[1,128], index: 8, kind: input, shape index: {}]   ;;  %s14111_s9 = inlined_call_operand.vmem [shape: f32[8,128], index: 9, kind: output, shape index: {}]  }
   0x1   :  { %15 = vsyncpa [#allocation7], 0 }
   0x2   :  { %16 = vsyncpa [#allocation10], 0  ;;  %s11684_s30 = smov [#allocation6]   ;;  %s11685_s11 = smov [#allocation4]  }
   0x3   :  { %s39_s10 = sshll.u32 %s11684_s30, 4  ;;  %s24_s12 = sshll.u32 %s11685_s11, 4  ;;  %s40_s10 = int_to_ptr.vmem [resolvable:$true] %s39_s10  ;;  %s25_s12 = int_to_ptr.vmem [resolvable:$true] %s24_s12 }
   0x4   :  { %s11606_s13 = scalar_lea.vmem %s40_s10, 512  ;;  %p11611_p1 = scmp.lt.s32.totalorder %s40_s10, %s40_s10 }
   0x5   :  { %p11607_p0 = scmp.ne.s32.totalorder %s40_s10, %s11606_s13  ;;  %p11612_p2 = scmp.lt.s32.totalorder %s11606_s13, %s11606_s13 }
   0x7   :  { %p11613_p3 = por %p11612_p2, %p11611_p1 }
   0x9   :  { %p11614_p4 = pnand %p11613_p3, %p11607_p0 }
   0xb   :  { %11617 = shalt.err (!%p11614_p4)
}
   0xc   :  { %42 = dma.hbm_to_vmem [thread:$0]  %s14105_s3, 512, %s40_s10, [#allocation7]  }
   0xd   :  { %s11626_s16 = scalar_lea.vmem %s25_s12, 512  ;;  %p11631_p6 = scmp.lt.s32.totalorder %s25_s12, %s25_s12 }
   0xe   :  { %p11627_p5 = scmp.ne.s32.totalorder %s25_s12, %s11626_s16  ;;  %p11632_p7 = scmp.lt.s32.totalorder %s11626_s16, %s11626_s16 }
  0x10   :  { %p11633_p8 = por %p11632_p7, %p11631_p6 }
  0x12   :  { %p11634_p9 = pnand %p11633_p8, %p11627_p5 }
  0x14   :  { %11637 = shalt.err (!%p11634_p9)
}
  0x15   :  { %s11686_s17 = smov 64   ;;  %s11687_s18 = smov 4  }
  0x16   :  { %30 = dma.hbm_to_vmem [thread:$0]  %s14103_s1, 512, %s25_s12, [#allocation5], %s11686_s17, %s11686_s17, %s11687_s18  }
  0x17   :  { %s11688_s21 = smov [#allocation8]  }
  0x18   :  { %s50_s22 = sshll.u32 %s11688_s21, 4  ;;  %s51_s22 = int_to_ptr.vmem [resolvable:$true] %s50_s22 }
  0x19   :  { %s11646_s23 = scalar_lea.vmem %s51_s22, 16384  ;;  %p11651_p11 = scmp.lt.s32.totalorder %s51_s22, %s51_s22 }
  0x1a   :  { %p11647_p10 = scmp.ne.s32.totalorder %s51_s22, %s11646_s23  ;;  %p11652_p12 = scmp.lt.s32.totalorder %s11646_s23, %s11646_s23 }
  0x1c   :  { %p11653_p13 = por %p11652_p12, %p11651_p11 }
  0x1e   :  { %p11654_p0 = pnand %p11653_p13, %p11647_p10 }
  0x20   :  { %11657 = shalt.err (!%p11654_p0)
}
  0x21   :  { %s11689_s3 = smov 2048   ;;  %s11690_s24 = smov 128  }
  0x22   :  { %56 = dma.hbm_to_vmem [thread:$0]  %s14107_s5, 16384, %s51_s22, [#allocation7], %s11689_s3, %s11689_s3, %s11690_s24  }
  0x23   :  { %s11691_s27 = smov [#allocation9]  }
  0x24   :  { %s63_s28 = sshll.u32 %s11691_s27, 4  ;;  %s64_s28 = int_to_ptr.vmem [resolvable:$true] %s63_s28 }
  0x25   :  { %s11666_s1 = scalar_lea.vmem %s64_s28, 512  ;;  %p11671_p2 = scmp.lt.s32.totalorder %s64_s28, %s64_s28 }
  0x26   :  { %p11667_p1 = scmp.ne.s32.totalorder %s64_s28, %s11666_s1  ;;  %p11672_p3 = scmp.lt.s32.totalorder %s11666_s1, %s11666_s1 }
  0x28   :  { %p11673_p4 = por %p11672_p3, %p11671_p2 }
  0x2a   :  { %p11674_p5 = pnand %p11673_p4, %p11667_p1 }
  0x2c   :  { %11677 = shalt.err (!%p11674_p5)
}
  0x2d   :  { %66 = dma.hbm_to_vmem [thread:$0]  %s14108_s6, 512, %s64_s28, [#allocation10]  }
  0x2e   :  { %11678 = dma.done.wait [#allocation5], 512  }
  0x2f   :  { %11679 = vsyncadd [#allocation5], 4294966784 }
  0x30   :  { %11680 = dma.done.wait [#allocation7], 16896  }
  0x31   :  { %11681 = vsyncadd [#allocation7], 4294950400 }
  0x32   :  { %11682 = dma.done.wait [#allocation10], 512  }
  0x33   :  { %11683 = vsyncadd [#allocation10], 4294966784  ;;  %v11692_v0 = vmov 0.0   ;;  %vm11693_vm0 = vmmov 0   ;;  %v11082_v1 = vld [vmem:[#allocation4 + $0x18] sm:$0xff]   ;;  %v11083_v2 = vld [vmem:[#allocation4 + $0x10] sm:$0xff]  }
  0x34   :  { %11059 = vmatprep.subr.bf16.mxu0 %v11692_v0  ;;  %11067 = vmatprep.mubr.msk.bf16.mxu0 %vm11693_vm0, %v11692_v0  ;;  %v258_v3 = vld [vmem:[%s14104_s2 + $0x300] sm:$0xff]  ;;  %v11084_v8 = vld [vmem:[#allocation4 + $0x8] sm:$0xff]   ;;  %vm117_vm1 = vcmask 523264   ;;  %v260_v38 = vld [vmem:[%s14104_s2 + $0x310] sm:$0xff]  ;;  %v11694_v46 = vmov 0  }
  0x35   :  { %11060 = vmatpush3.bf16.msra.mxu0 %v11082_v1  ;;  %v274_v4 = vld [vmem:[%s14104_s2 + $0x380] sm:$0xff]  ;;  %v259_v14 = vld [vmem:[%s14104_s2 + $0x308] sm:$0xff]  ;;  %v276_v39 = vld [vmem:[%s14104_s2 + $0x390] sm:$0xff]  ;;  %1133 = vmatprep.mubr.bf16.mxu1 %v11694_v46 }
  0x36   :  { %11061 = vmatprep.subr.bf16.mxu0 %v11692_v0  ;;  %v9454_v5 = vcombine.high %v258_v3, %v274_v4  ;;  %v9453_v6 = vcombine.low %v258_v3, %v274_v4  ;;  %v226_v7 = vld [vmem:[%s14104_s2 + $0x200] sm:$0xff]  ;;  %v275_v15 = vld [vmem:[%s14104_s2 + $0x388] sm:$0xff]  ;;  %v261_v40 = vld [vmem:[%s14104_s2 + $0x318] sm:$0xff]  ;;  %v9458_v41 = vcombine.high %v260_v38, %v276_v39  ;;  %v9457_v43 = vcombine.low %v260_v38, %v276_v39 }
  0x37   :  { %v242_v9 = vld [vmem:[%s14104_s2 + $0x280] sm:$0xff]  ;;  %v227_v20 = vld [vmem:[%s14104_s2 + $0x208] sm:$0xff]  ;;  %v9456_v22 = vcombine.high %v259_v14, %v275_v15  ;;  %v9455_v26 = vcombine.low %v259_v14, %v275_v15  ;;  %v277_v42 = vld [vmem:[%s14104_s2 + $0x398] sm:$0xff] }
  0x38   :  { %1109 = vmatprep.subr.bf16.mxu1 %v9454_v5  ;;  %v9422_v10 = vcombine.high %v226_v7, %v242_v9  ;;  %v194_v11 = vld [vmem:[%s14104_s2 + $0x100] sm:$0xff]  ;;  %v9421_v16 = vcombine.low %v226_v7, %v242_v9  ;;  %v243_v21 = vld [vmem:[%s14104_s2 + $0x288] sm:$0xff]  ;;  %v9459_v44 = vcombine.low %v261_v40, %v277_v42  ;;  %v9460_v45 = vcombine.high %v261_v40, %v277_v42  ;;  %v228_v47 = vld [vmem:[%s14104_s2 + $0x210] sm:$0xff] }
  0x39   :  { %11062 = vmatpush3.bf16.msra.mxu0 %v11083_v2  ;;  %v210_v12 = vld [vmem:[%s14104_s2 + $0x180] sm:$0xff]  ;;  %1110 = vmatpush1.bf16.msra.mxu1 %v9453_v6  ;;  %v195_v27 = vld [vmem:[%s14104_s2 + $0x108] sm:$0xff]  ;;  %v9424_v29 = vcombine.high %v227_v20, %v243_v21  ;;  %v9423_v31 = vcombine.low %v227_v20, %v243_v21  ;;  %v244_v48 = vld [vmem:[%s14104_s2 + $0x290] sm:$0xff] }
  0x3a   :  { %11063 = vmatprep.subr.bf16.mxu0 %v11692_v0  ;;  %v11085_v13 = vld [vmem:[#allocation4] sm:$0xff]   ;;  %1111 = vmatprep.subr.bf16.mxu1 %v9422_v10  ;;  %v9390_v17 = vcombine.high %v194_v11, %v210_v12  ;;  %v9389_v24 = vcombine.low %v194_v11, %v210_v12  ;;  %v211_v28 = vld [vmem:[%s14104_s2 + $0x188] sm:$0xff]  ;;  %v229_v49 = vld [vmem:[%s14104_s2 + $0x218] sm:$0xff]  ;;  %v9426_v55 = vcombine.high %v228_v47, %v244_v48 }
  0x3b   :  { %v162_v18 = vld [vmem:[%s14104_s2] sm:$0xff]  ;;  %v163_v32 = vld [vmem:[%s14104_s2 + $0x8] sm:$0xff]  ;;  %v9392_v34 = vcombine.high %v195_v27, %v211_v28  ;;  %v9391_v35 = vcombine.low %v195_v27, %v211_v28  ;;  %v245_v50 = vld [vmem:[%s14104_s2 + $0x298] sm:$0xff]  ;;  %v9425_v61 = vcombine.low %v228_v47, %v244_v48 }
  0x3c   :  { %v178_v19 = vld [vmem:[%s14104_s2 + $0x80] sm:$0xff]  ;;  %v179_v33 = vld [vmem:[%s14104_s2 + $0x88] sm:$0xff]  ;;  %v196_v52 = vld [vmem:[%s14104_s2 + $0x110] sm:$0xff]  ;;  %v9428_v56 = vcombine.high %v229_v49, %v245_v50  ;;  %v9427_v62 = vcombine.low %v229_v49, %v245_v50 }
  0x3d   :  { %11064 = vmatpush3.bf16.msra.mxu0 %v11084_v8  ;;  %v84_v23 = vld [vmem:[%s14102_s0] sm:$0xf]  ;;  %1112 = vmatpush1.bf16.msra.mxu1 %v9421_v16  ;;  %v9358_v25 = vcombine.high %v162_v18, %v178_v19  ;;  %v9357_v30 = vcombine.low %v162_v18, %v178_v19  ;;  %v9360_v36 = vcombine.high %v163_v32, %v179_v33  ;;  %v212_v53 = vld [vmem:[%s14104_s2 + $0x190] sm:$0xff]  ;;  %v197_v57 = vld [vmem:[%s14104_s2 + $0x118] sm:$0xff] }
  0x3e   :  { %11065 = vmatprep.subr.bf16.mxu0 %v11692_v0  ;;  %1113 = vmatprep.subr.bf16.mxu1 %v9390_v17  ;;  %v9359_v37 = vcombine.low %v163_v32, %v179_v33  ;;  %v213_v58 = vld [vmem:[%s14104_s2 + $0x198] sm:$0xff]  ;;  %v164_v63 = vld [vmem:[%s14104_s2 + $0x10] sm:$0xff]  ;;  %v9394_v1 = vcombine.high %v196_v52, %v212_v53  ;;  %v9393_v6 = vcombine.low %v196_v52, %v212_v53  ;;  %v262_v8 = vld [vmem:[%s14104_s2 + $0x320] sm:$0xff] }
  0x3f   :  { %v180_v0 = vld [vmem:[%s14104_s2 + $0x90] sm:$0xff]  ;;  %v9396_v2 = vcombine.high %v197_v57, %v213_v58  ;;  %v165_v3 = vld [vmem:[%s14104_s2 + $0x18] sm:$0xff]  ;;  %v9395_v7 = vcombine.low %v197_v57, %v213_v58  ;;  %v278_v9 = vld [vmem:[%s14104_s2 + $0x3a0] sm:$0xff] }
  0x40   :  { %v181_v4 = vld [vmem:[%s14104_s2 + $0x98] sm:$0xff]  ;;  %v263_v10 = vld [vmem:[%s14104_s2 + $0x328] sm:$0xff]  ;;  %v9362_v11 = vcombine.high %v164_v63, %v180_v0  ;;  %v9361_v14 = vcombine.low %v164_v63, %v180_v0  ;;  %v230_v16 = vld [vmem:[%s14104_s2 + $0x220] sm:$0xff]  ;;  %v9462_v20 = vcombine.high %v262_v8, %v278_v9 }
  0x41   :  { %11066 = vmatpush3.bf16.msra.mxu0 %v11085_v13  ;;  %1114 = vmatpush1.bf16.msra.mxu1 %v9389_v24  ;;  %v9364_v12 = vcombine.high %v165_v3, %v181_v4  ;;  %v279_v13 = vld [vmem:[%s14104_s2 + $0x3a8] sm:$0xff]  ;;  %v9363_v15 = vcombine.low %v165_v3, %v181_v4  ;;  %v246_v17 = vld [vmem:[%s14104_s2 + $0x2a0] sm:$0xff]  ;;  %v264_v40 = vld [vmem:[%s14104_s2 + $0x330] sm:$0xff] }
  0x42   :  { %1150 = vmatprep.subr.bf16.mxu0 %v9456_v22  ;;  %1115 = vmatprep.subr.bf16.mxu1 %v9358_v25  ;;  %v231_v18 = vld [vmem:[%s14104_s2 + $0x228] sm:$0xff]  ;;  %v9464_v21 = vcombine.high %v263_v10, %v279_v13  ;;  %v9461_v22 = vcombine.low %v262_v8, %v278_v9  ;;  %v198_v24 = vld [vmem:[%s14104_s2 + $0x120] sm:$0xff]  ;;  %v9430_v28 = vcombine.high %v230_v16, %v246_v17  ;;  %v265_v42 = vld [vmem:[%s14104_s2 + $0x338] sm:$0xff] }
  0x43   :  { %v247_v19 = vld [vmem:[%s14104_s2 + $0x2a8] sm:$0xff]  ;;  %v214_v25 = vld [vmem:[%s14104_s2 + $0x1a0] sm:$0xff]  ;;  %v232_v49 = vld [vmem:[%s14104_s2 + $0x230] sm:$0xff] }
  0x44   :  { %11068 = vmatmul.mubr.msk.bf16.vlgmr.msra.gmra.mxu0 %vm117_vm1, %v84_v23  ;;  %v9463_v23 = vcombine.low %v263_v10, %v279_v13  ;;  %v215_v27 = vld [vmem:[%s14104_s2 + $0x1a8] sm:$0xff]  ;;  %v166_v32 = vld [vmem:[%s14104_s2 + $0x20] sm:$0xff]  ;;  %v9397_v38 = vcombine.low %v198_v24, %v214_v25  ;;  %v248_v50 = vld [vmem:[%s14104_s2 + $0x2b0] sm:$0xff] }
  0x45   :  { %1151 = vmatpush1.bf16.msra.mxu0 %v9455_v26  ;;  %1116 = vmatpush1.bf16.msra.mxu1 %v9357_v30  ;;  %v199_v26 = vld [vmem:[%s14104_s2 + $0x128] sm:$0xff]  ;;  %v9429_v30 = vcombine.low %v230_v16, %v246_v17  ;;  %v182_v33 = vld [vmem:[%s14104_s2 + $0xa0] sm:$0xff]  ;;  %v249_v52 = vld [vmem:[%s14104_s2 + $0x2b8] sm:$0xff]  ;;  %v9433_v0 = vcombine.low %v232_v49, %v248_v50 }
  0x46   :  { %1152 = vmatprep.subr.bf16.mxu0 %v9424_v29  ;;  %1174 = vmatprep.mubr.bf16.mxu0 %v11694_v46  ;;  %v9432_v29 = vcombine.high %v231_v18, %v247_v19  ;;  %v9399_v39 = vcombine.low %v199_v26, %v215_v27  ;;  %v9365_v47 = vcombine.low %v166_v32, %v182_v33  ;;  %v200_v58 = vld [vmem:[%s14104_s2 + $0x130] sm:$0xff]  ;;  %v169_v4 = vld [vmem:[%s14104_s2 + $0x38] sm:$0xff]  ;;  %v266_v10 = vld [vmem:[%s14104_s2 + $0x340] sm:$0xff] }
  0x47   :  { %1191 = vmatprep.subr.bf16.mxu1 %v9458_v41  ;;  %v280_v41 = vld [vmem:[%s14104_s2 + $0x3b0] sm:$0xff]  ;;  %v283_v13 = vld [vmem:[%s14104_s2 + $0x3c8] sm:$0xff] }
  0x48   :  { %v9466_v53 = vcombine.high %v264_v40, %v280_v41  ;;  %v184_v3 = vld [vmem:[%s14104_s2 + $0xb0] sm:$0xff] }
  0x49   :  { %1153 = vmatpush1.bf16.msra.mxu0 %v9423_v31  ;;  %v9431_v31 = vcombine.low %v231_v18, %v247_v19  ;;  %v234_v18 = vld [vmem:[%s14104_s2 + $0x240] sm:$0xff] }
  0x4a   :  { %1154 = vmatprep.subr.bf16.mxu0 %v9392_v34  ;;  %v167_v34 = vld [vmem:[%s14104_s2 + $0x28] sm:$0xff]  ;;  %v250_v19 = vld [vmem:[%s14104_s2 + $0x2c0] sm:$0xff] }
  0x4d   :  { %1155 = vmatpush1.bf16.msra.mxu0 %v9391_v35  ;;  %v183_v35 = vld [vmem:[%s14104_s2 + $0xa8] sm:$0xff] }
  0x4e   :  { %1156 = vmatprep.subr.bf16.mxu0 %v9360_v36  ;;  %v9398_v36 = vcombine.high %v198_v24, %v214_v25  ;;  %v9367_v48 = vcombine.low %v167_v34, %v183_v35 }
  0x51   :  { %1157 = vmatpush1.bf16.msra.mxu0 %v9359_v37  ;;  %v9400_v37 = vcombine.high %v199_v26, %v215_v27  ;;  %v202_v26 = vld [vmem:[%s14104_s2 + $0x140] sm:$0xff] }
  0x52   :  { %1232 = vmatprep.subr.bf16.mxu0 %v9460_v45  ;;  %v9368_v45 = vcombine.high %v167_v34, %v183_v35  ;;  %v218_v27 = vld [vmem:[%s14104_s2 + $0x1c0] sm:$0xff] }
  0x53   :  { %v170_v34 = vld [vmem:[%s14104_s2 + $0x40] sm:$0xff] }
  0x54   :  { %v186_v35 = vld [vmem:[%s14104_s2 + $0xc0] sm:$0xff] }
 0x104   :  { %v155_v51 = vpop.f32.mrf.mxu0 }
 0x105   :  { %v11841_v54 = vpack.c.bf16 %v155_v51, %v155_v51  ;;  %v233_v51 = vld [vmem:[%s14104_s2 + $0x238] sm:$0xff] }
 0x106   :  { %v11069_v59 = vpop.f32.mrf.mxu0  ;;  %v9436_v63 = vcombine.high %v233_v51, %v249_v52 }
 0x107   :  { %9485 = vmatmul.mubr.msk.bf16.vlgmr.msra.gmra.mxu1 %vm117_vm1, %v11841_v54  ;;  %9486 = vmatmul.mubr.msk.bf16.vlgmr.msra.gmra.mxu0 %vm117_vm1, %v11841_v54  ;;  %v216_v59 = vld [vmem:[%s14104_s2 + $0x1b0] sm:$0xff] }
 0x108   :  { %1192 = vmatpush1.bf16.msra.mxu1 %v9457_v43  ;;  %1233 = vmatpush1.bf16.msra.mxu0 %v9459_v44  ;;  %v158_v60 = vpop.f32.mrf.mxu0  ;;  %v281_v43 = vld [vmem:[%s14104_s2 + $0x3b8] sm:$0xff]  ;;  %v9366_v44 = vcombine.high %v166_v32, %v182_v33  ;;  %v9401_v8 = vcombine.low %v200_v58, %v216_v59  ;;  %v9437_v32 = vcombine.low %v234_v18, %v250_v19 }
 0x109   :  { %1193 = vmatprep.subr.bf16.mxu1 %v9426_v55  ;;  %1234 = vmatprep.subr.bf16.mxu0 %v9428_v56  ;;  %v9468_v55 = vcombine.high %v265_v42, %v281_v43  ;;  %v9465_v56 = vcombine.low %v264_v40, %v280_v41  ;;  %v9467_v57 = vcombine.low %v265_v42, %v281_v43  ;;  %v201_v60 = vld [vmem:[%s14104_s2 + $0x138] sm:$0xff]  ;;  %v268_v42 = vld [vmem:[%s14104_s2 + $0x350] sm:$0xff] }
 0x10a   :  { %v11070_v5 = vpop.f32.mrf.mxu0  ;;  %1215 = vmatprep.mubr.bf16.mxu1 %v11694_v46  ;;  %1256 = vmatprep.mubr.bf16.mxu0 %v11694_v46  ;;  %v9405_v40 = vcombine.low %v202_v26, %v218_v27  ;;  %v284_v43 = vld [vmem:[%s14104_s2 + $0x3d0] sm:$0xff] }
 0x10b   :  { %v185_v5 = vld [vmem:[%s14104_s2 + $0xb8] sm:$0xff] }
 0x10c   :  { %1194 = vmatpush1.bf16.msra.mxu1 %v9425_v61  ;;  %1235 = vmatpush1.bf16.msra.mxu0 %v9427_v62  ;;  %v217_v61 = vld [vmem:[%s14104_s2 + $0x1b8] sm:$0xff]  ;;  %v9434_v62 = vcombine.high %v232_v49, %v248_v50  ;;  %v9371_v17 = vcombine.low %v169_v4, %v185_v5  ;;  %v9373_v49 = vcombine.low %v170_v34, %v186_v35 }
 0x10d   :  { %1195 = vmatprep.subr.bf16.mxu1 %v9394_v1  ;;  %1236 = vmatprep.subr.bf16.mxu0 %v9396_v2  ;;  %v9435_v1 = vcombine.low %v233_v51, %v249_v52  ;;  %v168_v2 = vld [vmem:[%s14104_s2 + $0x30] sm:$0xff]  ;;  %v9403_v9 = vcombine.low %v201_v60, %v217_v61 }
 0x10e   :  { %v9369_v16 = vcombine.low %v168_v2, %v184_v3  ;;  %v236_v51 = vld [vmem:[%s14104_s2 + $0x250] sm:$0xff] }
 0x10f   :  { %v252_v52 = vld [vmem:[%s14104_s2 + $0x2d0] sm:$0xff] }
 0x110   :  { %1196 = vmatpush1.bf16.msra.mxu1 %v9393_v6  ;;  %1237 = vmatpush1.bf16.msra.mxu0 %v9395_v7  ;;  %v9402_v6 = vcombine.high %v200_v58, %v216_v59  ;;  %v9404_v7 = vcombine.high %v201_v60, %v217_v61  ;;  %v9473_v58 = vcombine.low %v268_v42, %v284_v43  ;;  %v204_v60 = vld [vmem:[%s14104_s2 + $0x150] sm:$0xff] }
 0x111   :  { %1197 = vmatprep.subr.bf16.mxu1 %v9362_v11  ;;  %1238 = vmatprep.subr.bf16.mxu0 %v9364_v12  ;;  %v282_v11 = vld [vmem:[%s14104_s2 + $0x3c0] sm:$0xff]  ;;  %v267_v12 = vld [vmem:[%s14104_s2 + $0x348] sm:$0xff]  ;;  %v220_v61 = vld [vmem:[%s14104_s2 + $0x1d0] sm:$0xff] }
 0x112   :  { %v9469_v24 = vcombine.low %v266_v10, %v282_v11  ;;  %v9471_v25 = vcombine.low %v267_v12, %v283_v13 }
 0x114   :  { %1198 = vmatpush1.bf16.msra.mxu1 %v9361_v14  ;;  %1239 = vmatpush1.bf16.msra.mxu0 %v9363_v15  ;;  %v9370_v14 = vcombine.high %v168_v2, %v184_v3  ;;  %v9372_v15 = vcombine.high %v169_v4, %v185_v5  ;;  %v9441_v2 = vcombine.low %v236_v51, %v252_v52  ;;  %v172_v4 = vld [vmem:[%s14104_s2 + $0x50] sm:$0xff] }
 0x115   :  { %1273 = vmatprep.subr.bf16.mxu1 %v9462_v20  ;;  %1314 = vmatprep.subr.bf16.mxu0 %v9464_v21  ;;  %v235_v20 = vld [vmem:[%s14104_s2 + $0x248] sm:$0xff]  ;;  %v188_v5 = vld [vmem:[%s14104_s2 + $0xd0] sm:$0xff] }
 0x116   :  { %v251_v21 = vld [vmem:[%s14104_s2 + $0x2c8] sm:$0xff] }
 0x117   :  { %9487 = vmatmul.mubr.msk.bf16.vlgmr.msra.gmra.mxu1 %vm117_vm1, %v11841_v54  ;;  %9488 = vmatmul.mubr.msk.bf16.vlgmr.msra.gmra.mxu0 %vm117_vm1, %v11841_v54  ;;  %v9439_v33 = vcombine.low %v235_v20, %v251_v21 }
 0x118   :  { %1274 = vmatpush1.bf16.msra.mxu1 %v9461_v22  ;;  %1315 = vmatpush1.bf16.msra.mxu0 %v9463_v23  ;;  %v9470_v22 = vcombine.high %v266_v10, %v282_v11  ;;  %v9472_v23 = vcombine.high %v267_v12, %v283_v13  ;;  %v9409_v10 = vcombine.low %v204_v60, %v220_v61  ;;  %v270_v12 = vld [vmem:[%s14104_s2 + $0x360] sm:$0xff] }
 0x119   :  { %1275 = vmatprep.subr.bf16.mxu1 %v9430_v28  ;;  %1316 = vmatprep.subr.bf16.mxu0 %v9432_v29  ;;  %v203_v28 = vld [vmem:[%s14104_s2 + $0x148] sm:$0xff]  ;;  %v286_v13 = vld [vmem:[%s14104_s2 + $0x3e0] sm:$0xff] }
 0x11a   :  { %1297 = vmatprep.mubr.bf16.mxu1 %v11694_v46  ;;  %1338 = vmatprep.mubr.bf16.mxu0 %v11694_v46  ;;  %v219_v29 = vld [vmem:[%s14104_s2 + $0x1c8] sm:$0xff] }
 0x11b   :  { %v9407_v41 = vcombine.low %v203_v28, %v219_v29 }
 0x11c   :  { %1276 = vmatpush1.bf16.msra.mxu1 %v9429_v30  ;;  %1317 = vmatpush1.bf16.msra.mxu0 %v9431_v31  ;;  %v9438_v30 = vcombine.high %v234_v18, %v250_v19  ;;  %v9440_v31 = vcombine.high %v235_v20, %v251_v21  ;;  %v9377_v18 = vcombine.low %v172_v4, %v188_v5  ;;  %v238_v20 = vld [vmem:[%s14104_s2 + $0x260] sm:$0xff] }
 0x11d   :  { %1277 = vmatprep.subr.bf16.mxu1 %v9398_v36  ;;  %1318 = vmatprep.subr.bf16.mxu0 %v9400_v37  ;;  %v171_v36 = vld [vmem:[%s14104_s2 + $0x48] sm:$0xff]  ;;  %v254_v21 = vld [vmem:[%s14104_s2 + $0x2e0] sm:$0xff] }
 0x11e   :  { %v187_v37 = vld [vmem:[%s14104_s2 + $0xc8] sm:$0xff] }
 0x11f   :  { %v9375_v50 = vcombine.low %v171_v36, %v187_v37 }
 0x120   :  { %1278 = vmatpush1.bf16.msra.mxu1 %v9397_v38  ;;  %1319 = vmatpush1.bf16.msra.mxu0 %v9399_v39  ;;  %v9406_v38 = vcombine.high %v202_v26, %v218_v27  ;;  %v9408_v39 = vcombine.high %v203_v28, %v219_v29  ;;  %v9477_v26 = vcombine.low %v270_v12, %v286_v13  ;;  %v206_v28 = vld [vmem:[%s14104_s2 + $0x160] sm:$0xff] }
 0x121   :  { %1279 = vmatprep.subr.bf16.mxu1 %v9366_v44  ;;  %1320 = vmatprep.subr.bf16.mxu0 %v9368_v45  ;;  %v269_v44 = vld [vmem:[%s14104_s2 + $0x358] sm:$0xff]  ;;  %v222_v29 = vld [vmem:[%s14104_s2 + $0x1e0] sm:$0xff] }
 0x122   :  { %v285_v45 = vld [vmem:[%s14104_s2 + $0x3d8] sm:$0xff] }
 0x123   :  { %v9475_v59 = vcombine.low %v269_v44, %v285_v45 }
 0x124   :  { %1280 = vmatpush1.bf16.msra.mxu1 %v9365_v47  ;;  %1321 = vmatpush1.bf16.msra.mxu0 %v9367_v48  ;;  %v9374_v47 = vcombine.high %v170_v34, %v186_v35  ;;  %v9376_v48 = vcombine.high %v171_v36, %v187_v37  ;;  %v9445_v34 = vcombine.low %v238_v20, %v254_v21  ;;  %v174_v36 = vld [vmem:[%s14104_s2 + $0x60] sm:$0xff] }
 0x125   :  { %1355 = vmatprep.subr.bf16.mxu1 %v9466_v53  ;;  %1396 = vmatprep.subr.bf16.mxu0 %v9468_v55  ;;  %v237_v53 = vld [vmem:[%s14104_s2 + $0x258] sm:$0xff]  ;;  %v190_v37 = vld [vmem:[%s14104_s2 + $0xe0] sm:$0xff] }
 0x126   :  { %v253_v55 = vld [vmem:[%s14104_s2 + $0x2d8] sm:$0xff] }
 0x127   :  { %9489 = vmatmul.mubr.msk.bf16.vlgmr.msra.gmra.mxu1 %vm117_vm1, %v11841_v54  ;;  %9490 = vmatmul.mubr.msk.bf16.vlgmr.msra.gmra.mxu0 %vm117_vm1, %v11841_v54  ;;  %v9443_v3 = vcombine.low %v237_v53, %v253_v55 }
 0x128   :  { %1356 = vmatpush1.bf16.msra.mxu1 %v9465_v56  ;;  %1397 = vmatpush1.bf16.msra.mxu0 %v9467_v57  ;;  %v9474_v56 = vcombine.high %v268_v42, %v284_v43  ;;  %v9476_v57 = vcombine.high %v269_v44, %v285_v45  ;;  %v9413_v42 = vcombine.low %v206_v28, %v222_v29  ;;  %v272_v44 = vld [vmem:[%s14104_s2 + $0x370] sm:$0xff] }
 0x129   :  { %1357 = vmatprep.subr.bf16.mxu1 %v9434_v62  ;;  %1398 = vmatprep.subr.bf16.mxu0 %v9436_v63  ;;  %v205_v62 = vld [vmem:[%s14104_s2 + $0x158] sm:$0xff]  ;;  %v9442_v63 = vcombine.high %v236_v51, %v252_v52  ;;  %v288_v45 = vld [vmem:[%s14104_s2 + $0x3f0] sm:$0xff]  ;;  %v9381_v51 = vcombine.low %v174_v36, %v190_v37 }
 0x12a   :  { %1379 = vmatprep.mubr.bf16.mxu1 %v11694_v46  ;;  %1420 = vmatprep.mubr.bf16.mxu0 %v11694_v46 }
 0x12c   :  { %1358 = vmatpush1.bf16.msra.mxu1 %v9433_v0  ;;  %1399 = vmatpush1.bf16.msra.mxu0 %v9435_v1  ;;  %v9444_v0 = vcombine.high %v237_v53, %v253_v55  ;;  %v221_v1 = vld [vmem:[%s14104_s2 + $0x1d8] sm:$0xff]  ;;  %v240_v53 = vld [vmem:[%s14104_s2 + $0x270] sm:$0xff] }
 0x12d   :  { %1359 = vmatprep.subr.bf16.mxu1 %v9402_v6  ;;  %1400 = vmatprep.subr.bf16.mxu0 %v9404_v7  ;;  %v173_v6 = vld [vmem:[%s14104_s2 + $0x58] sm:$0xff]  ;;  %v9411_v11 = vcombine.low %v205_v62, %v221_v1  ;;  %v256_v55 = vld [vmem:[%s14104_s2 + $0x2f0] sm:$0xff] }
 0x12e   :  { %v189_v7 = vld [vmem:[%s14104_s2 + $0xd8] sm:$0xff] }
 0x12f   :  { %v9379_v19 = vcombine.low %v173_v6, %v189_v7 }
 0x130   :  { %1360 = vmatpush1.bf16.msra.mxu1 %v9401_v8  ;;  %1401 = vmatpush1.bf16.msra.mxu0 %v9403_v9  ;;  %v9410_v8 = vcombine.high %v204_v60, %v220_v61  ;;  %v9412_v9 = vcombine.high %v205_v62, %v221_v1  ;;  %v9481_v60 = vcombine.low %v272_v44, %v288_v45  ;;  %v208_v62 = vld [vmem:[%s14104_s2 + $0x170] sm:$0xff] }
 0x131   :  { %1361 = vmatprep.subr.bf16.mxu1 %v9370_v14  ;;  %1402 = vmatprep.subr.bf16.mxu0 %v9372_v15  ;;  %v271_v14 = vld [vmem:[%s14104_s2 + $0x368] sm:$0xff]  ;;  %v9450_v1 = vcombine.high %v240_v53, %v256_v55 }
 0x132   :  { %v287_v15 = vld [vmem:[%s14104_s2 + $0x3e8] sm:$0xff] }
 0x133   :  { %v9479_v27 = vcombine.low %v271_v14, %v287_v15 }
 0x134   :  { %1362 = vmatpush1.bf16.msra.mxu1 %v9369_v16  ;;  %1403 = vmatpush1.bf16.msra.mxu0 %v9371_v17  ;;  %v9378_v16 = vcombine.high %v172_v4, %v188_v5  ;;  %v9380_v17 = vcombine.high %v173_v6, %v189_v7  ;;  %v9449_v4 = vcombine.low %v240_v53, %v256_v55  ;;  %v176_v6 = vld [vmem:[%s14104_s2 + $0x70] sm:$0xff]  ;;  %v12299_v55 = vld [vmem:[#allocation6] sm:$0xff] }
 0x135   :  { %1437 = vmatprep.subr.bf16.mxu1 %v9470_v22  ;;  %1478 = vmatprep.subr.bf16.mxu0 %v9472_v23  ;;  %v239_v22 = vld [vmem:[%s14104_s2 + $0x268] sm:$0xff]  ;;  %v9478_v23 = vcombine.high %v270_v12, %v286_v13  ;;  %v192_v7 = vld [vmem:[%s14104_s2 + $0xf0] sm:$0xff] }
 0x137   :  { %9491 = vmatmul.mubr.msk.bf16.vlgmr.msra.gmra.mxu1 %vm117_vm1, %v11841_v54  ;;  %9492 = vmatmul.mubr.msk.bf16.vlgmr.msra.gmra.mxu0 %vm117_vm1, %v11841_v54 }
 0x138   :  { %1438 = vmatpush1.bf16.msra.mxu1 %v9469_v24  ;;  %1479 = vmatpush1.bf16.msra.mxu0 %v9471_v25  ;;  %v9480_v24 = vcombine.high %v271_v14, %v287_v15  ;;  %v255_v25 = vld [vmem:[%s14104_s2 + $0x2e8] sm:$0xff]  ;;  %v9386_v14 = vcombine.high %v176_v6, %v192_v7 }
 0x139   :  { %1439 = vmatprep.subr.bf16.mxu1 %v9438_v30  ;;  %1480 = vmatprep.subr.bf16.mxu0 %v9440_v31  ;;  %v207_v30 = vld [vmem:[%s14104_s2 + $0x168] sm:$0xff]  ;;  %v9446_v31 = vcombine.high %v238_v20, %v254_v21  ;;  %v9447_v35 = vcombine.low %v239_v22, %v255_v25  ;;  %v11088_v20 = vld [vmem:[%s14106_s4 + $0x38] sm:$0xff]  }
 0x13a   :  { %1461 = vmatprep.mubr.bf16.mxu1 %v11694_v46  ;;  %1502 = vmatprep.mubr.bf16.mxu0 %v11694_v46  ;;  %v11089_v21 = vld [vmem:[%s14106_s4 + $0xb8] sm:$0xff]  }
 0x13c   :  { %1440 = vmatpush1.bf16.msra.mxu1 %v9437_v32  ;;  %1481 = vmatpush1.bf16.msra.mxu0 %v9439_v33  ;;  %v9448_v32 = vcombine.high %v239_v22, %v255_v25  ;;  %v223_v33 = vld [vmem:[%s14104_s2 + $0x1e8] sm:$0xff]  ;;  %v11090_v22 = vld [vmem:[%s14106_s4 + $0x70] sm:$0xff]  }
 0x13d   :  { %1441 = vmatprep.subr.bf16.mxu1 %v9406_v38  ;;  %1482 = vmatprep.subr.bf16.mxu0 %v9408_v39  ;;  %v175_v38 = vld [vmem:[%s14104_s2 + $0x68] sm:$0xff]  ;;  %v9415_v43 = vcombine.low %v207_v30, %v223_v33  ;;  %v11093_v25 = vld [vmem:[%s14106_s4 + $0xb0] sm:$0xff]  }
 0x13e   :  { %v191_v39 = vld [vmem:[%s14104_s2 + $0xe8] sm:$0xff] }
 0x13f   :  { %v9383_v52 = vcombine.low %v175_v38, %v191_v39 }
 0x140   :  { %1442 = vmatpush1.bf16.msra.mxu1 %v9405_v40  ;;  %1483 = vmatpush1.bf16.msra.mxu0 %v9407_v41  ;;  %v9414_v40 = vcombine.high %v206_v28, %v222_v29  ;;  %v9416_v41 = vcombine.high %v207_v30, %v223_v33  ;;  %v11097_v28 = vld [vmem:[%s14106_s4 + $0xa8] sm:$0xff]   ;;  %v11098_v29 = vld [vmem:[%s14106_s4 + $0x60] sm:$0xff]   ;;  %v11102_v33 = vld [vmem:[%s14106_s4 + $0x58] sm:$0xff]  }
 0x141   :  { %1443 = vmatprep.subr.bf16.mxu1 %v9374_v47  ;;  %1484 = vmatprep.subr.bf16.mxu0 %v9376_v48  ;;  %v273_v47 = vld [vmem:[%s14104_s2 + $0x378] sm:$0xff]  ;;  %v11099_v30 = vld [vmem:[%s14106_s4 + $0xe0] sm:$0xff]  }
 0x142   :  { %v289_v48 = vld [vmem:[%s14104_s2 + $0x3f8] sm:$0xff] }
 0x143   :  { %v9483_v61 = vcombine.low %v273_v47, %v289_v48 }
 0x144   :  { %1444 = vmatpush1.bf16.msra.mxu1 %v9373_v49  ;;  %1485 = vmatpush1.bf16.msra.mxu0 %v9375_v50  ;;  %v9382_v49 = vcombine.high %v174_v36, %v190_v37  ;;  %v9384_v50 = vcombine.high %v175_v38, %v191_v39  ;;  %v11105_v36 = vld [vmem:[%s14106_s4 + $0x98] sm:$0xff]   ;;  %v11106_v37 = vld [vmem:[%s14106_s4 + $0x50] sm:$0xff]  }
 0x145   :  { %1519 = vmatprep.subr.bf16.mxu1 %v9474_v56  ;;  %1560 = vmatprep.subr.bf16.mxu0 %v9476_v57  ;;  %v241_v56 = vld [vmem:[%s14104_s2 + $0x278] sm:$0xff]  ;;  %v9482_v57 = vcombine.high %v272_v44, %v288_v45  ;;  %v11107_v38 = vld [vmem:[%s14106_s4 + $0xd0] sm:$0xff]   ;;  %v11113_v44 = vld [vmem:[%s14106_s4 + $0x88] sm:$0xff]  }
 0x146   :  { %v11108_v39 = vld [vmem:[%s14106_s4 + $0x10] sm:$0xff]   ;;  %v11114_v45 = vld [vmem:[%s14106_s4 + $0x40] sm:$0xff]  }
 0x147   :  { %9493 = vmatmul.mubr.msk.bf16.vlgmr.msra.gmra.mxu1 %vm117_vm1, %v11841_v54  ;;  %9494 = vmatmul.mubr.msk.bf16.vlgmr.msra.gmra.mxu0 %vm117_vm1, %v11841_v54 }
 0x148   :  { %1520 = vmatpush1.bf16.msra.mxu1 %v9473_v58  ;;  %1561 = vmatpush1.bf16.msra.mxu0 %v9475_v59  ;;  %v9484_v58 = vcombine.high %v273_v47, %v289_v48  ;;  %v257_v59 = vld [vmem:[%s14104_s2 + $0x2f8] sm:$0xff]  ;;  %v11115_v47 = vld [vmem:[%s14106_s4 + $0xc0] sm:$0xff]  }
 0x149   :  { %1521 = vmatprep.subr.bf16.mxu1 %v9442_v63  ;;  %1562 = vmatprep.subr.bf16.mxu0 %v9444_v0  ;;  %v224_v63 = vld [vmem:[%s14104_s2 + $0x1f0] sm:$0xff]  ;;  %v209_v0 = vld [vmem:[%s14104_s2 + $0x178] sm:$0xff]  ;;  %v9451_v5 = vcombine.low %v241_v56, %v257_v59  ;;  %v11116_v48 = vld [vmem:[%s14106_s4] sm:$0xff]  }
 0x14a   :  { %1543 = vmatprep.mubr.bf16.mxu1 %v11694_v46  ;;  %1584 = vmatprep.mubr.bf16.mxu0 %v11694_v46  ;;  %v9417_v12 = vcombine.low %v208_v62, %v224_v63 }
 0x14c   :  { %1522 = vmatpush1.bf16.msra.mxu1 %v9441_v2  ;;  %1563 = vmatpush1.bf16.msra.mxu0 %v9443_v3  ;;  %v9452_v2 = vcombine.high %v241_v56, %v257_v59  ;;  %v225_v3 = vld [vmem:[%s14104_s2 + $0x1f8] sm:$0xff] }
 0x14d   :  { %1523 = vmatprep.subr.bf16.mxu1 %v9410_v8  ;;  %1564 = vmatprep.subr.bf16.mxu0 %v9412_v9  ;;  %v177_v8 = vld [vmem:[%s14104_s2 + $0x78] sm:$0xff]  ;;  %v9419_v13 = vcombine.low %v209_v0, %v225_v3 }
 0x14e   :  { %v193_v9 = vld [vmem:[%s14104_s2 + $0xf8] sm:$0xff] }
 0x14f   :  { %v9388_v15 = vcombine.high %v177_v8, %v193_v9 }
 0x150   :  { %1524 = vmatpush1.bf16.msra.mxu1 %v9409_v10  ;;  %1565 = vmatpush1.bf16.msra.mxu0 %v9411_v11  ;;  %v9418_v10 = vcombine.high %v208_v62, %v224_v63  ;;  %v9420_v11 = vcombine.high %v209_v0, %v225_v3 }
 0x151   :  { %1525 = vmatprep.subr.bf16.mxu1 %v9378_v16  ;;  %1566 = vmatprep.subr.bf16.mxu0 %v9380_v17  ;;  %v9385_v16 = vcombine.low %v176_v6, %v192_v7  ;;  %v9387_v17 = vcombine.low %v177_v8, %v193_v9 }
 0x154   :  { %1526 = vmatpush1.bf16.msra.mxu1 %v9377_v18  ;;  %1567 = vmatpush1.bf16.msra.mxu0 %v9379_v19  ;;  %v11086_v18 = vld [vmem:[%s14106_s4 + $0x78] sm:$0xff]  }
 0x155   :  { %1601 = vmatprep.subr.bf16.mxu1 %v9478_v23  ;;  %1642 = vmatprep.subr.bf16.mxu0 %v9480_v24  ;;  %v11087_v19 = vld [vmem:[%s14106_s4 + $0xf8] sm:$0xff]   ;;  %v11091_v23 = vld [vmem:[%s14106_s4 + $0xf0] sm:$0xff]  }
 0x156   :  { %v11092_v24 = vld [vmem:[%s14106_s4 + $0x30] sm:$0xff]  }
 0x157   :  { %9495 = vmatmul.mubr.msk.bf16.vlgmr.msra.gmra.mxu1 %vm117_vm1, %v11841_v54  ;;  %9496 = vmatmul.mubr.msk.bf16.vlgmr.msra.gmra.mxu0 %vm117_vm1, %v11841_v54 }
 0x158   :  { %1602 = vmatpush1.bf16.msra.mxu1 %v9477_v26  ;;  %1643 = vmatpush1.bf16.msra.mxu0 %v9479_v27  ;;  %v11094_v26 = vld [vmem:[%s14106_s4 + $0x68] sm:$0xff]  }
 0x159   :  { %1603 = vmatprep.subr.bf16.mxu1 %v9446_v31  ;;  %1644 = vmatprep.subr.bf16.mxu0 %v9448_v32  ;;  %v11096_v27 = vld [vmem:[%s14106_s4 + $0x28] sm:$0xff]   ;;  %v11100_v31 = vld [vmem:[%s14106_s4 + $0x20] sm:$0xff]  }
 0x15a   :  { %1625 = vmatprep.mubr.bf16.mxu1 %v11694_v46  ;;  %1666 = vmatprep.mubr.bf16.mxu0 %v11694_v46  ;;  %v11101_v32 = vld [vmem:[%s14106_s4 + $0xa0] sm:$0xff]  }
 0x15c   :  { %1604 = vmatpush1.bf16.msra.mxu1 %v9445_v34  ;;  %1645 = vmatpush1.bf16.msra.mxu0 %v9447_v35  ;;  %v11103_v34 = vld [vmem:[%s14106_s4 + $0xd8] sm:$0xff]  }
 0x15d   :  { %1605 = vmatprep.subr.bf16.mxu1 %v9414_v40  ;;  %1646 = vmatprep.subr.bf16.mxu0 %v9416_v41  ;;  %v11104_v35 = vld [vmem:[%s14106_s4 + $0x18] sm:$0xff]   ;;  %v11109_v40 = vld [vmem:[%s14106_s4 + $0x90] sm:$0xff]   ;;  %v11110_v41 = vld [vmem:[%s14106_s4 + $0x48] sm:$0xff]  }
 0x160   :  { %1606 = vmatpush1.bf16.msra.mxu1 %v9413_v42  ;;  %1647 = vmatpush1.bf16.msra.mxu0 %v9415_v43  ;;  %v11111_v42 = vld [vmem:[%s14106_s4 + $0xc8] sm:$0xff]  }
 0x161   :  { %1607 = vmatprep.subr.bf16.mxu1 %v9382_v49  ;;  %1648 = vmatprep.subr.bf16.mxu0 %v9384_v50  ;;  %v11112_v43 = vld [vmem:[%s14106_s4 + $0x8] sm:$0xff]   ;;  %v11117_v49 = vld [vmem:[%s14106_s4 + $0x80] sm:$0xff]   ;;  %v11118_v50 = vld [vmem:[%s14106_s4 + $0x178] sm:$0xff]  }
 0x164   :  { %1608 = vmatpush1.bf16.msra.mxu1 %v9381_v51  ;;  %1649 = vmatpush1.bf16.msra.mxu0 %v9383_v52  ;;  %v11119_v51 = vld [vmem:[%s14106_s4 + $0x1f8] sm:$0xff]   ;;  %v298_v52 = vlaneseq }
 0x165   :  { %1683 = vmatprep.subr.bf16.mxu1 %v9482_v57  ;;  %1724 = vmatprep.subr.bf16.mxu0 %v9484_v58 }
 0x166   :  { %v12297_v53 = vshrl.u32 %v298_v52, 7 }
 0x167   :  { %9497 = vmatmul.mubr.msk.bf16.vlgmr.msra.gmra.mxu1 %vm117_vm1, %v11841_v54  ;;  %9498 = vmatmul.mubr.msk.bf16.vlgmr.msra.gmra.mxu0 %vm117_vm1, %v11841_v54 }
 0x168   :  { %1684 = vmatpush1.bf16.msra.mxu1 %v9481_v60  ;;  %1725 = vmatpush1.bf16.msra.mxu0 %v9483_v61  ;;  %v12302_v56 = vsub.s32 0, %v12297_v53  ;;  %v12305_v57 = vsub.s32 2, %v12297_v53  ;;  %v12308_v58 = vsub.s32 1, %v12297_v53  ;;  %v12311_v59 = vsub.s32 3, %v12297_v53 }
 0x169   :  { %1685 = vmatprep.subr.bf16.mxu1 %v9450_v1  ;;  %1726 = vmatprep.subr.bf16.mxu0 %v9452_v2 }
 0x16a   :  { %1707 = vmatprep.mubr.bf16.mxu1 %v11694_v46  ;;  %1748 = vmatprep.mubr.bf16.mxu0 %v11694_v46  ;;  %v301_v60 = vrot.slane %v12299_v55, %v12302_v56  ;;  %v309_v61 = vrot.slane %v12299_v55, %v12305_v57  ;;  %v305_v62 = vrot.slane %v12299_v55, %v12308_v58 }
 0x16b   :  { %v313_v63 = vrot.slane %v12299_v55, %v12311_v59 }
 0x16c   :  { %1686 = vmatpush1.bf16.msra.mxu1 %v9449_v4  ;;  %1727 = vmatpush1.bf16.msra.mxu0 %v9451_v5 }
 0x16d   :  { %1687 = vmatprep.subr.bf16.mxu1 %v9418_v10  ;;  %1728 = vmatprep.subr.bf16.mxu0 %v9420_v11 }
 0x170   :  { %1688 = vmatpush1.bf16.msra.mxu1 %v9417_v12  ;;  %1729 = vmatpush1.bf16.msra.mxu0 %v9419_v13 }
 0x171   :  { %1689 = vmatprep.subr.bf16.mxu1 %v9386_v14  ;;  %1730 = vmatprep.subr.bf16.mxu0 %v9388_v15  ;;  %v11120_v14 = vld [vmem:[%s14106_s4 + $0x138] sm:$0xff]  }
 0x172   :  { %v11121_v15 = vld [vmem:[%s14106_s4 + $0x1b8] sm:$0xff]  }
 0x174   :  { %1690 = vmatpush1.bf16.msra.mxu1 %v9385_v16  ;;  %1731 = vmatpush1.bf16.msra.mxu0 %v9387_v17 }
 0x175   :  { %10355 = vmatprep.subr.bf16.mxu1 %v11086_v18  ;;  %10377 = vmatprep.subr.bf16.mxu0 %v11087_v19  ;;  %v11122_v18 = vld [vmem:[%s14106_s4 + $0x170] sm:$0xff]  }
 0x177   :  { %9499 = vmatmul.mubr.msk.bf16.vlgmr.msra.gmra.mxu1 %vm117_vm1, %v11841_v54  ;;  %9500 = vmatmul.mubr.msk.bf16.vlgmr.msra.gmra.mxu0 %vm117_vm1, %v11841_v54  ;;  %v11095_v54 = vld [vmem:[%s14106_s4 + $0xe8] sm:$0xff]  }
 0x178   :  { %10356 = vmatpush3.bf16.msra.mxu1 %v11088_v20  ;;  %10378 = vmatpush3.bf16.msra.mxu0 %v11089_v21  ;;  %v11123_v21 = vld [vmem:[%s14106_s4 + $0x1f0] sm:$0xff]  }
 0x179   :  { %10357 = vmatprep.subr.bf16.mxu1 %v11090_v22  ;;  %10379 = vmatprep.subr.bf16.mxu0 %v11091_v23 }
 0x17c   :  { %10358 = vmatpush3.bf16.msra.mxu1 %v11092_v24  ;;  %10380 = vmatpush3.bf16.msra.mxu0 %v11093_v25  ;;  %v11124_v24 = vld [vmem:[%s14106_s4 + $0x130] sm:$0xff]  }
 0x17d   :  { %10359 = vmatprep.subr.bf16.mxu1 %v11094_v26  ;;  %10381 = vmatprep.subr.bf16.mxu0 %v11095_v54  ;;  %v11125_v25 = vld [vmem:[%s14106_s4 + $0x1b0] sm:$0xff]   ;;  %v12340_v26 = vsub.s32 5, %v12297_v53  ;;  %v12343_v54 = vsub.s32 7, %v12297_v53 }
 0x180   :  { %10360 = vmatpush3.bf16.msra.mxu1 %v11096_v27  ;;  %10382 = vmatpush3.bf16.msra.mxu0 %v11097_v28  ;;  %v11126_v27 = vld [vmem:[%s14106_s4 + $0x168] sm:$0xff]  }
 0x181   :  { %10361 = vmatprep.subr.bf16.mxu1 %v11098_v29  ;;  %10383 = vmatprep.subr.bf16.mxu0 %v11099_v30  ;;  %v11127_v28 = vld [vmem:[%s14106_s4 + $0x1e8] sm:$0xff]   ;;  %v321_v30 = vrot.slane %v12299_v55, %v12340_v26 }
 0x182   :  { %v11128_v29 = vld [vmem:[%s14106_s4 + $0x128] sm:$0xff]  }
 0x184   :  { %10362 = vmatpush3.bf16.msra.mxu1 %v11100_v31  ;;  %10384 = vmatpush3.bf16.msra.mxu0 %v11101_v32  ;;  %v329_v31 = vrot.slane %v12299_v55, %v12343_v54  ;;  %v11129_v32 = vld [vmem:[%s14106_s4 + $0x1a8] sm:$0xff]  }
 0x185   :  { %10363 = vmatprep.subr.bf16.mxu1 %v11102_v33  ;;  %10385 = vmatprep.subr.bf16.mxu0 %v11103_v34 }
 0x188   :  { %10364 = vmatpush3.bf16.msra.mxu1 %v11104_v35  ;;  %10386 = vmatpush3.bf16.msra.mxu0 %v11105_v36  ;;  %v11130_v35 = vld [vmem:[%s14106_s4 + $0x160] sm:$0xff]  }
 0x189   :  { %10365 = vmatprep.subr.bf16.mxu1 %v11106_v37  ;;  %10387 = vmatprep.subr.bf16.mxu0 %v11107_v38  ;;  %v11131_v36 = vld [vmem:[%s14106_s4 + $0x1e0] sm:$0xff]  }
 0x18c   :  { %10366 = vmatpush3.bf16.msra.mxu1 %v11108_v39  ;;  %10388 = vmatpush3.bf16.msra.mxu0 %v11109_v40 }
 0x18d   :  { %10367 = vmatprep.subr.bf16.mxu1 %v11110_v41  ;;  %10389 = vmatprep.subr.bf16.mxu0 %v11111_v42  ;;  %v11132_v41 = vld [vmem:[%s14106_s4 + $0x120] sm:$0xff]  }
 0x18e   :  { %v11133_v42 = vld [vmem:[%s14106_s4 + $0x1a0] sm:$0xff]  }
 0x190   :  { %10368 = vmatpush3.bf16.msra.mxu1 %v11112_v43  ;;  %10390 = vmatpush3.bf16.msra.mxu0 %v11113_v44 }
 0x191   :  { %10369 = vmatprep.subr.bf16.mxu1 %v11114_v45  ;;  %10391 = vmatprep.subr.bf16.mxu0 %v11115_v47  ;;  %v11134_v45 = vld [vmem:[%s14106_s4 + $0x158] sm:$0xff]  }
 0x192   :  { %v11135_v47 = vld [vmem:[%s14106_s4 + $0x1d8] sm:$0xff]  }
 0x194   :  { %10370 = vmatpush3.bf16.msra.mxu1 %v11116_v48  ;;  %10392 = vmatpush3.bf16.msra.mxu0 %v11117_v49 }
 0x195   :  { %10399 = vmatprep.subr.bf16.mxu1 %v11118_v50  ;;  %10421 = vmatprep.subr.bf16.mxu0 %v11119_v51  ;;  %v11136_v50 = vld [vmem:[%s14106_s4 + $0x118] sm:$0xff]  }
 0x1c7   :  { %v1135_v0 = vpop.f32.mrf.mxu1  ;;  %v1176_v1 = vpop.f32.mrf.mxu0 }
 0x1c8   :  { %v1136_v2 = vadd.f32 %v1135_v0, %v301_v60  ;;  %v1177_v3 = vadd.f32 %v1176_v1, %v309_v61  ;;  %v12389_v0 = vsub.s32 6, %v12297_v53  ;;  %v11138_v1 = vld [vmem:[%s14106_s4 + $0x150] sm:$0xff]  }
 0x1c9   :  { %v1137_v4 = vpop.f32.mrf.mxu1  ;;  %v1178_v5 = vpop.f32.mrf.mxu0 }
 0x1ca   :  { %v1138_v6 = vadd.f32 %v1137_v4, %v305_v62  ;;  %v1179_v7 = vadd.f32 %v1178_v5, %v313_v63  ;;  %v1757_v8 = vmax.f32 %v1136_v2, 0.0  ;;  %v1759_v9 = vmax.f32 %v1177_v3, 0.0  ;;  %v11137_v62 = vld [vmem:[%s14106_s4 + $0x198] sm:$0xff]   ;;  %v11139_v2 = vld [vmem:[%s14106_s4 + $0x1d0] sm:$0xff]  }
 0x1cb   :  { %v1139_v10 = vpop.f32.mrf.mxu1  ;;  %v1180_v11 = vpop.f32.mrf.mxu0  ;;  %v12386_v63 = vsub.s32 4, %v12297_v53  ;;  %v11140_v3 = vld [vmem:[%s14106_s4 + $0x110] sm:$0xff]   ;;  %v325_v5 = vrot.slane %v12299_v55, %v12389_v0 }
 0x1cc   :  { %v1758_v12 = vmax.f32 %v1138_v6, 0.0  ;;  %v1760_v13 = vmax.f32 %v1179_v7, 0.0  ;;  %v10286_v22 = vpack.c.bf16 %v1757_v8, %v1757_v8  ;;  %v10288_v23 = vpack.c.bf16 %v1759_v9, %v1759_v9  ;;  %v11141_v53 = vld [vmem:[%s14106_s4 + $0x190] sm:$0xff]   ;;  %v12407_v6 = vld [vmem:[#allocation6 + $0x8] sm:$0xff] }
 0x1cd   :  { %v1140_v16 = vpop.f32.mrf.mxu1  ;;  %v1181_v17 = vpop.f32.mrf.mxu0  ;;  %v317_v4 = vrot.slane %v12299_v55, %v12386_v63  ;;  %v11142_v7 = vld [vmem:[%s14106_s4 + $0x148] sm:$0xff]   ;;  %v337_v55 = vrot.slane %v12407_v6, %v12308_v58  ;;  %v345_v10 = vrot.slane %v12407_v6, %v12311_v59 }
 0x1ce   :  { %v10287_v19 = vpack.c.bf16 %v1758_v12, %v1758_v12  ;;  %v10289_v20 = vpack.c.bf16 %v1760_v13, %v1760_v13  ;;  %v11143_v8 = vld [vmem:[%s14106_s4 + $0x1c8] sm:$0xff]   ;;  %v11146_v16 = vld [vmem:[%s14106_s4 + $0x140] sm:$0xff]  }
 0x1cf   :  { %v11144_v9 = vld [vmem:[%s14106_s4 + $0x108] sm:$0xff]   ;;  %v11147_v17 = vld [vmem:[%s14106_s4 + $0x1c0] sm:$0xff]  }
 0x1d0   :  { %4141 = vmatprep.mubr.bf16.mxu1 %v10287_v19  ;;  %4181 = vmatprep.mubr.bf16.mxu0 %v10289_v20  ;;  %v11145_v11 = vld [vmem:[%s14106_s4 + $0x188] sm:$0xff]  }
 0x1d1   :  { %4142 = vmatmul.mubr.bf16.vlgmr.msra.gmra.mxu1 %v10286_v22  ;;  %4182 = vmatmul.mubr.bf16.vlgmr.msra.gmra.mxu0 %v10288_v23  ;;  %v11148_v22 = vld [vmem:[%s14106_s4 + $0x100] sm:$0xff]  }
 0x1d2   :  { %10400 = vmatpush3.bf16.msra.mxu1 %v11120_v14  ;;  %10422 = vmatpush3.bf16.msra.mxu0 %v11121_v15  ;;  %v11149_v23 = vld [vmem:[%s14106_s4 + $0x180] sm:$0xff]  }
 0x1d3   :  { %10401 = vmatprep.subr.bf16.mxu1 %v11122_v18  ;;  %10423 = vmatprep.subr.bf16.mxu0 %v11123_v21 }
 0x1d6   :  { %10402 = vmatpush3.bf16.msra.mxu1 %v11124_v24  ;;  %10424 = vmatpush3.bf16.msra.mxu0 %v11125_v25 }
 0x1d7   :  { %v1217_v33 = vpop.f32.mrf.mxu1  ;;  %v1258_v34 = vpop.f32.mrf.mxu0  ;;  %10403 = vmatprep.subr.bf16.mxu1 %v11126_v27  ;;  %10425 = vmatprep.subr.bf16.mxu0 %v11127_v28 }
 0x1d8   :  { %v1218_v12 = vadd.f32 %v1217_v33, %v317_v4  ;;  %v1259_v13 = vadd.f32 %v1258_v34, %v325_v5  ;;  %v11152_v33 = vld [vmem:[%s14106_s4 + $0x238] sm:$0xff]  }
 0x1d9   :  { %v1219_v37 = vpop.f32.mrf.mxu1  ;;  %v1260_v38 = vpop.f32.mrf.mxu0  ;;  %v11166_v4 = vld [vmem:[%s14106_s4 + $0x258] sm:$0xff]  }
 0x1da   :  { %v1220_v39 = vadd.f32 %v1219_v37, %v321_v30  ;;  %v1261_v40 = vadd.f32 %v1260_v38, %v329_v31  ;;  %10404 = vmatpush3.bf16.msra.mxu1 %v11128_v29  ;;  %10426 = vmatpush3.bf16.msra.mxu0 %v11129_v32  ;;  %v1761_v24 = vmax.f32 %v1218_v12, 0.0  ;;  %v1763_v25 = vmax.f32 %v1259_v13, 0.0  ;;  %v11150_v29 = vld [vmem:[%s14106_s4 + $0x278] sm:$0xff]   ;;  %v11154_v37 = vld [vmem:[%s14106_s4 + $0x270] sm:$0xff]  }
 0x1db   :  { %v1221_v43 = vpop.f32.mrf.mxu1  ;;  %v1262_v44 = vpop.f32.mrf.mxu0  ;;  %10405 = vmatprep.subr.bf16.mxu1 %v11130_v35  ;;  %10427 = vmatprep.subr.bf16.mxu0 %v11131_v36  ;;  %v11151_v30 = vld [vmem:[%s14106_s4 + $0x2f8] sm:$0xff]   ;;  %v11155_v38 = vld [vmem:[%s14106_s4 + $0x2f0] sm:$0xff]   ;;  %v333_v13 = vrot.slane %v12407_v6, %v12302_v56 }
 0x1dc   :  { %v1762_v48 = vmax.f32 %v1220_v39, 0.0  ;;  %v1764_v49 = vmax.f32 %v1261_v40, 0.0  ;;  %v11153_v36 = vld [vmem:[%s14106_s4 + $0x2b8] sm:$0xff]   ;;  %v10290_v39 = vpack.c.bf16 %v1761_v24, %v1761_v24  ;;  %v10292_v40 = vpack.c.bf16 %v1763_v25, %v1763_v25  ;;  %v11156_v43 = vld [vmem:[%s14106_s4 + $0x230] sm:$0xff]  }
 0x1dd   :  { %v1222_v51 = vpop.f32.mrf.mxu1  ;;  %v1263_v52 = vpop.f32.mrf.mxu0  ;;  %v11157_v44 = vld [vmem:[%s14106_s4 + $0x2b0] sm:$0xff]   ;;  %v11167_v5 = vld [vmem:[%s14106_s4 + $0x2d8] sm:$0xff]  }
 0x1de   :  { %v10291_v60 = vpack.c.bf16 %v1762_v48, %v1762_v48  ;;  %v10293_v61 = vpack.c.bf16 %v1764_v49, %v1764_v49  ;;  %10406 = vmatpush3.bf16.msra.mxu1 %v11132_v41  ;;  %10428 = vmatpush3.bf16.msra.mxu0 %v11133_v42  ;;  %v11160_v48 = vld [vmem:[%s14106_s4 + $0x228] sm:$0xff]   ;;  %v11162_v52 = vld [vmem:[%s14106_s4 + $0x260] sm:$0xff]   ;;  %v11172_v12 = vld [vmem:[%s14106_s4 + $0x210] sm:$0xff]  }
 0x1df   :  { %10407 = vmatprep.subr.bf16.mxu1 %v11134_v45  ;;  %10429 = vmatprep.subr.bf16.mxu0 %v11135_v47  ;;  %v11158_v45 = vld [vmem:[%s14106_s4 + $0x268] sm:$0xff]  }
 0x1e0   :  { %4221 = vmatprep.mubr.bf16.mxu1 %v10291_v60  ;;  %4261 = vmatprep.mubr.bf16.mxu0 %v10293_v61  ;;  %v11159_v47 = vld [vmem:[%s14106_s4 + $0x2e8] sm:$0xff]   ;;  %v11163_v60 = vld [vmem:[%s14106_s4 + $0x2e0] sm:$0xff]  }
 0x1e1   :  { %v11161_v51 = vld [vmem:[%s14106_s4 + $0x2a8] sm:$0xff]  }
 0x1e2   :  { %10408 = vmatpush3.bf16.msra.mxu1 %v11136_v50  ;;  %10430 = vmatpush3.bf16.msra.mxu0 %v11137_v62 }
 0x1e3   :  { %10409 = vmatprep.subr.bf16.mxu1 %v11138_v1  ;;  %10431 = vmatprep.subr.bf16.mxu0 %v11139_v2  ;;  %v11164_v1 = vld [vmem:[%s14106_s4 + $0x220] sm:$0xff]  }
 0x1e6   :  { %10410 = vmatpush3.bf16.msra.mxu1 %v11140_v3  ;;  %10432 = vmatpush3.bf16.msra.mxu0 %v11141_v53  ;;  %v11165_v53 = vld [vmem:[%s14106_s4 + $0x2a0] sm:$0xff]  }
 0x1e7   :  { %v12425_v14 = vpop.f32.mrf.mxu1  ;;  %v12427_v15 = vpop.f32.mrf.mxu0  ;;  %10411 = vmatprep.subr.bf16.mxu1 %v11142_v7  ;;  %10433 = vmatprep.subr.bf16.mxu0 %v11143_v8 }
 0x1e9   :  { %v1301_v18 = vpop.f32.mrf.mxu1  ;;  %v1342_v19 = vpop.f32.mrf.mxu0 }
 0x1ea   :  { %v1302_v20 = vadd.f32 %v1301_v18, %v337_v55  ;;  %v1343_v21 = vadd.f32 %v1342_v19, %v345_v10  ;;  %10412 = vmatpush3.bf16.msra.mxu1 %v11144_v9  ;;  %10434 = vmatpush3.bf16.msra.mxu0 %v11145_v11  ;;  %v11168_v9 = vld [vmem:[%s14106_s4 + $0x218] sm:$0xff]   ;;  %v11170_v10 = vld [vmem:[%s14106_s4 + $0x250] sm:$0xff]   ;;  %v341_v18 = vrot.slane %v12407_v6, %v12305_v57  ;;  %v11175_v19 = vld [vmem:[%s14106_s4 + $0x2c8] sm:$0xff]  }
 0x1eb   :  { %v1303_v27 = vpop.f32.mrf.mxu1  ;;  %v1344_v28 = vpop.f32.mrf.mxu0  ;;  %10413 = vmatprep.subr.bf16.mxu1 %v11146_v16  ;;  %10435 = vmatprep.subr.bf16.mxu0 %v11147_v17  ;;  %v11169_v55 = vld [vmem:[%s14106_s4 + $0x298] sm:$0xff]   ;;  %v11171_v11 = vld [vmem:[%s14106_s4 + $0x2d0] sm:$0xff]   ;;  %v11174_v17 = vld [vmem:[%s14106_s4 + $0x248] sm:$0xff]  }
 0x1ec   :  { %v1766_v31 = vmax.f32 %v1302_v20, 0.0  ;;  %v1768_v32 = vmax.f32 %v1343_v21, 0.0  ;;  %v11173_v16 = vld [vmem:[%s14106_s4 + $0x290] sm:$0xff]   ;;  %v353_v20 = vrot.slane %v12407_v6, %v12340_v26  ;;  %v361_v21 = vrot.slane %v12407_v6, %v12343_v54  ;;  %v11177_v27 = vld [vmem:[%s14106_s4 + $0x288] sm:$0xff]   ;;  %v11178_v28 = vld [vmem:[%s14106_s4 + $0x240] sm:$0xff]  }
 0x1ed   :  { %v1304_v34 = vpop.f32.mrf.mxu1  ;;  %v1345_v35 = vpop.f32.mrf.mxu0 }
 0x1ee   :  { %10414 = vmatpush3.bf16.msra.mxu1 %v11148_v22  ;;  %10436 = vmatpush3.bf16.msra.mxu0 %v11149_v23  ;;  %v10295_v41 = vpack.c.bf16 %v1766_v31, %v1766_v31  ;;  %v10297_v42 = vpack.c.bf16 %v1768_v32, %v1768_v32  ;;  %v11176_v22 = vld [vmem:[%s14106_s4 + $0x208] sm:$0xff]   ;;  %v1300_v23 = vadd.f32 %v12425_v14, %v333_v13  ;;  %v11179_v14 = vld [vmem:[%s14106_s4 + $0x2c0] sm:$0xff]  }
 0x1ef   :  { %10443 = vmatprep.subr.bf16.mxu1 %v11150_v29  ;;  %10465 = vmatprep.subr.bf16.mxu0 %v11151_v30  ;;  %v1341_v29 = vadd.f32 %v12427_v15, %v341_v18  ;;  %v11180_v34 = vld [vmem:[%s14106_s4 + $0x200] sm:$0xff]   ;;  %v11198_v18 = vld [vmem:[%s14106_s4 + $0x358] sm:$0xff]  }
 0x1f0   :  { %v1765_v35 = vmax.f32 %v1300_v23, 0.0  ;;  %v11201_v23 = vld [vmem:[%s14106_s4 + $0x398] sm:$0xff]  }
 0x1f1   :  { %4222 = vmatmul.mubr.bf16.vlgmr.msra.gmra.mxu1 %v10290_v39  ;;  %4262 = vmatmul.mubr.bf16.vlgmr.msra.gmra.mxu0 %v10292_v40  ;;  %v1767_v39 = vmax.f32 %v1341_v29, 0.0  ;;  %v11183_v40 = vld [vmem:[%s14106_s4 + $0x3f8] sm:$0xff]   ;;  %v11204_v29 = vld [vmem:[%s14106_s4 + $0x310] sm:$0xff]  }
 0x1f2   :  { %10444 = vmatpush3.bf16.msra.mxu1 %v11152_v33  ;;  %4301 = vmatprep.mubr.bf16.mxu1 %v10295_v41 }
 0x1f3   :  { %10466 = vmatpush3.bf16.msra.mxu0 %v11153_v36  ;;  %4341 = vmatprep.mubr.bf16.mxu0 %v10297_v42 }
 0x1f4   :  { %10445 = vmatprep.subr.bf16.mxu1 %v11154_v37  ;;  %10467 = vmatprep.subr.bf16.mxu0 %v11155_v38  ;;  %v11181_v37 = vld [vmem:[%s14106_s4 + $0x280] sm:$0xff]   ;;  %v11182_v38 = vld [vmem:[%s14106_s4 + $0x378] sm:$0xff]  }
 0x1f6   :  { %10446 = vmatpush3.bf16.msra.mxu1 %v11156_v43 }
 0x1f7   :  { %10468 = vmatpush3.bf16.msra.mxu0 %v11157_v44  ;;  %v12474_v49 = vpop.f32.mrf.mxu1  ;;  %v12476_v50 = vpop.f32.mrf.mxu0  ;;  %10447 = vmatprep.subr.bf16.mxu1 %v11158_v45  ;;  %v11184_v45 = vld [vmem:[%s14106_s4 + $0x338] sm:$0xff]  }
 0x1f8   :  { %10469 = vmatprep.subr.bf16.mxu0 %v11159_v47  ;;  %v10294_v47 = vpack.c.bf16 %v1765_v35, %v1765_v35  ;;  %v12646_v35 = vld [vmem:[#allocation6 + $0x10] sm:$0xff] }
 0x1f9   :  { %v1383_v61 = vpop.f32.mrf.mxu1  ;;  %v1424_v62 = vpop.f32.mrf.mxu0 }
 0x1fa   :  { %10448 = vmatpush3.bf16.msra.mxu1 %v11160_v48  ;;  %v1384_v30 = vadd.f32 %v1383_v61, %v353_v20  ;;  %v1425_v33 = vadd.f32 %v1424_v62, %v361_v21  ;;  %v11185_v48 = vld [vmem:[%s14106_s4 + $0x3b8] sm:$0xff]   ;;  %v11187_v61 = vld [vmem:[%s14106_s4 + $0x3f0] sm:$0xff]  }
 0x1fb   :  { %10470 = vmatpush3.bf16.msra.mxu0 %v11161_v51  ;;  %v1385_v2 = vpop.f32.mrf.mxu1  ;;  %v1426_v3 = vpop.f32.mrf.mxu0  ;;  %10449 = vmatprep.subr.bf16.mxu1 %v11162_v52  ;;  %v10296_v51 = vpack.c.bf16 %v1767_v39, %v1767_v39  ;;  %v11186_v52 = vld [vmem:[%s14106_s4 + $0x370] sm:$0xff]  }
 0x1fc   :  { %10471 = vmatprep.subr.bf16.mxu0 %v11163_v60  ;;  %v1770_v41 = vmax.f32 %v1384_v30, 0.0  ;;  %v1772_v44 = vmax.f32 %v1425_v33, 0.0  ;;  %v11189_v2 = vld [vmem:[%s14106_s4 + $0x3b0] sm:$0xff]   ;;  %v11190_v3 = vld [vmem:[%s14106_s4 + $0x368] sm:$0xff]  }
 0x1fd   :  { %v1386_v7 = vpop.f32.mrf.mxu1  ;;  %v1427_v8 = vpop.f32.mrf.mxu0  ;;  %v11205_v30 = vld [vmem:[%s14106_s4 + $0x390] sm:$0xff]   ;;  %v11206_v33 = vld [vmem:[%s14106_s4 + $0x348] sm:$0xff]  }
 0x1fe   :  { %10450 = vmatpush3.bf16.msra.mxu1 %v11164_v1  ;;  %v10299_v60 = vpack.c.bf16 %v1770_v41, %v1770_v41  ;;  %v10301_v62 = vpack.c.bf16 %v1772_v44, %v1772_v44  ;;  %v11188_v1 = vld [vmem:[%s14106_s4 + $0x330] sm:$0xff]   ;;  %v11193_v8 = vld [vmem:[%s14106_s4 + $0x3a8] sm:$0xff]  }
 0x1ff   :  { %10472 = vmatpush3.bf16.msra.mxu0 %v11165_v53  ;;  %10451 = vmatprep.subr.bf16.mxu1 %v11166_v4  ;;  %v11191_v53 = vld [vmem:[%s14106_s4 + $0x3e8] sm:$0xff]  }
 0x200   :  { %10473 = vmatprep.subr.bf16.mxu0 %v11167_v5  ;;  %v11192_v4 = vld [vmem:[%s14106_s4 + $0x328] sm:$0xff]  }
 0x201   :  { %v11209_v41 = vld [vmem:[%s14106_s4 + $0x388] sm:$0xff]  }
 0x202   :  { %10452 = vmatpush3.bf16.msra.mxu1 %v11168_v9  ;;  %v11194_v9 = vld [vmem:[%s14106_s4 + $0x360] sm:$0xff]  }
 0x203   :  { %10474 = vmatpush3.bf16.msra.mxu0 %v11169_v55  ;;  %10453 = vmatprep.subr.bf16.mxu1 %v11170_v10  ;;  %v11195_v55 = vld [vmem:[%s14106_s4 + $0x3e0] sm:$0xff]  }
 0x204   :  { %10475 = vmatprep.subr.bf16.mxu0 %v11171_v11 }
 0x206   :  { %10454 = vmatpush3.bf16.msra.mxu1 %v11172_v12  ;;  %v11196_v12 = vld [vmem:[%s14106_s4 + $0x320] sm:$0xff]  }
 0x207   :  { %10476 = vmatpush3.bf16.msra.mxu0 %v11173_v16  ;;  %v12535_v24 = vpop.f32.mrf.mxu1  ;;  %v12537_v25 = vpop.f32.mrf.mxu0  ;;  %10455 = vmatprep.subr.bf16.mxu1 %v11174_v17  ;;  %v11197_v17 = vld [vmem:[%s14106_s4 + $0x3a0] sm:$0xff]  }
 0x208   :  { %10477 = vmatprep.subr.bf16.mxu0 %v11175_v19  ;;  %v11199_v19 = vld [vmem:[%s14106_s4 + $0x3d8] sm:$0xff]  }
 0x209   :  { %v12549_v31 = vpop.f32.mrf.mxu1  ;;  %v12551_v32 = vpop.f32.mrf.mxu0 }
 0x20a   :  { %10456 = vmatpush3.bf16.msra.mxu1 %v11176_v22  ;;  %v11200_v22 = vld [vmem:[%s14106_s4 + $0x318] sm:$0xff]  }
 0x20b   :  { %10478 = vmatpush3.bf16.msra.mxu0 %v11177_v27  ;;  %v1467_v36 = vpop.f32.mrf.mxu1  ;;  %v1508_v15 = vpop.f32.mrf.mxu0  ;;  %10457 = vmatprep.subr.bf16.mxu1 %v11178_v28  ;;  %v11202_v27 = vld [vmem:[%s14106_s4 + $0x350] sm:$0xff]  }
 0x20c   :  { %10479 = vmatprep.subr.bf16.mxu0 %v11179_v14  ;;  %v11203_v28 = vld [vmem:[%s14106_s4 + $0x3d0] sm:$0xff]   ;;  %v349_v14 = vrot.slane %v12407_v6, %v12386_v63  ;;  %v11207_v36 = vld [vmem:[%s14106_s4 + $0x3c8] sm:$0xff]   ;;  %v369_v15 = vrot.slane %v12646_v35, %v12308_v58 }
 0x20d   :  { %v1468_v42 = vpop.f32.mrf.mxu1  ;;  %v1509_v43 = vpop.f32.mrf.mxu0 }
 0x20e   :  { %10458 = vmatpush3.bf16.msra.mxu1 %v11180_v34  ;;  %v357_v34 = vrot.slane %v12407_v6, %v12389_v0  ;;  %v1382_v6 = vadd.f32 %v12474_v49, %v349_v14  ;;  %v11210_v42 = vld [vmem:[%s14106_s4 + $0x340] sm:$0xff]   ;;  %v1466_v44 = vadd.f32 %v12549_v31, %v369_v15 }
 0x20f   :  { %10480 = vmatpush3.bf16.msra.mxu0 %v11181_v37  ;;  %10487 = vmatprep.subr.bf16.mxu1 %v11182_v38  ;;  %v377_v37 = vrot.slane %v12646_v35, %v12311_v59  ;;  %v11208_v38 = vld [vmem:[%s14106_s4 + $0x308] sm:$0xff]   ;;  %v11211_v49 = vld [vmem:[%s14106_s4 + $0x3c0] sm:$0xff]  }
 0x210   :  { %10509 = vmatprep.subr.bf16.mxu0 %v11183_v40  ;;  %v1423_v43 = vadd.f32 %v12476_v50, %v357_v34  ;;  %v11213_v31 = vld [vmem:[%s14106_s4 + $0x380] sm:$0xff]  }
 0x211   :  { %4302 = vmatmul.mubr.bf16.vlgmr.msra.gmra.mxu1 %v10294_v47  ;;  %v11227_v14 = vld [vmem:[%s14106_s4 + $0x4e0] sm:$0xff]  }
 0x212   :  { %4342 = vmatmul.mubr.bf16.vlgmr.msra.gmra.mxu0 %v10296_v51  ;;  %10488 = vmatpush3.bf16.msra.mxu1 %v11184_v45  ;;  %v11212_v51 = vld [vmem:[%s14106_s4 + $0x300] sm:$0xff]  }
 0x213   :  { %4381 = vmatprep.mubr.bf16.mxu1 %v10299_v60  ;;  %10510 = vmatpush3.bf16.msra.mxu0 %v11185_v48  ;;  %v1507_v48 = vadd.f32 %v12551_v32, %v377_v37  ;;  %v11215_v32 = vld [vmem:[%s14106_s4 + $0x4f8] sm:$0xff]   ;;  %v11228_v34 = vld [vmem:[%s14106_s4 + $0x420] sm:$0xff]  }
 0x214   :  { %4421 = vmatprep.mubr.bf16.mxu0 %v10301_v62  ;;  %10489 = vmatprep.subr.bf16.mxu1 %v11186_v52  ;;  %v1769_v52 = vmax.f32 %v1382_v6, 0.0  ;;  %v1771_v62 = vmax.f32 %v1423_v43, 0.0  ;;  %v11229_v37 = vld [vmem:[%s14106_s4 + $0x4a0] sm:$0xff]   ;;  %v11231_v6 = vld [vmem:[%s14106_s4 + $0x4d8] sm:$0xff]  }
 0x215   :  { %10511 = vmatprep.subr.bf16.mxu0 %v11187_v61  ;;  %v11214_v61 = vld [vmem:[%s14106_s4 + $0x478] sm:$0xff]  }
 0x216   :  { %10490 = vmatpush3.bf16.msra.mxu1 %v11188_v1  ;;  %v1774_v1 = vmax.f32 %v1466_v44, 0.0  ;;  %v11232_v43 = vld [vmem:[%s14106_s4 + $0x418] sm:$0xff]   ;;  %v11234_v44 = vld [vmem:[%s14106_s4 + $0x450] sm:$0xff]  }
 0x217   :  { %10512 = vmatpush3.bf16.msra.mxu0 %v11189_v2  ;;  %v12592_v5 = vpop.f32.mrf.mxu1  ;;  %v12594_v7 = vpop.f32.mrf.mxu0  ;;  %10491 = vmatprep.subr.bf16.mxu1 %v11190_v3 }
 0x218   :  { %10513 = vmatprep.subr.bf16.mxu0 %v11191_v53  ;;  %v1776_v53 = vmax.f32 %v1507_v48, 0.0  ;;  %v11235_v48 = vld [vmem:[%s14106_s4 + $0x4d0] sm:$0xff]  }
 0x219   :  { %v12605_v10 = vpop.f32.mrf.mxu1  ;;  %v12607_v11 = vpop.f32.mrf.mxu0 }
 0x21a   :  { %10492 = vmatpush3.bf16.msra.mxu1 %v11192_v4  ;;  %v11216_v4 = vld [vmem:[%s14106_s4 + $0x438] sm:$0xff]  }
 0x21b   :  { %10514 = vmatpush3.bf16.msra.mxu0 %v11193_v8  ;;  %v1549_v13 = vpop.f32.mrf.mxu1  ;;  %v1590_v16 = vpop.f32.mrf.mxu0  ;;  %10493 = vmatprep.subr.bf16.mxu1 %v11194_v9  ;;  %v10298_v8 = vpack.c.bf16 %v1769_v52, %v1769_v52  ;;  %v11217_v9 = vld [vmem:[%s14106_s4 + $0x4b8] sm:$0xff]   ;;  %v365_v52 = vrot.slane %v12646_v35, %v12302_v56 }
 0x21c   :  { %10515 = vmatprep.subr.bf16.mxu0 %v11195_v55  ;;  %v10300_v55 = vpack.c.bf16 %v1771_v62, %v1771_v62  ;;  %v10303_v13 = vpack.c.bf16 %v1774_v1, %v1774_v1  ;;  %v11219_v16 = vld [vmem:[%s14106_s4 + $0x4f0] sm:$0xff]   ;;  %v385_v62 = vrot.slane %v12646_v35, %v12340_v26  ;;  %v11240_v1 = vld [vmem:[%s14106_s4 + $0x408] sm:$0xff]  }
 0x21d   :  { %v1550_v20 = vpop.f32.mrf.mxu1  ;;  %v1591_v21 = vpop.f32.mrf.mxu0 }
 0x21e   :  { %10494 = vmatpush3.bf16.msra.mxu1 %v11196_v12  ;;  %v11218_v12 = vld [vmem:[%s14106_s4 + $0x470] sm:$0xff]   ;;  %v11222_v20 = vld [vmem:[%s14106_s4 + $0x468] sm:$0xff]  }
 0x21f   :  { %10516 = vmatpush3.bf16.msra.mxu0 %v11197_v17  ;;  %10495 = vmatprep.subr.bf16.mxu1 %v11198_v18  ;;  %v10305_v17 = vpack.c.bf16 %v1776_v53, %v1776_v53  ;;  %v11220_v18 = vld [vmem:[%s14106_s4 + $0x430] sm:$0xff]   ;;  %v11223_v21 = vld [vmem:[%s14106_s4 + $0x4e8] sm:$0xff]   ;;  %v11242_v53 = vld [vmem:[%s14106_s4 + $0x440] sm:$0xff]  }
 0x220   :  { %10517 = vmatprep.subr.bf16.mxu0 %v11199_v19  ;;  %v11221_v19 = vld [vmem:[%s14106_s4 + $0x4b0] sm:$0xff]  }
 0x222   :  { %10496 = vmatpush3.bf16.msra.mxu1 %v11200_v22  ;;  %v11224_v22 = vld [vmem:[%s14106_s4 + $0x428] sm:$0xff]  }
 0x223   :  { %10518 = vmatpush3.bf16.msra.mxu0 %v11201_v23  ;;  %10497 = vmatprep.subr.bf16.mxu1 %v11202_v27 }
 0x224   :  { %10519 = vmatprep.subr.bf16.mxu0 %v11203_v28  ;;  %v11225_v28 = vld [vmem:[%s14106_s4 + $0x4a8] sm:$0xff]  }
 0x226   :  { %10498 = vmatpush3.bf16.msra.mxu1 %v11204_v29  ;;  %v11226_v29 = vld [vmem:[%s14106_s4 + $0x460] sm:$0xff]  }
 0x227   :  { %10520 = vmatpush3.bf16.msra.mxu0 %v11205_v30  ;;  %v12659_v39 = vpop.f32.mrf.mxu1  ;;  %v12661_v40 = vpop.f32.mrf.mxu0  ;;  %10499 = vmatprep.subr.bf16.mxu1 %v11206_v33 }
 0x228   :  { %10521 = vmatprep.subr.bf16.mxu0 %v11207_v36 }
 0x229   :  { %v12674_v45 = vpop.f32.mrf.mxu1  ;;  %v12676_v47 = vpop.f32.mrf.mxu0 }
 0x22a   :  { %10500 = vmatpush3.bf16.msra.mxu1 %v11208_v38  ;;  %v11230_v38 = vld [vmem:[%s14106_s4 + $0x458] sm:$0xff]  }
 0x22b   :  { %10522 = vmatpush3.bf16.msra.mxu0 %v11209_v41  ;;  %v1631_v50 = vpop.f32.mrf.mxu1  ;;  %v1672_v60 = vpop.f32.mrf.mxu0  ;;  %10501 = vmatprep.subr.bf16.mxu1 %v11210_v42 }
 0x22c   :  { %10523 = vmatprep.subr.bf16.mxu0 %v11211_v49  ;;  %v11233_v49 = vld [vmem:[%s14106_s4 + $0x498] sm:$0xff]   ;;  %v11237_v50 = vld [vmem:[%s14106_s4 + $0x490] sm:$0xff]   ;;  %v11238_v60 = vld [vmem:[%s14106_s4 + $0x448] sm:$0xff]  }
 0x22d   :  { %v1632_v2 = vpop.f32.mrf.mxu1  ;;  %v1673_v3 = vpop.f32.mrf.mxu0 }
 0x22e   :  { %10502 = vmatpush3.bf16.msra.mxu1 %v11212_v51  ;;  %v11236_v51 = vld [vmem:[%s14106_s4 + $0x410] sm:$0xff]   ;;  %v1464_v2 = vadd.f32 %v12535_v24, %v365_v52  ;;  %v11241_v3 = vld [vmem:[%s14106_s4 + $0x488] sm:$0xff]   ;;  %v11265_v52 = vld [vmem:[%s14106_s4 + $0x598] sm:$0xff]  }
 0x22f   :  { %10524 = vmatpush3.bf16.msra.mxu0 %v11213_v31  ;;  %10531 = vmatprep.subr.bf16.mxu1 %v11214_v61  ;;  %v373_v31 = vrot.slane %v12646_v35, %v12305_v57  ;;  %v11239_v61 = vld [vmem:[%s14106_s4 + $0x4c8] sm:$0xff]  }
 0x230   :  { %10553 = vmatprep.subr.bf16.mxu0 %v11215_v32  ;;  %v393_v32 = vrot.slane %v12646_v35, %v12343_v54 }
 0x231   :  { %4382 = vmatmul.mubr.bf16.vlgmr.msra.gmra.mxu1 %v10298_v8  ;;  %v11243_v8 = vld [vmem:[%s14106_s4 + $0x4c0] sm:$0xff]  }
 0x232   :  { %4422 = vmatmul.mubr.bf16.vlgmr.msra.gmra.mxu0 %v10300_v55  ;;  %10532 = vmatpush3.bf16.msra.mxu1 %v11216_v4  ;;  %v1505_v4 = vadd.f32 %v12537_v25, %v373_v31  ;;  %v1589_v24 = vadd.f32 %v12607_v11, %v393_v32  ;;  %v11244_v55 = vld [vmem:[%s14106_s4 + $0x400] sm:$0xff]   ;;  %v11268_v31 = vld [vmem:[%s14106_s4 + $0x510] sm:$0xff]   ;;  %v11270_v32 = vld [vmem:[%s14106_s4 + $0x548] sm:$0xff]  }
 0x233   :  { %4461 = vmatprep.mubr.bf16.mxu1 %v10303_v13  ;;  %10554 = vmatpush3.bf16.msra.mxu0 %v11217_v9  ;;  %v1548_v9 = vadd.f32 %v12605_v10, %v385_v62  ;;  %v11245_v25 = vld [vmem:[%s14106_s4 + $0x480] sm:$0xff]   ;;  %v11246_v13 = vld [vmem:[%s14106_s4 + $0x578] sm:$0xff]   ;;  %v11269_v62 = vld [vmem:[%s14106_s4 + $0x590] sm:$0xff]  }
 0x234   :  { %4501 = vmatprep.mubr.bf16.mxu0 %v10305_v17  ;;  %10533 = vmatprep.subr.bf16.mxu1 %v11218_v12  ;;  %v1773_v12 = vmax.f32 %v1464_v2, 0.0  ;;  %v11247_v10 = vld [vmem:[%s14106_s4 + $0x5f8] sm:$0xff]   ;;  %v1780_v17 = vmax.f32 %v1589_v24, 0.0  ;;  %v11274_v24 = vld [vmem:[%s14106_s4 + $0x540] sm:$0xff]  }
 0x235   :  { %10555 = vmatprep.subr.bf16.mxu0 %v11219_v16  ;;  %v1775_v16 = vmax.f32 %v1505_v4, 0.0  ;;  %v1778_v11 = vmax.f32 %v1548_v9, 0.0  ;;  %v12880_v2 = vld [vmem:[#allocation6 + $0x18] sm:$0xff]  ;;  %v11273_v9 = vld [vmem:[%s14106_s4 + $0x588] sm:$0xff]  }
 0x236   :  { %10534 = vmatpush3.bf16.msra.mxu1 %v11220_v18  ;;  %v11248_v18 = vld [vmem:[%s14106_s4 + $0x538] sm:$0xff]   ;;  %v409_v4 = vrot.slane %v12880_v2, %v12311_v59 }
 0x237   :  { %10556 = vmatpush3.bf16.msra.mxu0 %v11221_v19  ;;  %v12718_v23 = vpop.f32.mrf.mxu1  ;;  %v12720_v27 = vpop.f32.mrf.mxu0  ;;  %10535 = vmatprep.subr.bf16.mxu1 %v11222_v20  ;;  %v10302_v19 = vpack.c.bf16 %v1773_v12, %v1773_v12  ;;  %v11249_v20 = vld [vmem:[%s14106_s4 + $0x5b8] sm:$0xff]   ;;  %v11275_v12 = vld [vmem:[%s14106_s4 + $0x5c0] sm:$0xff]  }
 0x238   :  { %10557 = vmatprep.subr.bf16.mxu0 %v11223_v21  ;;  %v10304_v21 = vpack.c.bf16 %v1775_v16, %v1775_v16 }
 0x239   :  { %v12731_v30 = vpop.f32.mrf.mxu1  ;;  %v12733_v33 = vpop.f32.mrf.mxu0 }
 0x23a   :  { %10536 = vmatpush3.bf16.msra.mxu1 %v11224_v22  ;;  %v11250_v22 = vld [vmem:[%s14106_s4 + $0x570] sm:$0xff]  }
 0x23b   :  { %10558 = vmatpush3.bf16.msra.mxu0 %v11225_v28  ;;  %v1713_v36 = vpop.f32.mrf.mxu1  ;;  %v1754_v15 = vpop.f32.mrf.mxu0  ;;  %10537 = vmatprep.subr.bf16.mxu1 %v11226_v29  ;;  %v10307_v28 = vpack.c.bf16 %v1778_v11, %v1778_v11  ;;  %v11251_v29 = vld [vmem:[%s14106_s4 + $0x5f0] sm:$0xff]  }
 0x23c   :  { %10559 = vmatprep.subr.bf16.mxu0 %v11227_v14  ;;  %v10309_v14 = vpack.c.bf16 %v1780_v17, %v1780_v17  ;;  %v11253_v36 = vld [vmem:[%s14106_s4 + $0x5b0] sm:$0xff]   ;;  %v11254_v15 = vld [vmem:[%s14106_s4 + $0x568] sm:$0xff]  }
 0x23d   :  { %v1714_v41 = vpop.f32.mrf.mxu1  ;;  %v1755_v42 = vpop.f32.mrf.mxu0 }
 0x23e   :  { %10538 = vmatpush3.bf16.msra.mxu1 %v11228_v34  ;;  %v11252_v34 = vld [vmem:[%s14106_s4 + $0x530] sm:$0xff]   ;;  %v11258_v41 = vld [vmem:[%s14106_s4 + $0x560] sm:$0xff]  }
 0x23f   :  { %10560 = vmatpush3.bf16.msra.mxu0 %v11229_v37  ;;  %10539 = vmatprep.subr.bf16.mxu1 %v11230_v38  ;;  %v11255_v37 = vld [vmem:[%s14106_s4 + $0x5e8] sm:$0xff]   ;;  %v11259_v42 = vld [vmem:[%s14106_s4 + $0x5e0] sm:$0xff]  }
 0x240   :  { %10561 = vmatprep.subr.bf16.mxu0 %v11231_v6  ;;  %v11256_v38 = vld [vmem:[%s14106_s4 + $0x528] sm:$0xff]  }
 0x241   :  { %v11257_v6 = vld [vmem:[%s14106_s4 + $0x5a8] sm:$0xff]  }
 0x242   :  { %10540 = vmatpush3.bf16.msra.mxu1 %v11232_v43  ;;  %v11260_v43 = vld [vmem:[%s14106_s4 + $0x520] sm:$0xff]  }
 0x243   :  { %10562 = vmatpush3.bf16.msra.mxu0 %v11233_v49  ;;  %10541 = vmatprep.subr.bf16.mxu1 %v11234_v44  ;;  %v11261_v49 = vld [vmem:[%s14106_s4 + $0x5a0] sm:$0xff]   ;;  %v11262_v44 = vld [vmem:[%s14106_s4 + $0x558] sm:$0xff]  }
 0x244   :  { %10563 = vmatprep.subr.bf16.mxu0 %v11235_v48  ;;  %v11263_v48 = vld [vmem:[%s14106_s4 + $0x5d8] sm:$0xff]  }
 0x246   :  { %10542 = vmatpush3.bf16.msra.mxu1 %v11236_v51  ;;  %v11264_v51 = vld [vmem:[%s14106_s4 + $0x518] sm:$0xff]  }
 0x247   :  { %10564 = vmatpush3.bf16.msra.mxu0 %v11237_v50  ;;  %10543 = vmatprep.subr.bf16.mxu1 %v11238_v60  ;;  %v11266_v50 = vld [vmem:[%s14106_s4 + $0x550] sm:$0xff]  }
 0x248   :  { %10565 = vmatprep.subr.bf16.mxu0 %v11239_v61  ;;  %v11267_v60 = vld [vmem:[%s14106_s4 + $0x5d0] sm:$0xff]   ;;  %v381_v61 = vrot.slane %v12646_v35, %v12386_v63 }
 0x24a   :  { %10544 = vmatpush3.bf16.msra.mxu1 %v11240_v1  ;;  %v389_v1 = vrot.slane %v12646_v35, %v12389_v0  ;;  %v1546_v35 = vadd.f32 %v12592_v5, %v381_v61  ;;  %v1671_v5 = vadd.f32 %v12676_v47, %v409_v4  ;;  %v397_v61 = vrot.slane %v12880_v2, %v12302_v56 }
 0x24b   :  { %10566 = vmatpush3.bf16.msra.mxu0 %v11241_v3  ;;  %10545 = vmatprep.subr.bf16.mxu1 %v11242_v53  ;;  %v11271_v3 = vld [vmem:[%s14106_s4 + $0x5c8] sm:$0xff]   ;;  %v401_v53 = vrot.slane %v12880_v2, %v12308_v58  ;;  %v425_v4 = vrot.slane %v12880_v2, %v12343_v54 }
 0x24c   :  { %10567 = vmatprep.subr.bf16.mxu0 %v11243_v8  ;;  %v11272_v8 = vld [vmem:[%s14106_s4 + $0x508] sm:$0xff]   ;;  %v1777_v16 = vmax.f32 %v1546_v35, 0.0  ;;  %v1784_v17 = vmax.f32 %v1671_v5, 0.0  ;;  %v1628_v35 = vadd.f32 %v12659_v39, %v397_v61  ;;  %v11308_v5 = vld [vmem:[%s14106_s4 + $0x600] sm:$0xff]   ;;  %v11326_v61 = vld [vmem:[%s14106_s4 + $0x758] sm:$0xff]  }
 0x24d   :  { %v1753_v39 = vadd.f32 %v12733_v33, %v425_v4  ;;  %v11332_v4 = vld [vmem:[%s14106_s4 + $0x710] sm:$0xff]  }
 0x24e   :  { %10546 = vmatpush3.bf16.msra.mxu1 %v11244_v55  ;;  %v1587_v55 = vadd.f32 %v12594_v7, %v389_v1  ;;  %v11277_v7 = vld [vmem:[%s14106_s4 + $0x580] sm:$0xff]   ;;  %v405_v1 = vrot.slane %v12880_v2, %v12305_v57 }
 0x24f   :  { %10568 = vmatpush3.bf16.msra.mxu0 %v11245_v25  ;;  %10575 = vmatprep.subr.bf16.mxu1 %v11246_v13  ;;  %v1630_v25 = vadd.f32 %v12674_v45, %v401_v53  ;;  %v11276_v13 = vld [vmem:[%s14106_s4 + $0x500] sm:$0xff]   ;;  %v11279_v45 = vld [vmem:[%s14106_s4 + $0x6f8] sm:$0xff]   ;;  %v417_v53 = vrot.slane %v12880_v2, %v12340_v26 }
 0x250   :  { %10597 = vmatprep.subr.bf16.mxu0 %v11247_v10  ;;  %v11278_v10 = vld [vmem:[%s14106_s4 + $0x678] sm:$0xff]   ;;  %v1779_v11 = vmax.f32 %v1587_v55, 0.0  ;;  %v1669_v55 = vadd.f32 %v12661_v40, %v405_v1  ;;  %v11309_v40 = vld [vmem:[%s14106_s4 + $0x680] sm:$0xff]  }
 0x251   :  { %4462 = vmatmul.mubr.bf16.vlgmr.msra.gmra.mxu1 %v10302_v19  ;;  %v1782_v47 = vmax.f32 %v1630_v25, 0.0  ;;  %v10306_v19 = vpack.c.bf16 %v1777_v16, %v1777_v16  ;;  %v1712_v25 = vadd.f32 %v12731_v30, %v417_v53  ;;  %v11310_v16 = vld [vmem:[%s14106_s4 + $0x778] sm:$0xff]   ;;  %v11331_v53 = vld [vmem:[%s14106_s4 + $0x7d0] sm:$0xff]  }
 0x252   :  { %4502 = vmatmul.mubr.bf16.vlgmr.msra.gmra.mxu0 %v10304_v21  ;;  %10576 = vmatpush3.bf16.msra.mxu1 %v11248_v18  ;;  %v11280_v18 = vld [vmem:[%s14106_s4 + $0x638] sm:$0xff]   ;;  %v10308_v21 = vpack.c.bf16 %v1779_v11, %v1779_v11 }
 0x253   :  { %4541 = vmatprep.mubr.bf16.mxu1 %v10307_v28  ;;  %10598 = vmatpush3.bf16.msra.mxu0 %v11249_v20  ;;  %v11281_v20 = vld [vmem:[%s14106_s4 + $0x6b8] sm:$0xff]   ;;  %v10311_v28 = vpack.c.bf16 %v1782_v47, %v1782_v47  ;;  %v1786_v33 = vmax.f32 %v1712_v25, 0.0 }
 0x254   :  { %4581 = vmatprep.mubr.bf16.mxu0 %v10309_v14  ;;  %10577 = vmatprep.subr.bf16.mxu1 %v11250_v22  ;;  %v11282_v22 = vld [vmem:[%s14106_s4 + $0x670] sm:$0xff]   ;;  %v10313_v14 = vpack.c.bf16 %v1784_v17, %v1784_v17  ;;  %v11311_v30 = vld [vmem:[%s14106_s4 + $0x7f8] sm:$0xff]  }
 0x255   :  { %10599 = vmatprep.subr.bf16.mxu0 %v11251_v29  ;;  %v11283_v29 = vld [vmem:[%s14106_s4 + $0x6f0] sm:$0xff]   ;;  %v11312_v11 = vld [vmem:[%s14106_s4 + $0x738] sm:$0xff]  }
 0x256   :  { %10578 = vmatpush3.bf16.msra.mxu1 %v11252_v34  ;;  %v11284_v34 = vld [vmem:[%s14106_s4 + $0x630] sm:$0xff]   ;;  %v11313_v47 = vld [vmem:[%s14106_s4 + $0x7b8] sm:$0xff]  }
 0x257   :  { %10600 = vmatpush3.bf16.msra.mxu0 %v11253_v36  ;;  %10579 = vmatprep.subr.bf16.mxu1 %v11254_v15  ;;  %v11285_v36 = vld [vmem:[%s14106_s4 + $0x6b0] sm:$0xff]   ;;  %v11286_v15 = vld [vmem:[%s14106_s4 + $0x668] sm:$0xff]   ;;  %v11329_v1 = vld [vmem:[%s14106_s4 + $0x798] sm:$0xff]  }
 0x258   :  { %10601 = vmatprep.subr.bf16.mxu0 %v11255_v37  ;;  %v11287_v37 = vld [vmem:[%s14106_s4 + $0x6e8] sm:$0xff]  }
 0x25a   :  { %10580 = vmatpush3.bf16.msra.mxu1 %v11256_v38  ;;  %v11288_v38 = vld [vmem:[%s14106_s4 + $0x628] sm:$0xff]  }
 0x25b   :  { %10602 = vmatpush3.bf16.msra.mxu0 %v11257_v6  ;;  %10581 = vmatprep.subr.bf16.mxu1 %v11258_v41  ;;  %v11289_v6 = vld [vmem:[%s14106_s4 + $0x6a8] sm:$0xff]   ;;  %v11290_v41 = vld [vmem:[%s14106_s4 + $0x660] sm:$0xff]  }
 0x25c   :  { %10603 = vmatprep.subr.bf16.mxu0 %v11259_v42  ;;  %v11291_v42 = vld [vmem:[%s14106_s4 + $0x6e0] sm:$0xff]  }
 0x25e   :  { %10582 = vmatpush3.bf16.msra.mxu1 %v11260_v43  ;;  %v11292_v43 = vld [vmem:[%s14106_s4 + $0x620] sm:$0xff]  }
 0x25f   :  { %10604 = vmatpush3.bf16.msra.mxu0 %v11261_v49  ;;  %10583 = vmatprep.subr.bf16.mxu1 %v11262_v44  ;;  %v11293_v49 = vld [vmem:[%s14106_s4 + $0x6a0] sm:$0xff]   ;;  %v11294_v44 = vld [vmem:[%s14106_s4 + $0x658] sm:$0xff]  }
 0x260   :  { %10605 = vmatprep.subr.bf16.mxu0 %v11263_v48  ;;  %v11295_v48 = vld [vmem:[%s14106_s4 + $0x6d8] sm:$0xff]  }
 0x262   :  { %10584 = vmatpush3.bf16.msra.mxu1 %v11264_v51  ;;  %v11296_v51 = vld [vmem:[%s14106_s4 + $0x618] sm:$0xff]  }
 0x263   :  { %10606 = vmatpush3.bf16.msra.mxu0 %v11265_v52  ;;  %10585 = vmatprep.subr.bf16.mxu1 %v11266_v50  ;;  %v11297_v52 = vld [vmem:[%s14106_s4 + $0x698] sm:$0xff]   ;;  %v11298_v50 = vld [vmem:[%s14106_s4 + $0x650] sm:$0xff]  }
 0x264   :  { %10607 = vmatprep.subr.bf16.mxu0 %v11267_v60  ;;  %v11299_v60 = vld [vmem:[%s14106_s4 + $0x6d0] sm:$0xff]  }
 0x266   :  { %10586 = vmatpush3.bf16.msra.mxu1 %v11268_v31  ;;  %v11300_v31 = vld [vmem:[%s14106_s4 + $0x610] sm:$0xff]  }
 0x267   :  { %10608 = vmatpush3.bf16.msra.mxu0 %v11269_v62  ;;  %10587 = vmatprep.subr.bf16.mxu1 %v11270_v32  ;;  %v11301_v62 = vld [vmem:[%s14106_s4 + $0x690] sm:$0xff]   ;;  %v11302_v32 = vld [vmem:[%s14106_s4 + $0x648] sm:$0xff]  }
 0x268   :  { %10609 = vmatprep.subr.bf16.mxu0 %v11271_v3  ;;  %v11303_v3 = vld [vmem:[%s14106_s4 + $0x6c8] sm:$0xff]  }
 0x26a   :  { %10588 = vmatpush3.bf16.msra.mxu1 %v11272_v8  ;;  %v11304_v8 = vld [vmem:[%s14106_s4 + $0x608] sm:$0xff]  }
 0x26b   :  { %10610 = vmatpush3.bf16.msra.mxu0 %v11273_v9  ;;  %10589 = vmatprep.subr.bf16.mxu1 %v11274_v24  ;;  %v11305_v9 = vld [vmem:[%s14106_s4 + $0x688] sm:$0xff]   ;;  %v11306_v24 = vld [vmem:[%s14106_s4 + $0x640] sm:$0xff]  }
 0x26c   :  { %10611 = vmatprep.subr.bf16.mxu0 %v11275_v12  ;;  %v11307_v12 = vld [vmem:[%s14106_s4 + $0x6c0] sm:$0xff]  }
 0x26e   :  { %10590 = vmatpush3.bf16.msra.mxu1 %v11276_v13  ;;  %v1781_v13 = vmax.f32 %v1628_v35, 0.0  ;;  %v11333_v35 = vld [vmem:[%s14106_s4 + $0x790] sm:$0xff]  }
 0x26f   :  { %10612 = vmatpush3.bf16.msra.mxu0 %v11277_v7  ;;  %10619 = vmatprep.subr.bf16.mxu1 %v11278_v10  ;;  %v1783_v7 = vmax.f32 %v1669_v55, 0.0  ;;  %v1788_v10 = vmax.f32 %v1753_v39, 0.0  ;;  %v11335_v55 = vld [vmem:[%s14106_s4 + $0x7c8] sm:$0xff]  }
 0x270   :  { %10641 = vmatprep.subr.bf16.mxu0 %v11279_v45  ;;  %v10310_v45 = vpack.c.bf16 %v1781_v13, %v1781_v13  ;;  %v11337_v39 = vld [vmem:[%s14106_s4 + $0x788] sm:$0xff]   ;;  %v11339_v13 = vld [vmem:[%s14106_s4 + $0x7c0] sm:$0xff]  }
 0x271   :  { %4542 = vmatmul.mubr.bf16.vlgmr.msra.gmra.mxu1 %v10306_v19  ;;  %v10312_v17 = vpack.c.bf16 %v1783_v7, %v1783_v7  ;;  %v10315_v19 = vpack.c.bf16 %v1786_v33, %v1786_v33 }
 0x272   :  { %4582 = vmatmul.mubr.bf16.vlgmr.msra.gmra.mxu0 %v10308_v21  ;;  %10620 = vmatpush3.bf16.msra.mxu1 %v11280_v18  ;;  %v11314_v18 = vld [vmem:[%s14106_s4 + $0x770] sm:$0xff]  }
 0x273   :  { %4621 = vmatprep.mubr.bf16.mxu1 %v10311_v28  ;;  %10642 = vmatpush3.bf16.msra.mxu0 %v11281_v20  ;;  %v10317_v28 = vpack.c.bf16 %v1788_v10, %v1788_v10 }
 0x274   :  { %4661 = vmatprep.mubr.bf16.mxu0 %v10313_v14  ;;  %10621 = vmatprep.subr.bf16.mxu1 %v11282_v22  ;;  %v11315_v22 = vld [vmem:[%s14106_s4 + $0x7f0] sm:$0xff]  }
 0x275   :  { %10643 = vmatprep.subr.bf16.mxu0 %v11283_v29  ;;  %v11316_v29 = vld [vmem:[%s14106_s4 + $0x730] sm:$0xff]  }
 0x276   :  { %10622 = vmatpush3.bf16.msra.mxu1 %v11284_v34 }
 0x277   :  { %10644 = vmatpush3.bf16.msra.mxu0 %v11285_v36  ;;  %10623 = vmatprep.subr.bf16.mxu1 %v11286_v15  ;;  %v11317_v36 = vld [vmem:[%s14106_s4 + $0x7b0] sm:$0xff]   ;;  %v11318_v15 = vld [vmem:[%s14106_s4 + $0x768] sm:$0xff]  }
 0x278   :  { %10645 = vmatprep.subr.bf16.mxu0 %v11287_v37 }
 0x27a   :  { %10624 = vmatpush3.bf16.msra.mxu1 %v11288_v38 }
 0x27b   :  { %10646 = vmatpush3.bf16.msra.mxu0 %v11289_v6  ;;  %10625 = vmatprep.subr.bf16.mxu1 %v11290_v41  ;;  %v11319_v6 = vld [vmem:[%s14106_s4 + $0x7e8] sm:$0xff]  }
 0x27c   :  { %10647 = vmatprep.subr.bf16.mxu0 %v11291_v42 }
 0x27e   :  { %10626 = vmatpush3.bf16.msra.mxu1 %v11292_v43 }
 0x27f   :  { %10648 = vmatpush3.bf16.msra.mxu0 %v11293_v49  ;;  %10627 = vmatprep.subr.bf16.mxu1 %v11294_v44  ;;  %v11320_v49 = vld [vmem:[%s14106_s4 + $0x728] sm:$0xff]  }
 0x280   :  { %10649 = vmatprep.subr.bf16.mxu0 %v11295_v48 }
 0x282   :  { %10628 = vmatpush3.bf16.msra.mxu1 %v11296_v51  ;;  %v11321_v51 = vld [vmem:[%s14106_s4 + $0x7a8] sm:$0xff]  }
 0x283   :  { %10650 = vmatpush3.bf16.msra.mxu0 %v11297_v52  ;;  %10629 = vmatprep.subr.bf16.mxu1 %v11298_v50  ;;  %v11322_v52 = vld [vmem:[%s14106_s4 + $0x760] sm:$0xff]  }
 0x284   :  { %10651 = vmatprep.subr.bf16.mxu0 %v11299_v60  ;;  %v11323_v50 = vld [vmem:[%s14106_s4 + $0x7e0] sm:$0xff]  }
 0x285   :  { %v11324_v60 = vld [vmem:[%s14106_s4 + $0x720] sm:$0xff]  }
 0x286   :  { %10630 = vmatpush3.bf16.msra.mxu1 %v11300_v31  ;;  %v11325_v31 = vld [vmem:[%s14106_s4 + $0x7a0] sm:$0xff]  }
 0x287   :  { %10652 = vmatpush3.bf16.msra.mxu0 %v11301_v62  ;;  %10631 = vmatprep.subr.bf16.mxu1 %v11302_v32  ;;  %v11327_v62 = vld [vmem:[%s14106_s4 + $0x7d8] sm:$0xff]  }
 0x288   :  { %10653 = vmatprep.subr.bf16.mxu0 %v11303_v3  ;;  %v11328_v32 = vld [vmem:[%s14106_s4 + $0x718] sm:$0xff]   ;;  %v11330_v3 = vld [vmem:[%s14106_s4 + $0x750] sm:$0xff]  }
 0x28a   :  { %10632 = vmatpush3.bf16.msra.mxu1 %v11304_v8  ;;  %v413_v8 = vrot.slane %v12880_v2, %v12386_v63 }
 0x28b   :  { %10654 = vmatpush3.bf16.msra.mxu0 %v11305_v9  ;;  %10633 = vmatprep.subr.bf16.mxu1 %v11306_v24  ;;  %v11334_v9 = vld [vmem:[%s14106_s4 + $0x748] sm:$0xff]   ;;  %v421_v24 = vrot.slane %v12880_v2, %v12389_v0  ;;  %v11338_v2 = vld [vmem:[%s14106_s4 + $0x740] sm:$0xff]  }
 0x28c   :  { %10655 = vmatprep.subr.bf16.mxu0 %v11307_v12  ;;  %v11336_v12 = vld [vmem:[%s14106_s4 + $0x708] sm:$0xff]   ;;  %v1710_v25 = vadd.f32 %v12718_v23, %v413_v8  ;;  %v11340_v23 = vld [vmem:[%s14106_s4 + $0x700] sm:$0xff]  }
 0x28e   :  { %10634 = vmatpush3.bf16.msra.mxu1 %v11308_v5  ;;  %v1751_v5 = vadd.f32 %v12720_v27, %v421_v24 }
 0x28f   :  { %10656 = vmatpush3.bf16.msra.mxu0 %v11309_v40  ;;  %10663 = vmatprep.subr.bf16.mxu1 %v11310_v16  ;;  %v1785_v40 = vmax.f32 %v1710_v25, 0.0  ;;  %v11341_v16 = vld [vmem:[%s14106_s4 + $0x780] sm:$0xff]   ;;  %v4783_v25 = vld [vmem:[#allocation8 + $0x108] sm:$0xff] }
 0x290   :  { %10685 = vmatprep.subr.bf16.mxu0 %v11311_v30  ;;  %v1787_v7 = vmax.f32 %v1751_v5, 0.0  ;;  %v4799_v5 = vld [vmem:[#allocation8 + $0x188] sm:$0xff] }
 0x291   :  { %4622 = vmatmul.mubr.bf16.vlgmr.msra.gmra.mxu1 %v10310_v45  ;;  %v10371_v20 = vpop.f32.mrf.mxu1  ;;  %v10393_v21 = vpop.f32.mrf.mxu0  ;;  %v10314_v27 = vpack.c.bf16 %v1785_v40, %v1785_v40 }
 0x292   :  { %4662 = vmatmul.mubr.bf16.vlgmr.msra.gmra.mxu0 %v10312_v17  ;;  %10664 = vmatpush3.bf16.msra.mxu1 %v11312_v11  ;;  %v10316_v30 = vpack.c.bf16 %v1787_v7, %v1787_v7  ;;  %v9840_v7 = vcombine.high %v4783_v25, %v4799_v5 }
 0x293   :  { %4701 = vmatprep.mubr.bf16.mxu1 %v10315_v19  ;;  %10686 = vmatpush3.bf16.msra.mxu0 %v11313_v47  ;;  %v10372_v14 = vpop.f32.mrf.mxu1  ;;  %v10394_v34 = vpop.f32.mrf.mxu0 }
 0x294   :  { %4741 = vmatprep.mubr.bf16.mxu0 %v10317_v28  ;;  %v10373_v37 = vadd.f32 %v10372_v14, %v10371_v20  ;;  %v10395_v38 = vadd.f32 %v10394_v34, %v10393_v21  ;;  %10665 = vmatprep.subr.bf16.mxu1 %v11314_v18 }
 0x295   :  { %10687 = vmatprep.subr.bf16.mxu0 %v11315_v22  ;;  %v10374_v41 = vpop.f32.mrf.mxu1  ;;  %v10396_v42 = vpop.f32.mrf.mxu0 }
 0x296   :  { %v13049_v43 = vadd.f32 %v10395_v38, %v10373_v37  ;;  %10666 = vmatpush3.bf16.msra.mxu1 %v11316_v29 }
 0x297   :  { %10688 = vmatpush3.bf16.msra.mxu0 %v11317_v36  ;;  %v10375_v44 = vpop.f32.mrf.mxu1  ;;  %v10397_v48 = vpop.f32.mrf.mxu0  ;;  %10667 = vmatprep.subr.bf16.mxu1 %v11318_v15 }
 0x298   :  { %10689 = vmatprep.subr.bf16.mxu0 %v11319_v6  ;;  %v4846_v48 = vld [vmem:[#allocation8 + $0x300] sm:$0xff] }
 0x29a   :  { %10668 = vmatpush3.bf16.msra.mxu1 %v11320_v49 }
 0x29b   :  { %10690 = vmatpush3.bf16.msra.mxu0 %v11321_v51  ;;  %10669 = vmatprep.subr.bf16.mxu1 %v11322_v52  ;;  %v4862_v51 = vld [vmem:[#allocation8 + $0x380] sm:$0xff]  ;;  %v4847_v52 = vld [vmem:[#allocation8 + $0x308] sm:$0xff] }
 0x29c   :  { %10691 = vmatprep.subr.bf16.mxu0 %v11323_v50  ;;  %v9901_v50 = vcombine.low %v4846_v48, %v4862_v51 }
 0x29e   :  { %10670 = vmatpush3.bf16.msra.mxu1 %v11324_v60  ;;  %v4863_v60 = vld [vmem:[#allocation8 + $0x388] sm:$0xff] }
 0x29f   :  { %10692 = vmatpush3.bf16.msra.mxu0 %v11325_v31  ;;  %10671 = vmatprep.subr.bf16.mxu1 %v11326_v61  ;;  %v4814_v31 = vld [vmem:[#allocation8 + $0x200] sm:$0xff] }
 0x2a0   :  { %10693 = vmatprep.subr.bf16.mxu0 %v11327_v62  ;;  %v4830_v61 = vld [vmem:[#allocation8 + $0x280] sm:$0xff]  ;;  %v9903_v62 = vcombine.low %v4847_v52, %v4863_v60 }
 0x2a1   :  { %v9869_v8 = vcombine.low %v4814_v31, %v4830_v61 }
 0x2a2   :  { %10672 = vmatpush3.bf16.msra.mxu1 %v11328_v32  ;;  %v9904_v32 = vcombine.high %v4847_v52, %v4863_v60 }
 0x2a3   :  { %10694 = vmatpush3.bf16.msra.mxu0 %v11329_v1  ;;  %10673 = vmatprep.subr.bf16.mxu1 %v11330_v3  ;;  %v9870_v1 = vcombine.high %v4814_v31, %v4830_v61  ;;  %v4815_v3 = vld [vmem:[#allocation8 + $0x208] sm:$0xff] }
 0x2a4   :  { %10695 = vmatprep.subr.bf16.mxu0 %v11331_v53  ;;  %v4831_v53 = vld [vmem:[#allocation8 + $0x288] sm:$0xff] }
 0x2a6   :  { %10674 = vmatpush3.bf16.msra.mxu1 %v11332_v4  ;;  %v9872_v4 = vcombine.high %v4815_v3, %v4831_v53 }
 0x2a7   :  { %10696 = vmatpush3.bf16.msra.mxu0 %v11333_v35  ;;  %10675 = vmatprep.subr.bf16.mxu1 %v11334_v9  ;;  %v9871_v35 = vcombine.low %v4815_v3, %v4831_v53 }
 0x2a8   :  { %10697 = vmatprep.subr.bf16.mxu0 %v11335_v55  ;;  %v4782_v55 = vld [vmem:[#allocation8 + $0x100] sm:$0xff] }
 0x2aa   :  { %10676 = vmatpush3.bf16.msra.mxu1 %v11336_v12  ;;  %v4798_v12 = vld [vmem:[#allocation8 + $0x180] sm:$0xff] }
 0x2ab   :  { %10698 = vmatpush3.bf16.msra.mxu0 %v11337_v39  ;;  %10677 = vmatprep.subr.bf16.mxu1 %v11338_v2  ;;  %v9838_v2 = vcombine.high %v4782_v55, %v4798_v12  ;;  %v9837_v40 = vcombine.low %v4782_v55, %v4798_v12 }
 0x2ac   :  { %10699 = vmatprep.subr.bf16.mxu0 %v11339_v13 }
 0x2ae   :  { %10678 = vmatpush3.bf16.msra.mxu1 %v11340_v23 }
 0x2af   :  { %10700 = vmatpush3.bf16.msra.mxu0 %v11341_v16  ;;  %v9839_v16 = vcombine.low %v4783_v25, %v4799_v5 }
 0x2b0   :  { %5738 = vmatprep.subr.bf16.mxu0 %v9904_v32 }
 0x2b1   :  { %v10415_v33 = vpop.f32.mrf.mxu1  ;;  %v10437_v10 = vpop.f32.mrf.mxu0  ;;  %4702 = vmatmul.mubr.bf16.vlgmr.msra.gmra.mxu1 %v10314_v27 }
 0x2b2   :  { %4742 = vmatmul.mubr.bf16.vlgmr.msra.gmra.mxu0 %v10316_v30  ;;  %5721 = vmatprep.mubr.bf16.mxu1 %v11694_v46 }
 0x2b3   :  { %v10416_v11 = vpop.f32.mrf.mxu1  ;;  %v10438_v45 = vpop.f32.mrf.mxu0  ;;  %5762 = vmatprep.mubr.bf16.mxu0 %v11694_v46  ;;  %5739 = vmatpush1.bf16.msra.mxu0 %v9903_v62 }
 0x2b4   :  { %v10417_v47 = vadd.f32 %v10416_v11, %v10415_v33  ;;  %v10439_v17 = vadd.f32 %v10438_v45, %v10437_v10  ;;  %5740 = vmatprep.subr.bf16.mxu0 %v9872_v4  ;;  %v4750_v11 = vld [vmem:[#allocation8] sm:$0xff] }
 0x2b5   :  { %v10418_v18 = vpop.f32.mrf.mxu1  ;;  %v10440_v19 = vpop.f32.mrf.mxu0  ;;  %v4766_v45 = vld [vmem:[#allocation8 + $0x80] sm:$0xff] }
 0x2b6   :  { %v4224_v20 = vadd.f32 %v10417_v47, %v13049_v43  ;;  %v9902_v43 = vcombine.high %v4846_v48, %v4862_v51  ;;  %v4751_v47 = vld [vmem:[#allocation8 + $0x8] sm:$0xff]  ;;  %v9806_v18 = vcombine.high %v4750_v11, %v4766_v45 }
 0x2b7   :  { %v10419_v21 = vpop.f32.mrf.mxu1  ;;  %v10441_v22 = vpop.f32.mrf.mxu0  ;;  %5741 = vmatpush1.bf16.msra.mxu0 %v9871_v35  ;;  %v4767_v19 = vld [vmem:[#allocation8 + $0x88] sm:$0xff] }
 0x2b8   :  { %v4264_v28 = vadd.f32 %v10439_v17, %v4224_v20  ;;  %5697 = vmatprep.subr.bf16.mxu1 %v9902_v43  ;;  %5742 = vmatprep.subr.bf16.mxu0 %v9840_v7  ;;  %v9805_v22 = vcombine.low %v4750_v11, %v4766_v45 }
 0x2b9   :  { %5698 = vmatpush1.bf16.msra.mxu1 %v9901_v50 }
 0x2ba   :  { %5699 = vmatprep.subr.bf16.mxu1 %v9870_v1 }
 0x2bb   :  { %5743 = vmatpush1.bf16.msra.mxu0 %v9839_v16 }
 0x2bd   :  { %5700 = vmatpush1.bf16.msra.mxu1 %v9869_v8 }
 0x2be   :  { %5701 = vmatprep.subr.bf16.mxu1 %v9838_v2 }
 0x2c1   :  { %5702 = vmatpush1.bf16.msra.mxu1 %v9837_v40 }
 0x2c2   :  { %5703 = vmatprep.subr.bf16.mxu1 %v9806_v18 }
 0x2c5   :  { %5704 = vmatpush1.bf16.msra.mxu1 %v9805_v22 }
 0x2d1   :  { %v10459_v29 = vpop.f32.mrf.mxu1 }
 0x2d2   :  { %v10481_v14 = vpop.f32.mrf.mxu0 }
 0x2d3   :  { %v10460_v34 = vpop.f32.mrf.mxu1 }
 0x2d4   :  { %v10461_v36 = vadd.f32 %v10460_v34, %v10459_v29  ;;  %v10482_v15 = vpop.f32.mrf.mxu0  ;;  %v9808_v29 = vcombine.high %v4751_v47, %v4767_v19  ;;  %v13128_v34 = vld [vmem:[#allocation8 + $0x390] sm:$0xff] }
 0x2d5   :  { %v10483_v37 = vadd.f32 %v10482_v15, %v10481_v14  ;;  %v10462_v38 = vpop.f32.mrf.mxu1  ;;  %v13126_v14 = vld [vmem:[#allocation8 + $0x310] sm:$0xff] }
 0x2d6   :  { %v4304_v6 = vadd.f32 %v10461_v36, %v4264_v28  ;;  %v10484_v41 = vpop.f32.mrf.mxu0  ;;  %v9807_v28 = vcombine.low %v4751_v47, %v4767_v19  ;;  %5744 = vmatprep.subr.bf16.mxu0 %v9808_v29  ;;  %v13130_v36 = vld [vmem:[#allocation8 + $0x318] sm:$0xff]  ;;  %v9905_v15 = vcombine.low %v13126_v14, %v13128_v34 }
 0x2d7   :  { %v10463_v42 = vpop.f32.mrf.mxu1  ;;  %v13136_v38 = vld [vmem:[#allocation8 + $0x398] sm:$0xff] }
 0x2d8   :  { %v4344_v49 = vadd.f32 %v10483_v37, %v4304_v6  ;;  %v10485_v44 = vpop.f32.mrf.mxu0  ;;  %5745 = vmatpush1.bf16.msra.mxu0 %v9807_v28  ;;  %v9906_v37 = vcombine.high %v13126_v14, %v13128_v34  ;;  %v9907_v6 = vcombine.low %v13130_v36, %v13136_v38  ;;  %v9908_v41 = vcombine.high %v13130_v36, %v13136_v38  ;;  %v4816_v28 = vld [vmem:[#allocation8 + $0x210] sm:$0xff]  ;;  %v4850_v38 = vld [vmem:[#allocation8 + $0x320] sm:$0xff] }
 0x2da   :  { %5779 = vmatprep.subr.bf16.mxu1 %v9906_v37  ;;  %5820 = vmatprep.subr.bf16.mxu0 %v9908_v41  ;;  %v4832_v37 = vld [vmem:[#allocation8 + $0x290] sm:$0xff]  ;;  %v4817_v41 = vld [vmem:[#allocation8 + $0x218] sm:$0xff] }
 0x2f1   :  { %v10503_v9 = vpop.f32.mrf.mxu1 }
 0x2f2   :  { %v10525_v24 = vpop.f32.mrf.mxu0 }
 0x2f3   :  { %v10504_v39 = vpop.f32.mrf.mxu1 }
 0x2f4   :  { %v10505_v13 = vadd.f32 %v10504_v39, %v10503_v9  ;;  %v10526_v23 = vpop.f32.mrf.mxu0 }
 0x2f5   :  { %v10527_v27 = vadd.f32 %v10526_v23, %v10525_v24  ;;  %v10506_v30 = vpop.f32.mrf.mxu1 }
 0x2f6   :  { %v4384_v33 = vadd.f32 %v10505_v13, %v4344_v49  ;;  %v10528_v10 = vpop.f32.mrf.mxu0 }
 0x2f7   :  { %v10507_v17 = vpop.f32.mrf.mxu1 }
 0x2f8   :  { %v4424_v20 = vadd.f32 %v10527_v27, %v4384_v33  ;;  %v10529_v21 = vpop.f32.mrf.mxu0 }
 0x311   :  { %v10547_v42 = vpop.f32.mrf.mxu1 }
 0x312   :  { %v10569_v49 = vpop.f32.mrf.mxu0 }
 0x313   :  { %v10548_v44 = vpop.f32.mrf.mxu1 }
 0x314   :  { %v10549_v48 = vadd.f32 %v10548_v44, %v10547_v42  ;;  %v10570_v51 = vpop.f32.mrf.mxu0  ;;  %v4833_v42 = vld [vmem:[#allocation8 + $0x298] sm:$0xff] }
 0x315   :  { %v10571_v52 = vadd.f32 %v10570_v51, %v10569_v49  ;;  %v10550_v50 = vpop.f32.mrf.mxu1  ;;  %v9874_v51 = vcombine.high %v4816_v28, %v4832_v37 }
 0x316   :  { %v4464_v43 = vadd.f32 %v10549_v48, %v4424_v20  ;;  %v10572_v60 = vpop.f32.mrf.mxu0  ;;  %v4784_v50 = vld [vmem:[#allocation8 + $0x110] sm:$0xff] }
 0x317   :  { %v10551_v31 = vpop.f32.mrf.mxu1  ;;  %v4785_v60 = vld [vmem:[#allocation8 + $0x118] sm:$0xff] }
 0x318   :  { %v4504_v61 = vadd.f32 %v10571_v52, %v4464_v43  ;;  %v10573_v62 = vpop.f32.mrf.mxu0  ;;  %v9876_v52 = vcombine.high %v4817_v41, %v4833_v42  ;;  %v4800_v43 = vld [vmem:[#allocation8 + $0x190] sm:$0xff]  ;;  %v4801_v31 = vld [vmem:[#allocation8 + $0x198] sm:$0xff] }
 0x319   :  { %v9875_v62 = vcombine.low %v4817_v41, %v4833_v42  ;;  %v9841_v14 = vcombine.low %v4784_v50, %v4800_v43  ;;  %v9843_v34 = vcombine.low %v4785_v60, %v4801_v31  ;;  %v4852_v41 = vld [vmem:[#allocation8 + $0x330] sm:$0xff] }
 0x31a   :  { %v4868_v42 = vld [vmem:[#allocation8 + $0x3b0] sm:$0xff] }
 0x331   :  { %v10591_v32 = vpop.f32.mrf.mxu1 }
 0x332   :  { %v10613_v1 = vpop.f32.mrf.mxu0 }
 0x333   :  { %v10592_v3 = vpop.f32.mrf.mxu1 }
 0x334   :  { %v10614_v53 = vpop.f32.mrf.mxu0  ;;  %v10593_v23 = vadd.f32 %v10592_v3, %v10591_v32  ;;  %v9842_v32 = vcombine.high %v4784_v50, %v4800_v43  ;;  %v4752_v3 = vld [vmem:[#allocation8 + $0x10] sm:$0xff]  ;;  %v9914_v50 = vcombine.high %v4852_v41, %v4868_v42 }
 0x335   :  { %v10594_v4 = vpop.f32.mrf.mxu1  ;;  %v10615_v16 = vadd.f32 %v10614_v53, %v10613_v1  ;;  %v9844_v1 = vcombine.high %v4785_v60, %v4801_v31  ;;  %v4768_v53 = vld [vmem:[#allocation8 + $0x90] sm:$0xff] }
 0x336   :  { %v10616_v8 = vpop.f32.mrf.mxu0  ;;  %v4544_v40 = vadd.f32 %v10593_v23, %v4504_v61  ;;  %v9873_v61 = vcombine.low %v4816_v28, %v4832_v37  ;;  %v4753_v4 = vld [vmem:[#allocation8 + $0x18] sm:$0xff]  ;;  %v9810_v36 = vcombine.high %v4752_v3, %v4768_v53  ;;  %v4820_v60 = vld [vmem:[#allocation8 + $0x230] sm:$0xff] }
 0x337   :  { %v10595_v35 = vpop.f32.mrf.mxu1  ;;  %v4769_v8 = vld [vmem:[#allocation8 + $0x98] sm:$0xff]  ;;  %v4836_v31 = vld [vmem:[#allocation8 + $0x2b0] sm:$0xff] }
 0x338   :  { %v10617_v9 = vpop.f32.mrf.mxu0  ;;  %v4584_v27 = vadd.f32 %v10615_v16, %v4544_v40  ;;  %v4851_v35 = vld [vmem:[#allocation8 + $0x328] sm:$0xff] }
 0x339   :  { %v4867_v9 = vld [vmem:[#allocation8 + $0x3a8] sm:$0xff] }
 0x33a   :  { %v9911_v40 = vcombine.low %v4851_v35, %v4867_v9 }
 0x351   :  { %v10635_v24 = vpop.f32.mrf.mxu1 }
 0x352   :  { %v10657_v55 = vpop.f32.mrf.mxu0 }
 0x353   :  { %v10636_v12 = vpop.f32.mrf.mxu1 }
 0x354   :  { %v10658_v25 = vpop.f32.mrf.mxu0  ;;  %v10637_v7 = vadd.f32 %v10636_v12, %v10635_v24  ;;  %v9809_v24 = vcombine.low %v4752_v3, %v4768_v53  ;;  %v9882_v3 = vcombine.high %v4820_v60, %v4836_v31 }
 0x355   :  { %v10638_v39 = vpop.f32.mrf.mxu1  ;;  %v10659_v10 = vadd.f32 %v10658_v25, %v10657_v55  ;;  %v9811_v55 = vcombine.low %v4753_v4, %v4769_v8  ;;  %v9912_v25 = vcombine.high %v4851_v35, %v4867_v9  ;;  %v4756_v35 = vld [vmem:[#allocation8 + $0x30] sm:$0xff] }
 0x356   :  { %v10660_v2 = vpop.f32.mrf.mxu0  ;;  %v4624_v30 = vadd.f32 %v10637_v7, %v4584_v27  ;;  %v4818_v39 = vld [vmem:[#allocation8 + $0x220] sm:$0xff]  ;;  %v4772_v9 = vld [vmem:[#allocation8 + $0xb0] sm:$0xff] }
 0x357   :  { %v10639_v5 = vpop.f32.mrf.mxu1  ;;  %v4834_v2 = vld [vmem:[#allocation8 + $0x2a0] sm:$0xff] }
 0x358   :  { %v10661_v13 = vpop.f32.mrf.mxu0  ;;  %v4664_v47 = vadd.f32 %v10659_v10, %v4624_v30  ;;  %v4819_v5 = vld [vmem:[#allocation8 + $0x228] sm:$0xff]  ;;  %v9878_v16 = vcombine.high %v4818_v39, %v4834_v2  ;;  %v4786_v27 = vld [vmem:[#allocation8 + $0x120] sm:$0xff] }
 0x359   :  { %v4835_v13 = vld [vmem:[#allocation8 + $0x2a8] sm:$0xff]  ;;  %v4802_v30 = vld [vmem:[#allocation8 + $0x1a0] sm:$0xff] }
 0x35a   :  { %v9880_v7 = vcombine.high %v4819_v5, %v4835_v13  ;;  %v4803_v10 = vld [vmem:[#allocation8 + $0x1a8] sm:$0xff] }
 0x371   :  { %v10679_v33 = vpop.f32.mrf.mxu1 }
 0x372   :  { %v10701_v11 = vpop.f32.mrf.mxu0 }
 0x373   :  { %v10680_v45 = vpop.f32.mrf.mxu1 }
 0x374   :  { %v10681_v17 = vadd.f32 %v10680_v45, %v10679_v33  ;;  %v10702_v18 = vpop.f32.mrf.mxu0  ;;  %v4787_v33 = vld [vmem:[#allocation8 + $0x128] sm:$0xff]  ;;  %v9879_v45 = vcombine.low %v4819_v5, %v4835_v13  ;;  %v4854_v5 = vld [vmem:[#allocation8 + $0x340] sm:$0xff] }
 0x375   :  { %v10682_v19 = vpop.f32.mrf.mxu1  ;;  %v10703_v21 = vadd.f32 %v10702_v18, %v10701_v11  ;;  %v9877_v11 = vcombine.low %v4818_v39, %v4834_v2  ;;  %v4754_v18 = vld [vmem:[#allocation8 + $0x20] sm:$0xff]  ;;  %v9847_v28 = vcombine.low %v4787_v33, %v4803_v10  ;;  %v9818_v39 = vcombine.high %v4756_v35, %v4772_v9 }
 0x376   :  { %v4704_v20 = vadd.f32 %v10681_v17, %v4664_v47  ;;  %v10704_v22 = vpop.f32.mrf.mxu0  ;;  %v9846_v47 = vcombine.high %v4786_v27, %v4802_v30  ;;  %v9848_v17 = vcombine.high %v4787_v33, %v4803_v10  ;;  %v4770_v19 = vld [vmem:[#allocation8 + $0xa0] sm:$0xff] }
 0x377   :  { %v10683_v29 = vpop.f32.mrf.mxu1  ;;  %v9845_v22 = vcombine.low %v4786_v27, %v4802_v30  ;;  %v4870_v13 = vld [vmem:[#allocation8 + $0x3c0] sm:$0xff] }
 0x378   :  { %v4744_v49 = vadd.f32 %v10703_v21, %v4704_v20  ;;  %v10705_v44 = vpop.f32.mrf.mxu0  ;;  %v4755_v20 = vld [vmem:[#allocation8 + $0x28] sm:$0xff]  ;;  %v9814_v29 = vcombine.high %v4754_v18, %v4770_v19  ;;  %v9918_v27 = vcombine.high %v4854_v5, %v4870_v13  ;;  %v4822_v33 = vld [vmem:[#allocation8 + $0x240] sm:$0xff] }
 0x379   :  { %v4771_v21 = vld [vmem:[#allocation8 + $0xa8] sm:$0xff]  ;;  %v4869_v44 = vld [vmem:[#allocation8 + $0x3b8] sm:$0xff]  ;;  %v4838_v10 = vld [vmem:[#allocation8 + $0x2c0] sm:$0xff] }
 0x37a   :  { %v13142_v48 = vpack.c.bf16 %v4744_v49, %v4744_v49  ;;  %v9816_v37 = vcombine.high %v4755_v20, %v4771_v21  ;;  %v4853_v49 = vld [vmem:[#allocation8 + $0x338] sm:$0xff] }
 0x37b   :  { %v9916_v43 = vcombine.high %v4853_v49, %v4869_v44 }
 0x37c   :  { %9933 = vmatmul.mubr.msk.bf16.vlgmr.msra.gmra.mxu1 %vm117_vm1, %v13142_v48  ;;  %9934 = vmatmul.mubr.msk.bf16.vlgmr.msra.gmra.mxu0 %vm117_vm1, %v13142_v48 }
 0x37d   :  { %5780 = vmatpush1.bf16.msra.mxu1 %v9905_v15  ;;  %5821 = vmatpush1.bf16.msra.mxu0 %v9907_v6  ;;  %v9812_v15 = vcombine.high %v4753_v4, %v4769_v8  ;;  %v4866_v6 = vld [vmem:[#allocation8 + $0x3a0] sm:$0xff]  ;;  %v4788_v4 = vld [vmem:[#allocation8 + $0x130] sm:$0xff] }
 0x37e   :  { %5781 = vmatprep.subr.bf16.mxu1 %v9874_v51  ;;  %5822 = vmatprep.subr.bf16.mxu0 %v9876_v52  ;;  %v9910_v12 = vcombine.high %v4850_v38, %v4866_v6  ;;  %v9909_v23 = vcombine.low %v4850_v38, %v4866_v6  ;;  %v9813_v51 = vcombine.low %v4754_v18, %v4770_v19  ;;  %v4804_v8 = vld [vmem:[#allocation8 + $0x1b0] sm:$0xff] }
 0x37f   :  { %5803 = vmatprep.mubr.bf16.mxu1 %v11694_v46  ;;  %5844 = vmatprep.mubr.bf16.mxu0 %v11694_v46  ;;  %v9815_v52 = vcombine.low %v4755_v20, %v4771_v21  ;;  %v9850_v38 = vcombine.high %v4788_v4, %v4804_v8  ;;  %v9886_v18 = vcombine.high %v4822_v33, %v4838_v10  ;;  %v4790_v20 = vld [vmem:[#allocation8 + $0x140] sm:$0xff] }
 0x380   :  { %v4806_v21 = vld [vmem:[#allocation8 + $0x1c0] sm:$0xff] }
 0x381   :  { %5782 = vmatpush1.bf16.msra.mxu1 %v9873_v61  ;;  %5823 = vmatpush1.bf16.msra.mxu0 %v9875_v62  ;;  %v4821_v61 = vld [vmem:[#allocation8 + $0x238] sm:$0xff] }
 0x382   :  { %5783 = vmatprep.subr.bf16.mxu1 %v9842_v32  ;;  %5824 = vmatprep.subr.bf16.mxu0 %v9844_v1  ;;  %v4837_v62 = vld [vmem:[#allocation8 + $0x2b8] sm:$0xff]  ;;  %v9913_v32 = vcombine.low %v4852_v41, %v4868_v42  ;;  %v9915_v1 = vcombine.low %v4853_v49, %v4869_v44  ;;  %v9854_v41 = vcombine.high %v4790_v20, %v4806_v21  ;;  %v4758_v49 = vld [vmem:[#allocation8 + $0x40] sm:$0xff] }
 0x383   :  { %v9884_v53 = vcombine.high %v4821_v61, %v4837_v62  ;;  %v4774_v44 = vld [vmem:[#allocation8 + $0xc0] sm:$0xff] }
 0x385   :  { %5784 = vmatpush1.bf16.msra.mxu1 %v9841_v14  ;;  %5825 = vmatpush1.bf16.msra.mxu0 %v9843_v34  ;;  %v4789_v14 = vld [vmem:[#allocation8 + $0x138] sm:$0xff] }
 0x386   :  { %5785 = vmatprep.subr.bf16.mxu1 %v9810_v36  ;;  %5826 = vmatprep.subr.bf16.mxu0 %v9812_v15  ;;  %v4805_v34 = vld [vmem:[#allocation8 + $0x1b8] sm:$0xff]  ;;  %v9881_v36 = vcombine.low %v4820_v60, %v4836_v31  ;;  %v9883_v15 = vcombine.low %v4821_v61, %v4837_v62  ;;  %v9822_v60 = vcombine.high %v4758_v49, %v4774_v44  ;;  %v4856_v61 = vld [vmem:[#allocation8 + $0x350] sm:$0xff] }
 0x387   :  { %v9852_v6 = vcombine.high %v4789_v14, %v4805_v34  ;;  %v4872_v62 = vld [vmem:[#allocation8 + $0x3d0] sm:$0xff] }
 0x389   :  { %5786 = vmatpush1.bf16.msra.mxu1 %v9809_v24  ;;  %5827 = vmatpush1.bf16.msra.mxu0 %v9811_v55  ;;  %v4757_v24 = vld [vmem:[#allocation8 + $0x38] sm:$0xff] }
 0x38a   :  { %5861 = vmatprep.subr.bf16.mxu1 %v9910_v12  ;;  %5902 = vmatprep.subr.bf16.mxu0 %v9912_v25  ;;  %v4773_v55 = vld [vmem:[#allocation8 + $0xb8] sm:$0xff]  ;;  %v9849_v12 = vcombine.low %v4788_v4, %v4804_v8  ;;  %v9851_v25 = vcombine.low %v4789_v14, %v4805_v34  ;;  %v9922_v4 = vcombine.high %v4856_v61, %v4872_v62  ;;  %v4824_v14 = vld [vmem:[#allocation8 + $0x250] sm:$0xff] }
 0x38b   :  { %v9820_v2 = vcombine.high %v4757_v24, %v4773_v55  ;;  %v4840_v34 = vld [vmem:[#allocation8 + $0x2d0] sm:$0xff] }
 0x38c   :  { %9935 = vmatmul.mubr.msk.bf16.vlgmr.msra.gmra.mxu1 %vm117_vm1, %v13142_v48  ;;  %9936 = vmatmul.mubr.msk.bf16.vlgmr.msra.gmra.mxu0 %vm117_vm1, %v13142_v48 }
 0x38d   :  { %5862 = vmatpush1.bf16.msra.mxu1 %v9909_v23  ;;  %5903 = vmatpush1.bf16.msra.mxu0 %v9911_v40  ;;  %v4855_v23 = vld [vmem:[#allocation8 + $0x348] sm:$0xff] }
 0x38e   :  { %5863 = vmatprep.subr.bf16.mxu1 %v9878_v16  ;;  %5904 = vmatprep.subr.bf16.mxu0 %v9880_v7  ;;  %v4871_v40 = vld [vmem:[#allocation8 + $0x3c8] sm:$0xff]  ;;  %v9817_v16 = vcombine.low %v4756_v35, %v4772_v9  ;;  %v9819_v7 = vcombine.low %v4757_v24, %v4773_v55  ;;  %v9890_v35 = vcombine.high %v4824_v14, %v4840_v34  ;;  %v4792_v24 = vld [vmem:[#allocation8 + $0x150] sm:$0xff] }
 0x38f   :  { %5885 = vmatprep.mubr.bf16.mxu1 %v11694_v46  ;;  %5926 = vmatprep.mubr.bf16.mxu0 %v11694_v46  ;;  %v9920_v30 = vcombine.high %v4855_v23, %v4871_v40  ;;  %v4808_v55 = vld [vmem:[#allocation8 + $0x1d0] sm:$0xff] }
 0x391   :  { %5864 = vmatpush1.bf16.msra.mxu1 %v9877_v11  ;;  %5905 = vmatpush1.bf16.msra.mxu0 %v9879_v45  ;;  %v4823_v11 = vld [vmem:[#allocation8 + $0x248] sm:$0xff] }
 0x392   :  { %5865 = vmatprep.subr.bf16.mxu1 %v9846_v47  ;;  %5906 = vmatprep.subr.bf16.mxu0 %v9848_v17  ;;  %v4839_v45 = vld [vmem:[#allocation8 + $0x2c8] sm:$0xff]  ;;  %v9917_v47 = vcombine.low %v4854_v5, %v4870_v13  ;;  %v9919_v17 = vcombine.low %v4855_v23, %v4871_v40  ;;  %v9858_v5 = vcombine.high %v4792_v24, %v4808_v55  ;;  %v4760_v23 = vld [vmem:[#allocation8 + $0x50] sm:$0xff] }
 0x393   :  { %v9888_v19 = vcombine.high %v4823_v11, %v4839_v45  ;;  %v4776_v40 = vld [vmem:[#allocation8 + $0xd0] sm:$0xff] }
 0x395   :  { %5866 = vmatpush1.bf16.msra.mxu1 %v9845_v22  ;;  %5907 = vmatpush1.bf16.msra.mxu0 %v9847_v28  ;;  %v4791_v22 = vld [vmem:[#allocation8 + $0x148] sm:$0xff] }
 0x396   :  { %5867 = vmatprep.subr.bf16.mxu1 %v9814_v29  ;;  %5908 = vmatprep.subr.bf16.mxu0 %v9816_v37  ;;  %v4807_v28 = vld [vmem:[#allocation8 + $0x1c8] sm:$0xff]  ;;  %v9885_v29 = vcombine.low %v4822_v33, %v4838_v10  ;;  %v9887_v37 = vcombine.low %v4823_v11, %v4839_v45  ;;  %v9826_v33 = vcombine.high %v4760_v23, %v4776_v40  ;;  %v4858_v11 = vld [vmem:[#allocation8 + $0x360] sm:$0xff] }
 0x397   :  { %v9856_v42 = vcombine.high %v4791_v22, %v4807_v28  ;;  %v4874_v45 = vld [vmem:[#allocation8 + $0x3e0] sm:$0xff] }
 0x399   :  { %5868 = vmatpush1.bf16.msra.mxu1 %v9813_v51  ;;  %5909 = vmatpush1.bf16.msra.mxu0 %v9815_v52  ;;  %v4759_v51 = vld [vmem:[#allocation8 + $0x48] sm:$0xff] }
 0x39a   :  { %5943 = vmatprep.subr.bf16.mxu1 %v9914_v50  ;;  %5984 = vmatprep.subr.bf16.mxu0 %v9916_v43  ;;  %v4775_v52 = vld [vmem:[#allocation8 + $0xc8] sm:$0xff]  ;;  %v9853_v50 = vcombine.low %v4790_v20, %v4806_v21  ;;  %v9855_v43 = vcombine.low %v4791_v22, %v4807_v28  ;;  %v9926_v20 = vcombine.high %v4858_v11, %v4874_v45  ;;  %v4826_v22 = vld [vmem:[#allocation8 + $0x260] sm:$0xff] }
 0x39b   :  { %v9824_v31 = vcombine.high %v4759_v51, %v4775_v52  ;;  %v4842_v28 = vld [vmem:[#allocation8 + $0x2e0] sm:$0xff] }
 0x39c   :  { %9937 = vmatmul.mubr.msk.bf16.vlgmr.msra.gmra.mxu1 %vm117_vm1, %v13142_v48  ;;  %9938 = vmatmul.mubr.msk.bf16.vlgmr.msra.gmra.mxu0 %vm117_vm1, %v13142_v48 }
 0x39d   :  { %5944 = vmatpush1.bf16.msra.mxu1 %v9913_v32  ;;  %5985 = vmatpush1.bf16.msra.mxu0 %v9915_v1  ;;  %v4857_v32 = vld [vmem:[#allocation8 + $0x358] sm:$0xff] }
 0x39e   :  { %5945 = vmatprep.subr.bf16.mxu1 %v9882_v3  ;;  %5986 = vmatprep.subr.bf16.mxu0 %v9884_v53  ;;  %v4873_v1 = vld [vmem:[#allocation8 + $0x3d8] sm:$0xff]  ;;  %v9821_v3 = vcombine.low %v4758_v49, %v4774_v44  ;;  %v9823_v53 = vcombine.low %v4759_v51, %v4775_v52  ;;  %v9894_v49 = vcombine.high %v4826_v22, %v4842_v28  ;;  %v4794_v51 = vld [vmem:[#allocation8 + $0x160] sm:$0xff] }
 0x39f   :  { %5967 = vmatprep.mubr.bf16.mxu1 %v11694_v46  ;;  %6008 = vmatprep.mubr.bf16.mxu0 %v11694_v46  ;;  %v9924_v8 = vcombine.high %v4857_v32, %v4873_v1  ;;  %v4810_v52 = vld [vmem:[#allocation8 + $0x1e0] sm:$0xff] }
 0x3a1   :  { %5946 = vmatpush1.bf16.msra.mxu1 %v9881_v36  ;;  %5987 = vmatpush1.bf16.msra.mxu0 %v9883_v15  ;;  %v4825_v36 = vld [vmem:[#allocation8 + $0x258] sm:$0xff] }
 0x3a2   :  { %5947 = vmatprep.subr.bf16.mxu1 %v9850_v38  ;;  %5988 = vmatprep.subr.bf16.mxu0 %v9852_v6  ;;  %v4841_v15 = vld [vmem:[#allocation8 + $0x2d8] sm:$0xff]  ;;  %v9921_v38 = vcombine.low %v4856_v61, %v4872_v62  ;;  %v9923_v6 = vcombine.low %v4857_v32, %v4873_v1  ;;  %v9862_v61 = vcombine.high %v4794_v51, %v4810_v52  ;;  %v4762_v32 = vld [vmem:[#allocation8 + $0x60] sm:$0xff] }
 0x3a3   :  { %v9892_v9 = vcombine.high %v4825_v36, %v4841_v15  ;;  %v4778_v1 = vld [vmem:[#allocation8 + $0xe0] sm:$0xff] }
 0x3a5   :  { %5948 = vmatpush1.bf16.msra.mxu1 %v9849_v12  ;;  %5989 = vmatpush1.bf16.msra.mxu0 %v9851_v25  ;;  %v4793_v12 = vld [vmem:[#allocation8 + $0x158] sm:$0xff] }
 0x3a6   :  { %5949 = vmatprep.subr.bf16.mxu1 %v9818_v39  ;;  %5990 = vmatprep.subr.bf16.mxu0 %v9820_v2  ;;  %v4809_v25 = vld [vmem:[#allocation8 + $0x1d8] sm:$0xff]  ;;  %v9889_v39 = vcombine.low %v4824_v14, %v4840_v34  ;;  %v9891_v2 = vcombine.low %v4825_v36, %v4841_v15  ;;  %v9830_v14 = vcombine.high %v4762_v32, %v4778_v1  ;;  %v4860_v36 = vld [vmem:[#allocation8 + $0x370] sm:$0xff] }
 0x3a7   :  { %v9860_v13 = vcombine.high %v4793_v12, %v4809_v25  ;;  %v4876_v15 = vld [vmem:[#allocation8 + $0x3f0] sm:$0xff] }
 0x3a9   :  { %5950 = vmatpush1.bf16.msra.mxu1 %v9817_v16  ;;  %5991 = vmatpush1.bf16.msra.mxu0 %v9819_v7  ;;  %v4761_v16 = vld [vmem:[#allocation8 + $0x58] sm:$0xff] }
 0x3aa   :  { %6025 = vmatprep.subr.bf16.mxu1 %v9918_v27  ;;  %6066 = vmatprep.subr.bf16.mxu0 %v9920_v30  ;;  %v4777_v7 = vld [vmem:[#allocation8 + $0xd8] sm:$0xff]  ;;  %v9857_v27 = vcombine.low %v4792_v24, %v4808_v55  ;;  %v9859_v30 = vcombine.low %v4793_v12, %v4809_v25  ;;  %v9930_v24 = vcombine.high %v4860_v36, %v4876_v15  ;;  %v4828_v12 = vld [vmem:[#allocation8 + $0x270] sm:$0xff] }
 0x3ab   :  { %v9828_v10 = vcombine.high %v4761_v16, %v4777_v7  ;;  %v4844_v25 = vld [vmem:[#allocation8 + $0x2f0] sm:$0xff] }
 0x3ac   :  { %9939 = vmatmul.mubr.msk.bf16.vlgmr.msra.gmra.mxu1 %vm117_vm1, %v13142_v48  ;;  %9940 = vmatmul.mubr.msk.bf16.vlgmr.msra.gmra.mxu0 %vm117_vm1, %v13142_v48 }
 0x3ad   :  { %6026 = vmatpush1.bf16.msra.mxu1 %v9917_v47  ;;  %6067 = vmatpush1.bf16.msra.mxu0 %v9919_v17  ;;  %v4859_v47 = vld [vmem:[#allocation8 + $0x368] sm:$0xff] }
 0x3ae   :  { %6027 = vmatprep.subr.bf16.mxu1 %v9886_v18  ;;  %6068 = vmatprep.subr.bf16.mxu0 %v9888_v19  ;;  %v4875_v17 = vld [vmem:[#allocation8 + $0x3e8] sm:$0xff]  ;;  %v9825_v18 = vcombine.low %v4760_v23, %v4776_v40  ;;  %v9827_v19 = vcombine.low %v4761_v16, %v4777_v7  ;;  %v9898_v23 = vcombine.high %v4828_v12, %v4844_v25  ;;  %v4796_v16 = vld [vmem:[#allocation8 + $0x170] sm:$0xff] }
 0x3af   :  { %6049 = vmatprep.mubr.bf16.mxu1 %v11694_v46  ;;  %6090 = vmatprep.mubr.bf16.mxu0 %v11694_v46  ;;  %v9928_v21 = vcombine.high %v4859_v47, %v4875_v17  ;;  %v4812_v7 = vld [vmem:[#allocation8 + $0x1f0] sm:$0xff] }
 0x3b1   :  { %6028 = vmatpush1.bf16.msra.mxu1 %v9885_v29  ;;  %6069 = vmatpush1.bf16.msra.mxu0 %v9887_v37  ;;  %v4827_v29 = vld [vmem:[#allocation8 + $0x268] sm:$0xff] }
 0x3b2   :  { %6029 = vmatprep.subr.bf16.mxu1 %v9854_v41  ;;  %6070 = vmatprep.subr.bf16.mxu0 %v9856_v42  ;;  %v4843_v37 = vld [vmem:[#allocation8 + $0x2e8] sm:$0xff]  ;;  %v9925_v41 = vcombine.low %v4858_v11, %v4874_v45  ;;  %v9927_v42 = vcombine.low %v4859_v47, %v4875_v17  ;;  %v9866_v11 = vcombine.high %v4796_v16, %v4812_v7  ;;  %v4764_v47 = vld [vmem:[#allocation8 + $0x70] sm:$0xff] }
 0x3b3   :  { %v9896_v44 = vcombine.high %v4827_v29, %v4843_v37  ;;  %v4780_v17 = vld [vmem:[#allocation8 + $0xf0] sm:$0xff] }
 0x3b5   :  { %6030 = vmatpush1.bf16.msra.mxu1 %v9853_v50  ;;  %6071 = vmatpush1.bf16.msra.mxu0 %v9855_v43  ;;  %v4795_v50 = vld [vmem:[#allocation8 + $0x168] sm:$0xff] }
 0x3b6   :  { %6031 = vmatprep.subr.bf16.mxu1 %v9822_v60  ;;  %6072 = vmatprep.subr.bf16.mxu0 %v9824_v31  ;;  %v4811_v43 = vld [vmem:[#allocation8 + $0x1e8] sm:$0xff]  ;;  %v9893_v60 = vcombine.low %v4826_v22, %v4842_v28  ;;  %v9895_v31 = vcombine.low %v4827_v29, %v4843_v37  ;;  %v9834_v22 = vcombine.high %v4764_v47, %v4780_v17 }
 0x3b7   :  { %v9864_v62 = vcombine.high %v4795_v50, %v4811_v43  ;;  %v9833_v29 = vcombine.low %v4764_v47, %v4780_v17 }
 0x3b9   :  { %6032 = vmatpush1.bf16.msra.mxu1 %v9821_v3  ;;  %6073 = vmatpush1.bf16.msra.mxu0 %v9823_v53  ;;  %v4763_v3 = vld [vmem:[#allocation8 + $0x68] sm:$0xff] }
 0x3ba   :  { %6107 = vmatprep.subr.bf16.mxu1 %v9922_v4  ;;  %6148 = vmatprep.subr.bf16.mxu0 %v9924_v8  ;;  %v4779_v53 = vld [vmem:[#allocation8 + $0xe8] sm:$0xff]  ;;  %v9861_v4 = vcombine.low %v4794_v51, %v4810_v52  ;;  %v9863_v8 = vcombine.low %v4795_v50, %v4811_v43  ;;  %v11347_v51 = vld [vmem:[%s14109_s7 + $0xf0] sm:$0xff]  }
 0x3bb   :  { %v9832_v34 = vcombine.high %v4763_v3, %v4779_v53  ;;  %v11348_v52 = vld [vmem:[%s14109_s7 + $0x30] sm:$0xff]   ;;  %v11350_v43 = vld [vmem:[%s14109_s7 + $0x68] sm:$0xff]  }
 0x3bc   :  { %9941 = vmatmul.mubr.msk.bf16.vlgmr.msra.gmra.mxu1 %vm117_vm1, %v13142_v48  ;;  %9942 = vmatmul.mubr.msk.bf16.vlgmr.msra.gmra.mxu0 %vm117_vm1, %v13142_v48  ;;  %v11349_v50 = vld [vmem:[%s14109_s7 + $0xb0] sm:$0xff]  }
 0x3bd   :  { %6108 = vmatpush1.bf16.msra.mxu1 %v9921_v38  ;;  %6149 = vmatpush1.bf16.msra.mxu0 %v9923_v6  ;;  %v4861_v38 = vld [vmem:[#allocation8 + $0x378] sm:$0xff] }
 0x3be   :  { %6109 = vmatprep.subr.bf16.mxu1 %v9890_v35  ;;  %6150 = vmatprep.subr.bf16.mxu0 %v9892_v9  ;;  %v4877_v6 = vld [vmem:[#allocation8 + $0x3f8] sm:$0xff]  ;;  %v9829_v35 = vcombine.low %v4762_v32, %v4778_v1  ;;  %v9831_v9 = vcombine.low %v4763_v3, %v4779_v53  ;;  %v11356_v32 = vld [vmem:[%s14109_s7 + $0x20] sm:$0xff]  }
 0x3bf   :  { %6131 = vmatprep.mubr.bf16.mxu1 %v11694_v46  ;;  %6172 = vmatprep.mubr.bf16.mxu0 %v11694_v46  ;;  %v9932_v55 = vcombine.high %v4861_v38, %v4877_v6  ;;  %v11357_v1 = vld [vmem:[%s14109_s7 + $0xa0] sm:$0xff]   ;;  %v11358_v3 = vld [vmem:[%s14109_s7 + $0x58] sm:$0xff]  }
 0x3c0   :  { %v11359_v53 = vld [vmem:[%s14109_s7 + $0xd8] sm:$0xff]  }
 0x3c1   :  { %6110 = vmatpush1.bf16.msra.mxu1 %v9889_v39  ;;  %6151 = vmatpush1.bf16.msra.mxu0 %v9891_v2  ;;  %v4829_v39 = vld [vmem:[#allocation8 + $0x278] sm:$0xff] }
 0x3c2   :  { %6111 = vmatprep.subr.bf16.mxu1 %v9858_v5  ;;  %6152 = vmatprep.subr.bf16.mxu0 %v9860_v13  ;;  %v4845_v2 = vld [vmem:[#allocation8 + $0x2f8] sm:$0xff]  ;;  %v9929_v5 = vcombine.low %v4860_v36, %v4876_v15  ;;  %v9931_v13 = vcombine.low %v4861_v38, %v4877_v6  ;;  %v11364_v36 = vld [vmem:[%s14109_s7 + $0x10] sm:$0xff]   ;;  %v11366_v38 = vld [vmem:[%s14109_s7 + $0x48] sm:$0xff]  }
 0x3c3   :  { %v9900_v40 = vcombine.high %v4829_v39, %v4845_v2  ;;  %v11365_v15 = vld [vmem:[%s14109_s7 + $0x90] sm:$0xff]   ;;  %v11367_v6 = vld [vmem:[%s14109_s7 + $0xc8] sm:$0xff]  }
 0x3c5   :  { %6112 = vmatpush1.bf16.msra.mxu1 %v9857_v27  ;;  %6153 = vmatpush1.bf16.msra.mxu0 %v9859_v30  ;;  %v4797_v27 = vld [vmem:[#allocation8 + $0x178] sm:$0xff] }
 0x3c6   :  { %6113 = vmatprep.subr.bf16.mxu1 %v9826_v33  ;;  %6154 = vmatprep.subr.bf16.mxu0 %v9828_v10  ;;  %v4813_v30 = vld [vmem:[#allocation8 + $0x1f8] sm:$0xff]  ;;  %v9897_v33 = vcombine.low %v4828_v12, %v4844_v25  ;;  %v9899_v10 = vcombine.low %v4829_v39, %v4845_v2  ;;  %v11372_v12 = vld [vmem:[%s14109_s7] sm:$0xff]  }
 0x3c7   :  { %v9868_v45 = vcombine.high %v4797_v27, %v4813_v30  ;;  %v11373_v25 = vld [vmem:[%s14109_s7 + $0x80] sm:$0xff]   ;;  %v11374_v39 = vld [vmem:[%s14109_s7 + $0x178] sm:$0xff]  }
 0x3c8   :  { %v11375_v2 = vld [vmem:[%s14109_s7 + $0x1f8] sm:$0xff]  }
 0x3c9   :  { %6114 = vmatpush1.bf16.msra.mxu1 %v9825_v18  ;;  %6155 = vmatpush1.bf16.msra.mxu0 %v9827_v19  ;;  %v4765_v18 = vld [vmem:[#allocation8 + $0x78] sm:$0xff] }
 0x3ca   :  { %6189 = vmatprep.subr.bf16.mxu1 %v9926_v20  ;;  %6230 = vmatprep.subr.bf16.mxu0 %v9928_v21  ;;  %v4781_v19 = vld [vmem:[#allocation8 + $0xf8] sm:$0xff]  ;;  %v9865_v20 = vcombine.low %v4796_v16, %v4812_v7  ;;  %v9867_v21 = vcombine.low %v4797_v27, %v4813_v30 }
 0x3cb   :  { %v9836_v28 = vcombine.high %v4765_v18, %v4781_v19  ;;  %v9835_v37 = vcombine.low %v4765_v18, %v4781_v19 }
 0x3cc   :  { %9943 = vmatmul.mubr.msk.bf16.vlgmr.msra.gmra.mxu1 %vm117_vm1, %v13142_v48  ;;  %9944 = vmatmul.mubr.msk.bf16.vlgmr.msra.gmra.mxu0 %vm117_vm1, %v13142_v48 }
 0x3cd   :  { %6190 = vmatpush1.bf16.msra.mxu1 %v9925_v41  ;;  %6231 = vmatpush1.bf16.msra.mxu0 %v9927_v42  ;;  %v11342_v41 = vld [vmem:[%s14109_s7 + $0x78] sm:$0xff]  }
 0x3ce   :  { %6191 = vmatprep.subr.bf16.mxu1 %v9894_v49  ;;  %6232 = vmatprep.subr.bf16.mxu0 %v9896_v44  ;;  %v11344_v42 = vld [vmem:[%s14109_s7 + $0x38] sm:$0xff]   ;;  %v11346_v44 = vld [vmem:[%s14109_s7 + $0x70] sm:$0xff]  }
 0x3cf   :  { %6213 = vmatprep.mubr.bf16.mxu1 %v11694_v46  ;;  %6254 = vmatprep.mubr.bf16.mxu0 %v11694_v46  ;;  %v11345_v49 = vld [vmem:[%s14109_s7 + $0xb8] sm:$0xff]  }
 0x3d1   :  { %6192 = vmatpush1.bf16.msra.mxu1 %v9893_v60  ;;  %6233 = vmatpush1.bf16.msra.mxu0 %v9895_v31  ;;  %v11352_v60 = vld [vmem:[%s14109_s7 + $0x28] sm:$0xff]  }
 0x3d2   :  { %6193 = vmatprep.subr.bf16.mxu1 %v9862_v61  ;;  %6234 = vmatprep.subr.bf16.mxu0 %v9864_v62  ;;  %v11353_v31 = vld [vmem:[%s14109_s7 + $0xa8] sm:$0xff]   ;;  %v11354_v61 = vld [vmem:[%s14109_s7 + $0x60] sm:$0xff]  }
 0x3d3   :  { %v11355_v62 = vld [vmem:[%s14109_s7 + $0xe0] sm:$0xff]  }
 0x3d5   :  { %6194 = vmatpush1.bf16.msra.mxu1 %v9861_v4  ;;  %6235 = vmatpush1.bf16.msra.mxu0 %v9863_v8  ;;  %v11360_v4 = vld [vmem:[%s14109_s7 + $0x18] sm:$0xff]  }
 0x3d6   :  { %6195 = vmatprep.subr.bf16.mxu1 %v9830_v14  ;;  %6236 = vmatprep.subr.bf16.mxu0 %v9832_v34  ;;  %v11361_v8 = vld [vmem:[%s14109_s7 + $0x98] sm:$0xff]   ;;  %v11362_v14 = vld [vmem:[%s14109_s7 + $0x50] sm:$0xff]  }
 0x3d7   :  { %v11363_v34 = vld [vmem:[%s14109_s7 + $0xd0] sm:$0xff]  }
 0x3d9   :  { %6196 = vmatpush1.bf16.msra.mxu1 %v9829_v35  ;;  %6237 = vmatpush1.bf16.msra.mxu0 %v9831_v9  ;;  %v11368_v35 = vld [vmem:[%s14109_s7 + $0x8] sm:$0xff]  }
 0x3da   :  { %6271 = vmatprep.subr.bf16.mxu1 %v9930_v24  ;;  %6312 = vmatprep.subr.bf16.mxu0 %v9932_v55  ;;  %v11369_v9 = vld [vmem:[%s14109_s7 + $0x88] sm:$0xff]   ;;  %v11370_v24 = vld [vmem:[%s14109_s7 + $0x40] sm:$0xff]  }
 0x3db   :  { %v11371_v55 = vld [vmem:[%s14109_s7 + $0xc0] sm:$0xff]  }
 0x3dc   :  { %9945 = vmatmul.mubr.msk.bf16.vlgmr.msra.gmra.mxu1 %vm117_vm1, %v13142_v48  ;;  %9946 = vmatmul.mubr.msk.bf16.vlgmr.msra.gmra.mxu0 %vm117_vm1, %v13142_v48 }
 0x3dd   :  { %6272 = vmatpush1.bf16.msra.mxu1 %v9929_v5  ;;  %6313 = vmatpush1.bf16.msra.mxu0 %v9931_v13  ;;  %v13298_v5 = vld [vmem:[#allocation9] sm:$0xff] }
 0x3de   :  { %6273 = vmatprep.subr.bf16.mxu1 %v9898_v23  ;;  %6314 = vmatprep.subr.bf16.mxu0 %v9900_v40  ;;  %v4889_v13 = vrot.slane %v13298_v5, %v12302_v56  ;;  %v4897_v23 = vrot.slane %v13298_v5, %v12305_v57  ;;  %v4893_v40 = vrot.slane %v13298_v5, %v12308_v58 }
 0x3df   :  { %6295 = vmatprep.mubr.bf16.mxu1 %v11694_v46  ;;  %6336 = vmatprep.mubr.bf16.mxu0 %v11694_v46  ;;  %v11343_v46 = vld [vmem:[%s14109_s7 + $0xf8] sm:$0xff]   ;;  %v4901_v16 = vrot.slane %v13298_v5, %v12311_v59 }
 0x3e1   :  { %6274 = vmatpush1.bf16.msra.mxu1 %v9897_v33  ;;  %6315 = vmatpush1.bf16.msra.mxu0 %v9899_v10 }
 0x3e2   :  { %6275 = vmatprep.subr.bf16.mxu1 %v9866_v11  ;;  %6316 = vmatprep.subr.bf16.mxu0 %v9868_v45 }
 0x3e5   :  { %6276 = vmatpush1.bf16.msra.mxu1 %v9865_v20  ;;  %6317 = vmatpush1.bf16.msra.mxu0 %v9867_v21 }
 0x3e6   :  { %6277 = vmatprep.subr.bf16.mxu1 %v9834_v22  ;;  %6318 = vmatprep.subr.bf16.mxu0 %v9836_v28 }
 0x3e9   :  { %6278 = vmatpush1.bf16.msra.mxu1 %v9833_v29  ;;  %6319 = vmatpush1.bf16.msra.mxu0 %v9835_v37 }
 0x3ea   :  { %10707 = vmatprep.subr.bf16.mxu1 %v11342_v41  ;;  %10729 = vmatprep.subr.bf16.mxu0 %v11343_v46  ;;  %v11376_v46 = vld [vmem:[%s14109_s7 + $0x138] sm:$0xff]  }
 0x3ec   :  { %9947 = vmatmul.mubr.msk.bf16.vlgmr.msra.gmra.mxu1 %vm117_vm1, %v13142_v48  ;;  %9948 = vmatmul.mubr.msk.bf16.vlgmr.msra.gmra.mxu0 %vm117_vm1, %v13142_v48  ;;  %v11351_v48 = vld [vmem:[%s14109_s7 + $0xe8] sm:$0xff]  }
 0x3ed   :  { %10708 = vmatpush3.bf16.msra.mxu1 %v11344_v42  ;;  %10730 = vmatpush3.bf16.msra.mxu0 %v11345_v49  ;;  %v11377_v42 = vld [vmem:[%s14109_s7 + $0x1b8] sm:$0xff]  }
 0x3ee   :  { %10709 = vmatprep.subr.bf16.mxu1 %v11346_v44  ;;  %10731 = vmatprep.subr.bf16.mxu0 %v11347_v51  ;;  %v11378_v51 = vld [vmem:[%s14109_s7 + $0x170] sm:$0xff]  }
 0x3f1   :  { %10710 = vmatpush3.bf16.msra.mxu1 %v11348_v52  ;;  %10732 = vmatpush3.bf16.msra.mxu0 %v11349_v50  ;;  %v11379_v52 = vld [vmem:[%s14109_s7 + $0x1f0] sm:$0xff]  }
 0x3f2   :  { %10711 = vmatprep.subr.bf16.mxu1 %v11350_v43  ;;  %10733 = vmatprep.subr.bf16.mxu0 %v11351_v48  ;;  %v11380_v50 = vld [vmem:[%s14109_s7 + $0x130] sm:$0xff]   ;;  %v11382_v48 = vld [vmem:[%s14109_s7 + $0x168] sm:$0xff]  }
 0x3f3   :  { %v11381_v43 = vld [vmem:[%s14109_s7 + $0x1b0] sm:$0xff]  }
 0x3f5   :  { %10712 = vmatpush3.bf16.msra.mxu1 %v11352_v60  ;;  %10734 = vmatpush3.bf16.msra.mxu0 %v11353_v31  ;;  %v11383_v60 = vld [vmem:[%s14109_s7 + $0x1e8] sm:$0xff]   ;;  %v4909_v31 = vrot.slane %v13298_v5, %v12340_v26 }
 0x3f6   :  { %10713 = vmatprep.subr.bf16.mxu1 %v11354_v61  ;;  %10735 = vmatprep.subr.bf16.mxu0 %v11355_v62  ;;  %v4917_v61 = vrot.slane %v13298_v5, %v12343_v54  ;;  %v11384_v62 = vld [vmem:[%s14109_s7 + $0x128] sm:$0xff]  }
 0x3f9   :  { %10714 = vmatpush3.bf16.msra.mxu1 %v11356_v32  ;;  %10736 = vmatpush3.bf16.msra.mxu0 %v11357_v1  ;;  %v11385_v32 = vld [vmem:[%s14109_s7 + $0x1a8] sm:$0xff]  }
 0x3fa   :  { %10715 = vmatprep.subr.bf16.mxu1 %v11358_v3  ;;  %10737 = vmatprep.subr.bf16.mxu0 %v11359_v53  ;;  %v11386_v53 = vld [vmem:[%s14109_s7 + $0x160] sm:$0xff]  }
 0x3fd   :  { %10716 = vmatpush3.bf16.msra.mxu1 %v11360_v4  ;;  %10738 = vmatpush3.bf16.msra.mxu0 %v11361_v8  ;;  %v11387_v4 = vld [vmem:[%s14109_s7 + $0x1e0] sm:$0xff]  }
 0x3fe   :  { %10717 = vmatprep.subr.bf16.mxu1 %v11362_v14  ;;  %10739 = vmatprep.subr.bf16.mxu0 %v11363_v34 }
 0x401   :  { %10718 = vmatpush3.bf16.msra.mxu1 %v11364_v36  ;;  %10740 = vmatpush3.bf16.msra.mxu0 %v11365_v15  ;;  %v11388_v15 = vld [vmem:[%s14109_s7 + $0x120] sm:$0xff]  }
 0x402   :  { %10719 = vmatprep.subr.bf16.mxu1 %v11366_v38  ;;  %10741 = vmatprep.subr.bf16.mxu0 %v11367_v6  ;;  %v11389_v38 = vld [vmem:[%s14109_s7 + $0x1a0] sm:$0xff]  }
 0x405   :  { %10720 = vmatpush3.bf16.msra.mxu1 %v11368_v35  ;;  %10742 = vmatpush3.bf16.msra.mxu0 %v11369_v9  ;;  %v11390_v9 = vld [vmem:[%s14109_s7 + $0x158] sm:$0xff]  }
 0x406   :  { %10721 = vmatprep.subr.bf16.mxu1 %v11370_v24  ;;  %10743 = vmatprep.subr.bf16.mxu0 %v11371_v55  ;;  %v11391_v24 = vld [vmem:[%s14109_s7 + $0x1d8] sm:$0xff]  }
 0x409   :  { %10722 = vmatpush3.bf16.msra.mxu1 %v11372_v12  ;;  %10744 = vmatpush3.bf16.msra.mxu0 %v11373_v25 }
 0x40a   :  { %10751 = vmatprep.subr.bf16.mxu1 %v11374_v39  ;;  %10773 = vmatprep.subr.bf16.mxu0 %v11375_v2 }
 0x43c   :  { %v5723_v7 = vpop.f32.mrf.mxu1  ;;  %v5764_v27 = vpop.f32.mrf.mxu0 }
 0x43d   :  { %v5724_v30 = vadd.f32 %v5723_v7, %v4889_v13  ;;  %v5765_v33 = vadd.f32 %v5764_v27, %v4897_v23  ;;  %v11392_v23 = vld [vmem:[%s14109_s7 + $0x118] sm:$0xff]   ;;  %v11395_v7 = vld [vmem:[%s14109_s7 + $0x1d0] sm:$0xff]  }
 0x43e   :  { %v5725_v10 = vpop.f32.mrf.mxu1  ;;  %v5766_v11 = vpop.f32.mrf.mxu0  ;;  %v11396_v27 = vld [vmem:[%s14109_s7 + $0x110] sm:$0xff]  }
 0x43f   :  { %v5726_v45 = vadd.f32 %v5725_v10, %v4893_v40  ;;  %v5767_v47 = vadd.f32 %v5766_v11, %v4901_v16  ;;  %v6345_v17 = vmax.f32 %v5724_v30, 0.0  ;;  %v6347_v18 = vmax.f32 %v5765_v33, 0.0  ;;  %v11393_v40 = vld [vmem:[%s14109_s7 + $0x198] sm:$0xff]   ;;  %v11394_v16 = vld [vmem:[%s14109_s7 + $0x150] sm:$0xff]   ;;  %v11398_v11 = vld [vmem:[%s14109_s7 + $0x148] sm:$0xff]  }
 0x440   :  { %v5727_v19 = vpop.f32.mrf.mxu1  ;;  %v5768_v20 = vpop.f32.mrf.mxu0  ;;  %v11397_v30 = vld [vmem:[%s14109_s7 + $0x190] sm:$0xff]   ;;  %v4905_v33 = vrot.slane %v13298_v5, %v12386_v63  ;;  %v4913_v10 = vrot.slane %v13298_v5, %v12389_v0 }
 0x441   :  { %v6346_v21 = vmax.f32 %v5726_v45, 0.0  ;;  %v6348_v22 = vmax.f32 %v5767_v47, 0.0  ;;  %v10318_v49 = vpack.c.bf16 %v6345_v17, %v6345_v17  ;;  %v10320_v44 = vpack.c.bf16 %v6347_v18, %v6347_v18  ;;  %v11399_v45 = vld [vmem:[%s14109_s7 + $0x1c8] sm:$0xff]  }
 0x442   :  { %v5728_v28 = vpop.f32.mrf.mxu1  ;;  %v5769_v29 = vpop.f32.mrf.mxu0  ;;  %v13388_v47 = vld [vmem:[#allocation9 + $0x8] sm:$0xff] }
 0x443   :  { %v10319_v37 = vpack.c.bf16 %v6346_v21, %v6346_v21  ;;  %v10321_v41 = vpack.c.bf16 %v6348_v22, %v6348_v22  ;;  %v4925_v17 = vrot.slane %v13388_v47, %v12308_v58  ;;  %v4933_v5 = vrot.slane %v13388_v47, %v12311_v59  ;;  %v11400_v18 = vld [vmem:[%s14109_s7 + $0x108] sm:$0xff]   ;;  %v11402_v29 = vld [vmem:[%s14109_s7 + $0x140] sm:$0xff]  }
 0x444   :  { %v11401_v19 = vld [vmem:[%s14109_s7 + $0x188] sm:$0xff]  }
 0x445   :  { %8736 = vmatprep.mubr.bf16.mxu1 %v10319_v37  ;;  %8776 = vmatprep.mubr.bf16.mxu0 %v10321_v41  ;;  %v11403_v37 = vld [vmem:[%s14109_s7 + $0x1c0] sm:$0xff]  }
 0x446   :  { %8737 = vmatmul.mubr.bf16.vlgmr.msra.gmra.mxu1 %v10318_v49  ;;  %8777 = vmatmul.mubr.bf16.vlgmr.msra.gmra.mxu0 %v10320_v44  ;;  %v11404_v44 = vld [vmem:[%s14109_s7 + $0x100] sm:$0xff]  }
 0x447   :  { %10752 = vmatpush3.bf16.msra.mxu1 %v11376_v46  ;;  %10774 = vmatpush3.bf16.msra.mxu0 %v11377_v42 }
 0x448   :  { %10753 = vmatprep.subr.bf16.mxu1 %v11378_v51  ;;  %10775 = vmatprep.subr.bf16.mxu0 %v11379_v52  ;;  %v11405_v51 = vld [vmem:[%s14109_s7 + $0x180] sm:$0xff]  }
 0x44b   :  { %10754 = vmatpush3.bf16.msra.mxu1 %v11380_v50  ;;  %10776 = vmatpush3.bf16.msra.mxu0 %v11381_v43 }
 0x44c   :  { %v5805_v1 = vpop.f32.mrf.mxu1  ;;  %v5846_v3 = vpop.f32.mrf.mxu0  ;;  %10755 = vmatprep.subr.bf16.mxu1 %v11382_v48  ;;  %10777 = vmatprep.subr.bf16.mxu0 %v11383_v60  ;;  %v11406_v60 = vld [vmem:[%s14109_s7 + $0x278] sm:$0xff]  }
 0x44d   :  { %v5806_v20 = vadd.f32 %v5805_v1, %v4905_v33  ;;  %v5847_v21 = vadd.f32 %v5846_v3, %v4913_v10  ;;  %v11408_v3 = vld [vmem:[%s14109_s7 + $0x238] sm:$0xff]  }
 0x44e   :  { %v5807_v8 = vpop.f32.mrf.mxu1  ;;  %v5848_v14 = vpop.f32.mrf.mxu0  ;;  %v11423_v33 = vld [vmem:[%s14109_s7 + $0x2d8] sm:$0xff]  }
 0x44f   :  { %v5808_v34 = vadd.f32 %v5807_v8, %v4909_v31  ;;  %v5849_v36 = vadd.f32 %v5848_v14, %v4917_v61  ;;  %10756 = vmatpush3.bf16.msra.mxu1 %v11384_v62  ;;  %10778 = vmatpush3.bf16.msra.mxu0 %v11385_v32  ;;  %v6349_v52 = vmax.f32 %v5806_v20, 0.0  ;;  %v6351_v50 = vmax.f32 %v5847_v21, 0.0  ;;  %v11407_v31 = vld [vmem:[%s14109_s7 + $0x2f8] sm:$0xff]   ;;  %v11429_v21 = vld [vmem:[%s14109_s7 + $0x290] sm:$0xff]  }
 0x450   :  { %v5809_v6 = vpop.f32.mrf.mxu1  ;;  %v5850_v35 = vpop.f32.mrf.mxu0  ;;  %10757 = vmatprep.subr.bf16.mxu1 %v11386_v53  ;;  %10779 = vmatprep.subr.bf16.mxu0 %v11387_v4  ;;  %v11409_v8 = vld [vmem:[%s14109_s7 + $0x2b8] sm:$0xff]   ;;  %v4921_v20 = vrot.slane %v13388_v47, %v12302_v56 }
 0x451   :  { %v6350_v55 = vmax.f32 %v5808_v34, 0.0  ;;  %v6352_v12 = vmax.f32 %v5849_v36, 0.0  ;;  %v10322_v53 = vpack.c.bf16 %v6349_v52, %v6349_v52  ;;  %v10324_v4 = vpack.c.bf16 %v6351_v50, %v6351_v50  ;;  %v11410_v34 = vld [vmem:[%s14109_s7 + $0x270] sm:$0xff]   ;;  %v11414_v35 = vld [vmem:[%s14109_s7 + $0x268] sm:$0xff]  }
 0x452   :  { %v5810_v25 = vpop.f32.mrf.mxu1  ;;  %v5851_v39 = vpop.f32.mrf.mxu0  ;;  %v11411_v36 = vld [vmem:[%s14109_s7 + $0x2f0] sm:$0xff]   ;;  %v11433_v50 = vld [vmem:[%s14109_s7 + $0x288] sm:$0xff]  }
 0x453   :  { %v10323_v2 = vpack.c.bf16 %v6350_v55, %v6350_v55  ;;  %v10325_v13 = vpack.c.bf16 %v6352_v12, %v6352_v12  ;;  %10758 = vmatpush3.bf16.msra.mxu1 %v11388_v15  ;;  %10780 = vmatpush3.bf16.msra.mxu0 %v11389_v38  ;;  %v11412_v38 = vld [vmem:[%s14109_s7 + $0x230] sm:$0xff]   ;;  %v11417_v25 = vld [vmem:[%s14109_s7 + $0x2a8] sm:$0xff]   ;;  %v11418_v39 = vld [vmem:[%s14109_s7 + $0x260] sm:$0xff]  }
 0x454   :  { %10759 = vmatprep.subr.bf16.mxu1 %v11390_v9  ;;  %10781 = vmatprep.subr.bf16.mxu0 %v11391_v24  ;;  %v11413_v6 = vld [vmem:[%s14109_s7 + $0x2b0] sm:$0xff]   ;;  %v11415_v9 = vld [vmem:[%s14109_s7 + $0x2e8] sm:$0xff]  }
 0x455   :  { %8816 = vmatprep.mubr.bf16.mxu1 %v10323_v2  ;;  %8856 = vmatprep.mubr.bf16.mxu0 %v10325_v13  ;;  %v11416_v24 = vld [vmem:[%s14109_s7 + $0x228] sm:$0xff]   ;;  %v11419_v2 = vld [vmem:[%s14109_s7 + $0x2e0] sm:$0xff]  }
 0x457   :  { %10760 = vmatpush3.bf16.msra.mxu1 %v11392_v23  ;;  %10782 = vmatpush3.bf16.msra.mxu0 %v11393_v40  ;;  %v11420_v40 = vld [vmem:[%s14109_s7 + $0x220] sm:$0xff]  }
 0x458   :  { %10761 = vmatprep.subr.bf16.mxu1 %v11394_v16  ;;  %10783 = vmatprep.subr.bf16.mxu0 %v11395_v7 }
 0x45b   :  { %10762 = vmatpush3.bf16.msra.mxu1 %v11396_v27  ;;  %10784 = vmatpush3.bf16.msra.mxu0 %v11397_v30  ;;  %v11421_v27 = vld [vmem:[%s14109_s7 + $0x2a0] sm:$0xff]   ;;  %v11422_v30 = vld [vmem:[%s14109_s7 + $0x258] sm:$0xff]  }
 0x45c   :  { %v13400_v22 = vpop.f32.mrf.mxu1  ;;  %v13402_v28 = vpop.f32.mrf.mxu0  ;;  %10763 = vmatprep.subr.bf16.mxu1 %v11398_v11  ;;  %10785 = vmatprep.subr.bf16.mxu0 %v11399_v45  ;;  %v11424_v45 = vld [vmem:[%s14109_s7 + $0x218] sm:$0xff]  }
 0x45e   :  { %v5889_v41 = vpop.f32.mrf.mxu1  ;;  %v5930_v46 = vpop.f32.mrf.mxu0 }
 0x45f   :  { %v5890_v42 = vadd.f32 %v5889_v41, %v4925_v17  ;;  %v5931_v49 = vadd.f32 %v5930_v46, %v4933_v5  ;;  %10764 = vmatpush3.bf16.msra.mxu1 %v11400_v18  ;;  %10786 = vmatpush3.bf16.msra.mxu0 %v11401_v19  ;;  %v11425_v17 = vld [vmem:[%s14109_s7 + $0x298] sm:$0xff]   ;;  %v11426_v5 = vld [vmem:[%s14109_s7 + $0x250] sm:$0xff]   ;;  %v11431_v41 = vld [vmem:[%s14109_s7 + $0x2c8] sm:$0xff]   ;;  %v4941_v46 = vrot.slane %v13388_v47, %v12340_v26 }
 0x460   :  { %v5891_v43 = vpop.f32.mrf.mxu1  ;;  %v5932_v48 = vpop.f32.mrf.mxu0  ;;  %10765 = vmatprep.subr.bf16.mxu1 %v11402_v29  ;;  %10787 = vmatprep.subr.bf16.mxu0 %v11403_v37  ;;  %v11427_v18 = vld [vmem:[%s14109_s7 + $0x2d0] sm:$0xff]   ;;  %v11430_v29 = vld [vmem:[%s14109_s7 + $0x248] sm:$0xff]   ;;  %v4929_v37 = vrot.slane %v13388_v47, %v12305_v57 }
 0x461   :  { %v6354_v61 = vmax.f32 %v5890_v42, 0.0  ;;  %v6356_v62 = vmax.f32 %v5931_v49, 0.0  ;;  %v11428_v19 = vld [vmem:[%s14109_s7 + $0x210] sm:$0xff]   ;;  %v4949_v42 = vrot.slane %v13388_v47, %v12343_v54  ;;  %v11432_v49 = vld [vmem:[%s14109_s7 + $0x208] sm:$0xff]   ;;  %v11434_v43 = vld [vmem:[%s14109_s7 + $0x240] sm:$0xff]  }
 0x462   :  { %v5892_v32 = vpop.f32.mrf.mxu1  ;;  %v5933_v1 = vpop.f32.mrf.mxu0  ;;  %v5929_v48 = vadd.f32 %v13402_v28, %v4929_v37  ;;  %v11455_v37 = vld [vmem:[%s14109_s7 + $0x3d8] sm:$0xff]  }
 0x463   :  { %10766 = vmatpush3.bf16.msra.mxu1 %v11404_v44  ;;  %10788 = vmatpush3.bf16.msra.mxu0 %v11405_v51  ;;  %v10327_v14 = vpack.c.bf16 %v6354_v61, %v6354_v61  ;;  %v10329_v15 = vpack.c.bf16 %v6356_v62, %v6356_v62  ;;  %v5888_v44 = vadd.f32 %v13400_v22, %v4921_v20  ;;  %v11435_v22 = vld [vmem:[%s14109_s7 + $0x2c0] sm:$0xff]  }
 0x464   :  { %10795 = vmatprep.subr.bf16.mxu1 %v11406_v60  ;;  %10817 = vmatprep.subr.bf16.mxu0 %v11407_v31  ;;  %v11436_v32 = vld [vmem:[%s14109_s7 + $0x200] sm:$0xff]  }
 0x465   :  { %v6353_v1 = vmax.f32 %v5888_v44, 0.0  ;;  %v11458_v44 = vld [vmem:[%s14109_s7 + $0x350] sm:$0xff]  }
 0x466   :  { %8817 = vmatmul.mubr.bf16.vlgmr.msra.gmra.mxu1 %v10322_v53  ;;  %8857 = vmatmul.mubr.bf16.vlgmr.msra.gmra.mxu0 %v10324_v4  ;;  %v11437_v53 = vld [vmem:[%s14109_s7 + $0x280] sm:$0xff]   ;;  %v11438_v4 = vld [vmem:[%s14109_s7 + $0x378] sm:$0xff]  }
 0x467   :  { %10796 = vmatpush3.bf16.msra.mxu1 %v11408_v3  ;;  %8896 = vmatprep.mubr.bf16.mxu1 %v10327_v14  ;;  %v11439_v14 = vld [vmem:[%s14109_s7 + $0x3f8] sm:$0xff]  }
 0x468   :  { %10818 = vmatpush3.bf16.msra.mxu0 %v11409_v8  ;;  %8936 = vmatprep.mubr.bf16.mxu0 %v10329_v15  ;;  %v6355_v8 = vmax.f32 %v5929_v48, 0.0  ;;  %v4937_v48 = vrot.slane %v13388_v47, %v12386_v63 }
 0x469   :  { %10797 = vmatprep.subr.bf16.mxu1 %v11410_v34  ;;  %10819 = vmatprep.subr.bf16.mxu0 %v11411_v36 }
 0x46b   :  { %10798 = vmatpush3.bf16.msra.mxu1 %v11412_v38 }
 0x46c   :  { %10820 = vmatpush3.bf16.msra.mxu0 %v11413_v6  ;;  %v13449_v55 = vpop.f32.mrf.mxu1  ;;  %v13451_v12 = vpop.f32.mrf.mxu0  ;;  %10799 = vmatprep.subr.bf16.mxu1 %v11414_v35  ;;  %v11440_v6 = vld [vmem:[%s14109_s7 + $0x338] sm:$0xff]   ;;  %v10326_v35 = vpack.c.bf16 %v6353_v1, %v6353_v1  ;;  %v11463_v1 = vld [vmem:[%s14109_s7 + $0x3c8] sm:$0xff]  }
 0x46d   :  { %10821 = vmatprep.subr.bf16.mxu0 %v11415_v9  ;;  %v11441_v9 = vld [vmem:[%s14109_s7 + $0x3b8] sm:$0xff]  }
 0x46e   :  { %v5971_v13 = vpop.f32.mrf.mxu1  ;;  %v6012_v23 = vpop.f32.mrf.mxu0 }
 0x46f   :  { %10800 = vmatpush3.bf16.msra.mxu1 %v11416_v24  ;;  %v5972_v60 = vadd.f32 %v5971_v13, %v4941_v46  ;;  %v6013_v62 = vadd.f32 %v6012_v23, %v4949_v42  ;;  %v10328_v24 = vpack.c.bf16 %v6355_v8, %v6355_v8  ;;  %v11444_v23 = vld [vmem:[%s14109_s7 + $0x330] sm:$0xff]   ;;  %v11456_v42 = vld [vmem:[%s14109_s7 + $0x318] sm:$0xff]  }
 0x470   :  { %10822 = vmatpush3.bf16.msra.mxu0 %v11417_v25  ;;  %v5973_v16 = vpop.f32.mrf.mxu1  ;;  %v6014_v7 = vpop.f32.mrf.mxu0  ;;  %10801 = vmatprep.subr.bf16.mxu1 %v11418_v39  ;;  %v11442_v25 = vld [vmem:[%s14109_s7 + $0x370] sm:$0xff]  }
 0x471   :  { %10823 = vmatprep.subr.bf16.mxu0 %v11419_v2  ;;  %v6358_v34 = vmax.f32 %v5972_v60, 0.0  ;;  %v6360_v38 = vmax.f32 %v6013_v62, 0.0  ;;  %v11443_v2 = vld [vmem:[%s14109_s7 + $0x3f0] sm:$0xff]   ;;  %v11446_v16 = vld [vmem:[%s14109_s7 + $0x368] sm:$0xff]   ;;  %v4945_v62 = vrot.slane %v13388_v47, %v12389_v0  ;;  %v5970_v47 = vadd.f32 %v13449_v55, %v4937_v48  ;;  %v11467_v55 = vld [vmem:[%s14109_s7 + $0x3c0] sm:$0xff]  }
 0x472   :  { %v5974_v10 = vpop.f32.mrf.mxu1  ;;  %v6015_v11 = vpop.f32.mrf.mxu0  ;;  %v11447_v7 = vld [vmem:[%s14109_s7 + $0x3e8] sm:$0xff]  }
 0x473   :  { %10802 = vmatpush3.bf16.msra.mxu1 %v11420_v40  ;;  %v10331_v39 = vpack.c.bf16 %v6358_v34, %v6358_v34  ;;  %v10333_v13 = vpack.c.bf16 %v6360_v38, %v6360_v38  ;;  %v11445_v40 = vld [vmem:[%s14109_s7 + $0x3b0] sm:$0xff]   ;;  %v11449_v10 = vld [vmem:[%s14109_s7 + $0x3a8] sm:$0xff]   ;;  %v11450_v11 = vld [vmem:[%s14109_s7 + $0x360] sm:$0xff]  }
 0x474   :  { %10824 = vmatpush3.bf16.msra.mxu0 %v11421_v27  ;;  %10803 = vmatprep.subr.bf16.mxu1 %v11422_v30  ;;  %v11448_v27 = vld [vmem:[%s14109_s7 + $0x328] sm:$0xff]   ;;  %v11466_v34 = vld [vmem:[%s14109_s7 + $0x340] sm:$0xff]  }
 0x475   :  { %10825 = vmatprep.subr.bf16.mxu0 %v11423_v33  ;;  %v11462_v60 = vld [vmem:[%s14109_s7 + $0x348] sm:$0xff]  }
 0x477   :  { %10804 = vmatpush3.bf16.msra.mxu1 %v11424_v45  ;;  %v11451_v45 = vld [vmem:[%s14109_s7 + $0x3e0] sm:$0xff]  }
 0x478   :  { %10826 = vmatpush3.bf16.msra.mxu0 %v11425_v17  ;;  %10805 = vmatprep.subr.bf16.mxu1 %v11426_v5 }
 0x479   :  { %10827 = vmatprep.subr.bf16.mxu0 %v11427_v18  ;;  %v11452_v18 = vld [vmem:[%s14109_s7 + $0x320] sm:$0xff]  }
 0x47b   :  { %10806 = vmatpush3.bf16.msra.mxu1 %v11428_v19 }
 0x47c   :  { %10828 = vmatpush3.bf16.msra.mxu0 %v11429_v21  ;;  %v13510_v51 = vpop.f32.mrf.mxu1  ;;  %v13512_v52 = vpop.f32.mrf.mxu0  ;;  %10807 = vmatprep.subr.bf16.mxu1 %v11430_v29  ;;  %v11453_v21 = vld [vmem:[%s14109_s7 + $0x3a0] sm:$0xff]   ;;  %v11454_v29 = vld [vmem:[%s14109_s7 + $0x358] sm:$0xff]  }
 0x47d   :  { %10829 = vmatprep.subr.bf16.mxu0 %v11431_v41 }
 0x47e   :  { %v13524_v31 = vpop.f32.mrf.mxu1  ;;  %v13526_v61 = vpop.f32.mrf.mxu0 }
 0x47f   :  { %10808 = vmatpush3.bf16.msra.mxu1 %v11432_v49  ;;  %v11457_v49 = vld [vmem:[%s14109_s7 + $0x398] sm:$0xff]  }
 0x480   :  { %10830 = vmatpush3.bf16.msra.mxu0 %v11433_v50  ;;  %v6055_v3 = vpop.f32.mrf.mxu1  ;;  %v6096_v28 = vpop.f32.mrf.mxu0  ;;  %10809 = vmatprep.subr.bf16.mxu1 %v11434_v43  ;;  %v11459_v50 = vld [vmem:[%s14109_s7 + $0x3d0] sm:$0xff]  }
 0x481   :  { %10831 = vmatprep.subr.bf16.mxu0 %v11435_v22  ;;  %v11460_v43 = vld [vmem:[%s14109_s7 + $0x310] sm:$0xff]  }
 0x482   :  { %v6056_v36 = vpop.f32.mrf.mxu1  ;;  %v6097_v15 = vpop.f32.mrf.mxu0  ;;  %v11461_v22 = vld [vmem:[%s14109_s7 + $0x390] sm:$0xff]  }
 0x483   :  { %10810 = vmatpush3.bf16.msra.mxu1 %v11436_v32  ;;  %v13621_v32 = vld [vmem:[#allocation9 + $0x10] sm:$0xff]  ;;  %v6011_v36 = vadd.f32 %v13451_v12, %v4945_v62 }
 0x484   :  { %10832 = vmatpush3.bf16.msra.mxu0 %v11437_v53  ;;  %10839 = vmatprep.subr.bf16.mxu1 %v11438_v4  ;;  %v4957_v3 = vrot.slane %v13621_v32, %v12308_v58  ;;  %v4965_v28 = vrot.slane %v13621_v32, %v12311_v59  ;;  %v11464_v53 = vld [vmem:[%s14109_s7 + $0x308] sm:$0xff]  }
 0x485   :  { %10861 = vmatprep.subr.bf16.mxu0 %v11439_v14  ;;  %v11465_v14 = vld [vmem:[%s14109_s7 + $0x388] sm:$0xff]  }
 0x486   :  { %8897 = vmatmul.mubr.bf16.vlgmr.msra.gmra.mxu1 %v10326_v35  ;;  %v6054_v15 = vadd.f32 %v13524_v31, %v4957_v3  ;;  %v6095_v35 = vadd.f32 %v13526_v61, %v4965_v28  ;;  %v11469_v31 = vld [vmem:[%s14109_s7 + $0x380] sm:$0xff]   ;;  %v11471_v61 = vld [vmem:[%s14109_s7 + $0x4f8] sm:$0xff]  }
 0x487   :  { %8937 = vmatmul.mubr.bf16.vlgmr.msra.gmra.mxu0 %v10328_v24  ;;  %10840 = vmatpush3.bf16.msra.mxu1 %v11440_v6  ;;  %v6357_v24 = vmax.f32 %v5970_v47, 0.0  ;;  %v11485_v3 = vld [vmem:[%s14109_s7 + $0x4a0] sm:$0xff]   ;;  %v11486_v28 = vld [vmem:[%s14109_s7 + $0x458] sm:$0xff]  }
 0x488   :  { %8976 = vmatprep.mubr.bf16.mxu1 %v10331_v39  ;;  %10862 = vmatpush3.bf16.msra.mxu0 %v11441_v9  ;;  %v11468_v9 = vld [vmem:[%s14109_s7 + $0x300] sm:$0xff]   ;;  %v11470_v39 = vld [vmem:[%s14109_s7 + $0x478] sm:$0xff]  }
 0x489   :  { %9016 = vmatprep.mubr.bf16.mxu0 %v10333_v13  ;;  %10841 = vmatprep.subr.bf16.mxu1 %v11442_v25  ;;  %v6362_v13 = vmax.f32 %v6054_v15, 0.0  ;;  %v11491_v15 = vld [vmem:[%s14109_s7 + $0x4d0] sm:$0xff]  }
 0x48a   :  { %10863 = vmatprep.subr.bf16.mxu0 %v11443_v2  ;;  %v6359_v2 = vmax.f32 %v6011_v36, 0.0  ;;  %v11489_v36 = vld [vmem:[%s14109_s7 + $0x498] sm:$0xff]  }
 0x48b   :  { %10842 = vmatpush3.bf16.msra.mxu1 %v11444_v23 }
 0x48c   :  { %10864 = vmatpush3.bf16.msra.mxu0 %v11445_v40  ;;  %v13567_v30 = vpop.f32.mrf.mxu1  ;;  %v13569_v33 = vpop.f32.mrf.mxu0  ;;  %10843 = vmatprep.subr.bf16.mxu1 %v11446_v16  ;;  %v6364_v16 = vmax.f32 %v6095_v35, 0.0  ;;  %v11492_v35 = vld [vmem:[%s14109_s7 + $0x410] sm:$0xff]  }
 0x48d   :  { %10865 = vmatprep.subr.bf16.mxu0 %v11447_v7  ;;  %v11472_v7 = vld [vmem:[%s14109_s7 + $0x438] sm:$0xff]  }
 0x48e   :  { %v13580_v17 = vpop.f32.mrf.mxu1  ;;  %v13582_v5 = vpop.f32.mrf.mxu0 }
 0x48f   :  { %10844 = vmatpush3.bf16.msra.mxu1 %v11448_v27  ;;  %v10330_v27 = vpack.c.bf16 %v6357_v24, %v6357_v24  ;;  %v11493_v24 = vld [vmem:[%s14109_s7 + $0x490] sm:$0xff]  }
 0x490   :  { %10866 = vmatpush3.bf16.msra.mxu0 %v11449_v10  ;;  %v6137_v19 = vpop.f32.mrf.mxu1  ;;  %v6178_v20 = vpop.f32.mrf.mxu0  ;;  %10845 = vmatprep.subr.bf16.mxu1 %v11450_v11  ;;  %v11473_v10 = vld [vmem:[%s14109_s7 + $0x4b8] sm:$0xff]   ;;  %v10332_v11 = vpack.c.bf16 %v6359_v2, %v6359_v2  ;;  %v4981_v2 = vrot.slane %v13621_v32, %v12343_v54 }
 0x491   :  { %10867 = vmatprep.subr.bf16.mxu0 %v11451_v45  ;;  %v11474_v45 = vld [vmem:[%s14109_s7 + $0x470] sm:$0xff]   ;;  %v10337_v20 = vpack.c.bf16 %v6364_v16, %v6364_v16 }
 0x492   :  { %v6138_v41 = vpop.f32.mrf.mxu1  ;;  %v6179_v46 = vpop.f32.mrf.mxu0  ;;  %v11475_v19 = vld [vmem:[%s14109_s7 + $0x4f0] sm:$0xff]  }
 0x493   :  { %10846 = vmatpush3.bf16.msra.mxu1 %v11452_v18  ;;  %v10335_v18 = vpack.c.bf16 %v6362_v13, %v6362_v13  ;;  %v11479_v41 = vld [vmem:[%s14109_s7 + $0x4e8] sm:$0xff]  }
 0x494   :  { %10868 = vmatpush3.bf16.msra.mxu0 %v11453_v21  ;;  %10847 = vmatprep.subr.bf16.mxu1 %v11454_v29  ;;  %v11476_v21 = vld [vmem:[%s14109_s7 + $0x430] sm:$0xff]   ;;  %v11480_v46 = vld [vmem:[%s14109_s7 + $0x428] sm:$0xff]  }
 0x495   :  { %10869 = vmatprep.subr.bf16.mxu0 %v11455_v37  ;;  %v11477_v29 = vld [vmem:[%s14109_s7 + $0x4b0] sm:$0xff]   ;;  %v11478_v37 = vld [vmem:[%s14109_s7 + $0x468] sm:$0xff]  }
 0x497   :  { %10848 = vmatpush3.bf16.msra.mxu1 %v11456_v42 }
 0x498   :  { %10870 = vmatpush3.bf16.msra.mxu0 %v11457_v49  ;;  %10849 = vmatprep.subr.bf16.mxu1 %v11458_v44  ;;  %v11481_v44 = vld [vmem:[%s14109_s7 + $0x4a8] sm:$0xff]  }
 0x499   :  { %10871 = vmatprep.subr.bf16.mxu0 %v11459_v50  ;;  %v11482_v50 = vld [vmem:[%s14109_s7 + $0x460] sm:$0xff]  }
 0x49b   :  { %10850 = vmatpush3.bf16.msra.mxu1 %v11460_v43  ;;  %v11483_v43 = vld [vmem:[%s14109_s7 + $0x4e0] sm:$0xff]  }
 0x49c   :  { %10872 = vmatpush3.bf16.msra.mxu0 %v11461_v22  ;;  %v13634_v4 = vpop.f32.mrf.mxu1  ;;  %v13636_v8 = vpop.f32.mrf.mxu0  ;;  %10851 = vmatprep.subr.bf16.mxu1 %v11462_v60  ;;  %v11484_v60 = vld [vmem:[%s14109_s7 + $0x420] sm:$0xff]  }
 0x49d   :  { %10873 = vmatprep.subr.bf16.mxu0 %v11463_v1 }
 0x49e   :  { %v13649_v38 = vpop.f32.mrf.mxu1  ;;  %v13651_v6 = vpop.f32.mrf.mxu0 }
 0x49f   :  { %10852 = vmatpush3.bf16.msra.mxu1 %v11464_v53  ;;  %v11487_v53 = vld [vmem:[%s14109_s7 + $0x4d8] sm:$0xff]  }
 0x4a0   :  { %10874 = vmatpush3.bf16.msra.mxu0 %v11465_v14  ;;  %v6219_v12 = vpop.f32.mrf.mxu1  ;;  %v6260_v25 = vpop.f32.mrf.mxu0  ;;  %10853 = vmatprep.subr.bf16.mxu1 %v11466_v34  ;;  %v11488_v34 = vld [vmem:[%s14109_s7 + $0x418] sm:$0xff]  }
 0x4a1   :  { %10875 = vmatprep.subr.bf16.mxu0 %v11467_v55  ;;  %v11490_v55 = vld [vmem:[%s14109_s7 + $0x450] sm:$0xff]   ;;  %v11494_v12 = vld [vmem:[%s14109_s7 + $0x448] sm:$0xff]   ;;  %v4961_v25 = vrot.slane %v13621_v32, %v12305_v57 }
 0x4a2   :  { %v6220_v23 = vpop.f32.mrf.mxu1  ;;  %v6261_v40 = vpop.f32.mrf.mxu0 }
 0x4a3   :  { %10854 = vmatpush3.bf16.msra.mxu1 %v11468_v9  ;;  %v4953_v9 = vrot.slane %v13621_v32, %v12302_v56  ;;  %v11497_v23 = vld [vmem:[%s14109_s7 + $0x488] sm:$0xff]   ;;  %v11498_v40 = vld [vmem:[%s14109_s7 + $0x440] sm:$0xff]   ;;  %v6093_v16 = vadd.f32 %v13512_v52, %v4961_v25  ;;  %v4969_v25 = vrot.slane %v13621_v32, %v12386_v63 }
 0x4a4   :  { %10876 = vmatpush3.bf16.msra.mxu0 %v11469_v31  ;;  %10883 = vmatprep.subr.bf16.mxu1 %v11470_v39  ;;  %v11495_v31 = vld [vmem:[%s14109_s7 + $0x4c8] sm:$0xff]   ;;  %v4973_v39 = vrot.slane %v13621_v32, %v12340_v26  ;;  %v11501_v52 = vld [vmem:[%s14109_s7 + $0x480] sm:$0xff]  }
 0x4a5   :  { %10905 = vmatprep.subr.bf16.mxu0 %v11471_v61  ;;  %v11496_v61 = vld [vmem:[%s14109_s7 + $0x408] sm:$0xff]   ;;  %v6052_v13 = vadd.f32 %v13510_v51, %v4953_v9  ;;  %v6177_v51 = vadd.f32 %v13582_v5, %v4981_v2  ;;  %v11522_v9 = vld [vmem:[%s14109_s7 + $0x550] sm:$0xff]   ;;  %v4977_v2 = vrot.slane %v13621_v32, %v12389_v0  ;;  %v6134_v32 = vadd.f32 %v13567_v30, %v4969_v25 }
 0x4a6   :  { %8977 = vmatmul.mubr.bf16.vlgmr.msra.gmra.mxu1 %v10330_v27  ;;  %v6136_v27 = vadd.f32 %v13580_v17, %v4973_v39  ;;  %v11503_v17 = vld [vmem:[%s14109_s7 + $0x5f8] sm:$0xff]   ;;  %v11526_v39 = vld [vmem:[%s14109_s7 + $0x548] sm:$0xff]  }
 0x4a7   :  { %9017 = vmatmul.mubr.bf16.vlgmr.msra.gmra.mxu0 %v10332_v11  ;;  %10884 = vmatpush3.bf16.msra.mxu1 %v11472_v7  ;;  %v11499_v7 = vld [vmem:[%s14109_s7 + $0x4c0] sm:$0xff]   ;;  %v6361_v11 = vmax.f32 %v6052_v13, 0.0  ;;  %v11527_v13 = vld [vmem:[%s14109_s7 + $0x5c8] sm:$0xff]  }
 0x4a8   :  { %9056 = vmatprep.mubr.bf16.mxu1 %v10335_v18  ;;  %10906 = vmatpush3.bf16.msra.mxu0 %v11473_v10  ;;  %v11500_v10 = vld [vmem:[%s14109_s7 + $0x400] sm:$0xff]   ;;  %v6363_v18 = vmax.f32 %v6093_v16, 0.0  ;;  %v6366_v5 = vmax.f32 %v6136_v27, 0.0  ;;  %v11528_v16 = vld [vmem:[%s14109_s7 + $0x508] sm:$0xff]   ;;  %v6175_v27 = vadd.f32 %v13569_v33, %v4977_v2 }
 0x4a9   :  { %9096 = vmatprep.mubr.bf16.mxu0 %v10337_v20  ;;  %10885 = vmatprep.subr.bf16.mxu1 %v11474_v45  ;;  %v11502_v45 = vld [vmem:[%s14109_s7 + $0x578] sm:$0xff]   ;;  %v11533_v33 = vld [vmem:[%s14109_s7 + $0x580] sm:$0xff]   ;;  %v11560_v2 = vld [vmem:[%s14109_s7 + $0x608] sm:$0xff]  }
 0x4aa   :  { %10907 = vmatprep.subr.bf16.mxu0 %v11475_v19  ;;  %v6368_v19 = vmax.f32 %v6177_v51, 0.0  ;;  %v11504_v20 = vld [vmem:[%s14109_s7 + $0x538] sm:$0xff]  }
 0x4ab   :  { %10886 = vmatpush3.bf16.msra.mxu1 %v11476_v21  ;;  %v10334_v21 = vpack.c.bf16 %v6361_v11, %v6361_v11  ;;  %v6365_v11 = vmax.f32 %v6134_v32, 0.0 }
 0x4ac   :  { %10908 = vmatpush3.bf16.msra.mxu0 %v11477_v29  ;;  %v13693_v42 = vpop.f32.mrf.mxu1  ;;  %v13695_v49 = vpop.f32.mrf.mxu0  ;;  %10887 = vmatprep.subr.bf16.mxu1 %v11478_v37  ;;  %v11505_v29 = vld [vmem:[%s14109_s7 + $0x5b8] sm:$0xff]   ;;  %v10336_v37 = vpack.c.bf16 %v6363_v18, %v6363_v18 }
 0x4ad   :  { %10909 = vmatprep.subr.bf16.mxu0 %v11479_v41  ;;  %v11506_v41 = vld [vmem:[%s14109_s7 + $0x570] sm:$0xff]  }
 0x4ae   :  { %v13706_v48 = vpop.f32.mrf.mxu1  ;;  %v13708_v22 = vpop.f32.mrf.mxu0 }
 0x4af   :  { %10888 = vmatpush3.bf16.msra.mxu1 %v11480_v46  ;;  %v10339_v46 = vpack.c.bf16 %v6366_v5, %v6366_v5  ;;  %v10338_v5 = vpack.c.bf16 %v6365_v11, %v6365_v11  ;;  %v11570_v11 = vld [vmem:[%s14109_s7 + $0x770] sm:$0xff]  }
 0x4b0   :  { %10910 = vmatpush3.bf16.msra.mxu0 %v11481_v44  ;;  %v6301_v62 = vpop.f32.mrf.mxu1  ;;  %v6342_v1 = vpop.f32.mrf.mxu0  ;;  %10889 = vmatprep.subr.bf16.mxu1 %v11482_v50  ;;  %v11507_v44 = vld [vmem:[%s14109_s7 + $0x5f0] sm:$0xff]   ;;  %v10341_v50 = vpack.c.bf16 %v6368_v19, %v6368_v19  ;;  %v11537_v19 = vld [vmem:[%s14109_s7 + $0x6b8] sm:$0xff]  }
 0x4b1   :  { %10911 = vmatprep.subr.bf16.mxu0 %v11483_v43  ;;  %v11508_v43 = vld [vmem:[%s14109_s7 + $0x530] sm:$0xff]   ;;  %v11510_v62 = vld [vmem:[%s14109_s7 + $0x568] sm:$0xff]  }
 0x4b2   :  { %v6302_v47 = vpop.f32.mrf.mxu1  ;;  %v6343_v14 = vpop.f32.mrf.mxu0  ;;  %v11511_v1 = vld [vmem:[%s14109_s7 + $0x5e8] sm:$0xff]  }
 0x4b3   :  { %10890 = vmatpush3.bf16.msra.mxu1 %v11484_v60  ;;  %v11509_v60 = vld [vmem:[%s14109_s7 + $0x5b0] sm:$0xff]   ;;  %v11515_v47 = vld [vmem:[%s14109_s7 + $0x5e0] sm:$0xff]  }
 0x4b4   :  { %10912 = vmatpush3.bf16.msra.mxu0 %v11485_v3  ;;  %10891 = vmatprep.subr.bf16.mxu1 %v11486_v28  ;;  %v11512_v3 = vld [vmem:[%s14109_s7 + $0x528] sm:$0xff]   ;;  %v11516_v14 = vld [vmem:[%s14109_s7 + $0x520] sm:$0xff]  }
 0x4b5   :  { %10913 = vmatprep.subr.bf16.mxu0 %v11487_v53  ;;  %v11513_v28 = vld [vmem:[%s14109_s7 + $0x5a8] sm:$0xff]   ;;  %v11514_v53 = vld [vmem:[%s14109_s7 + $0x560] sm:$0xff]  }
 0x4b7   :  { %10892 = vmatpush3.bf16.msra.mxu1 %v11488_v34  ;;  %v11517_v34 = vld [vmem:[%s14109_s7 + $0x5a0] sm:$0xff]  }
 0x4b8   :  { %10914 = vmatpush3.bf16.msra.mxu0 %v11489_v36  ;;  %10893 = vmatprep.subr.bf16.mxu1 %v11490_v55  ;;  %v11518_v36 = vld [vmem:[%s14109_s7 + $0x558] sm:$0xff]  }
 0x4b9   :  { %10915 = vmatprep.subr.bf16.mxu0 %v11491_v15  ;;  %v11519_v55 = vld [vmem:[%s14109_s7 + $0x5d8] sm:$0xff]  }
 0x4ba   :  { %v11520_v15 = vld [vmem:[%s14109_s7 + $0x518] sm:$0xff]  }
 0x4bb   :  { %10894 = vmatpush3.bf16.msra.mxu1 %v11492_v35  ;;  %v11521_v35 = vld [vmem:[%s14109_s7 + $0x598] sm:$0xff]  }
 0x4bc   :  { %10916 = vmatpush3.bf16.msra.mxu0 %v11493_v24  ;;  %10895 = vmatprep.subr.bf16.mxu1 %v11494_v12  ;;  %v11523_v24 = vld [vmem:[%s14109_s7 + $0x5d0] sm:$0xff]  }
 0x4bd   :  { %10917 = vmatprep.subr.bf16.mxu0 %v11495_v31  ;;  %v11524_v12 = vld [vmem:[%s14109_s7 + $0x510] sm:$0xff]  }
 0x4be   :  { %v11525_v31 = vld [vmem:[%s14109_s7 + $0x590] sm:$0xff]  }
 0x4bf   :  { %10896 = vmatpush3.bf16.msra.mxu1 %v11496_v61  ;;  %v13855_v61 = vld [vmem:[#allocation9 + $0x18] sm:$0xff] }
 0x4c0   :  { %10918 = vmatpush3.bf16.msra.mxu0 %v11497_v23  ;;  %10897 = vmatprep.subr.bf16.mxu1 %v11498_v40  ;;  %v4989_v23 = vrot.slane %v13855_v61, %v12308_v58  ;;  %v4997_v40 = vrot.slane %v13855_v61, %v12311_v59  ;;  %v11530_v58 = vld [vmem:[%s14109_s7 + $0x540] sm:$0xff]   ;;  %v4993_v25 = vrot.slane %v13855_v61, %v12305_v57  ;;  %v11561_v57 = vld [vmem:[%s14109_s7 + $0x688] sm:$0xff]  }
 0x4c1   :  { %10919 = vmatprep.subr.bf16.mxu0 %v11499_v7  ;;  %v11529_v7 = vld [vmem:[%s14109_s7 + $0x588] sm:$0xff]   ;;  %v11531_v59 = vld [vmem:[%s14109_s7 + $0x5c0] sm:$0xff]  }
 0x4c2   :  { %v6218_v51 = vadd.f32 %v13649_v38, %v4989_v23  ;;  %v6259_v30 = vadd.f32 %v13651_v6, %v4997_v40  ;;  %v11535_v38 = vld [vmem:[%s14109_s7 + $0x6f8] sm:$0xff]   ;;  %v6257_v23 = vadd.f32 %v13636_v8, %v4993_v25  ;;  %v11565_v8 = vld [vmem:[%s14109_s7 + $0x680] sm:$0xff]   ;;  %v11589_v25 = vld [vmem:[%s14109_s7 + $0x790] sm:$0xff]  }
 0x4c3   :  { %10898 = vmatpush3.bf16.msra.mxu1 %v11500_v10  ;;  %v11532_v10 = vld [vmem:[%s14109_s7 + $0x500] sm:$0xff]  }
 0x4c4   :  { %10920 = vmatpush3.bf16.msra.mxu0 %v11501_v52  ;;  %10927 = vmatprep.subr.bf16.mxu1 %v11502_v45  ;;  %v11534_v52 = vld [vmem:[%s14109_s7 + $0x678] sm:$0xff]   ;;  %v6367_v45 = vmax.f32 %v6175_v27, 0.0  ;;  %v6370_v6 = vmax.f32 %v6218_v51, 0.0  ;;  %v6372_v18 = vmax.f32 %v6259_v30, 0.0 }
 0x4c5   :  { %10949 = vmatprep.subr.bf16.mxu0 %v11503_v17  ;;  %v11536_v17 = vld [vmem:[%s14109_s7 + $0x638] sm:$0xff]  }
 0x4c6   :  { %9057 = vmatmul.mubr.bf16.vlgmr.msra.gmra.mxu1 %v10334_v21  ;;  %v11538_v21 = vld [vmem:[%s14109_s7 + $0x670] sm:$0xff]   ;;  %v11569_v30 = vld [vmem:[%s14109_s7 + $0x7b8] sm:$0xff]  }
 0x4c7   :  { %9097 = vmatmul.mubr.bf16.vlgmr.msra.gmra.mxu0 %v10336_v37  ;;  %10928 = vmatpush3.bf16.msra.mxu1 %v11504_v20  ;;  %v10340_v20 = vpack.c.bf16 %v6367_v45, %v6367_v45  ;;  %v11539_v37 = vld [vmem:[%s14109_s7 + $0x6f0] sm:$0xff]  }
 0x4c8   :  { %9136 = vmatprep.mubr.bf16.mxu1 %v10339_v46  ;;  %10950 = vmatpush3.bf16.msra.mxu0 %v11505_v29  ;;  %v10343_v29 = vpack.c.bf16 %v6370_v6, %v6370_v6  ;;  %v11540_v46 = vld [vmem:[%s14109_s7 + $0x630] sm:$0xff]  }
 0x4c9   :  { %9176 = vmatprep.mubr.bf16.mxu0 %v10341_v50  ;;  %10929 = vmatprep.subr.bf16.mxu1 %v11506_v41  ;;  %v10345_v41 = vpack.c.bf16 %v6372_v18, %v6372_v18  ;;  %v11542_v50 = vld [vmem:[%s14109_s7 + $0x668] sm:$0xff]   ;;  %v11572_v18 = vld [vmem:[%s14109_s7 + $0x730] sm:$0xff]  }
 0x4ca   :  { %10951 = vmatprep.subr.bf16.mxu0 %v11507_v44  ;;  %v11541_v44 = vld [vmem:[%s14109_s7 + $0x6b0] sm:$0xff]  }
 0x4cb   :  { %10930 = vmatpush3.bf16.msra.mxu1 %v11508_v43  ;;  %v11543_v43 = vld [vmem:[%s14109_s7 + $0x6e8] sm:$0xff]  }
 0x4cc   :  { %10952 = vmatpush3.bf16.msra.mxu0 %v11509_v60  ;;  %10931 = vmatprep.subr.bf16.mxu1 %v11510_v62  ;;  %v11544_v60 = vld [vmem:[%s14109_s7 + $0x628] sm:$0xff]  }
 0x4cd   :  { %10953 = vmatprep.subr.bf16.mxu0 %v11511_v1  ;;  %v11545_v62 = vld [vmem:[%s14109_s7 + $0x6a8] sm:$0xff]   ;;  %v11546_v1 = vld [vmem:[%s14109_s7 + $0x660] sm:$0xff]  }
 0x4cf   :  { %10932 = vmatpush3.bf16.msra.mxu1 %v11512_v3  ;;  %v11547_v3 = vld [vmem:[%s14109_s7 + $0x6e0] sm:$0xff]  }
 0x4d0   :  { %10954 = vmatpush3.bf16.msra.mxu0 %v11513_v28  ;;  %10933 = vmatprep.subr.bf16.mxu1 %v11514_v53  ;;  %v11548_v28 = vld [vmem:[%s14109_s7 + $0x620] sm:$0xff]  }
 0x4d1   :  { %10955 = vmatprep.subr.bf16.mxu0 %v11515_v47  ;;  %v11549_v53 = vld [vmem:[%s14109_s7 + $0x6a0] sm:$0xff]   ;;  %v11550_v47 = vld [vmem:[%s14109_s7 + $0x658] sm:$0xff]  }
 0x4d3   :  { %10934 = vmatpush3.bf16.msra.mxu1 %v11516_v14  ;;  %v11551_v14 = vld [vmem:[%s14109_s7 + $0x6d8] sm:$0xff]  }
 0x4d4   :  { %10956 = vmatpush3.bf16.msra.mxu0 %v11517_v34  ;;  %10935 = vmatprep.subr.bf16.mxu1 %v11518_v36  ;;  %v11552_v34 = vld [vmem:[%s14109_s7 + $0x618] sm:$0xff]  }
 0x4d5   :  { %10957 = vmatprep.subr.bf16.mxu0 %v11519_v55  ;;  %v11553_v36 = vld [vmem:[%s14109_s7 + $0x698] sm:$0xff]   ;;  %v11554_v55 = vld [vmem:[%s14109_s7 + $0x650] sm:$0xff]  }
 0x4d7   :  { %10936 = vmatpush3.bf16.msra.mxu1 %v11520_v15  ;;  %v11555_v15 = vld [vmem:[%s14109_s7 + $0x6d0] sm:$0xff]  }
 0x4d8   :  { %10958 = vmatpush3.bf16.msra.mxu0 %v11521_v35  ;;  %10937 = vmatprep.subr.bf16.mxu1 %v11522_v9  ;;  %v11556_v35 = vld [vmem:[%s14109_s7 + $0x610] sm:$0xff]   ;;  %v4985_v9 = vrot.slane %v13855_v61, %v12302_v56  ;;  %v5005_v56 = vrot.slane %v13855_v61, %v12340_v26  ;;  %v11562_v26 = vld [vmem:[%s14109_s7 + $0x640] sm:$0xff]  }
 0x4d9   :  { %10959 = vmatprep.subr.bf16.mxu0 %v11523_v24  ;;  %v11557_v24 = vld [vmem:[%s14109_s7 + $0x690] sm:$0xff]  }
 0x4da   :  { %v6300_v40 = vadd.f32 %v13706_v48, %v5005_v56  ;;  %v11567_v48 = vld [vmem:[%s14109_s7 + $0x7f8] sm:$0xff]   ;;  %v5009_v56 = vrot.slane %v13855_v61, %v12389_v0  ;;  %v11594_v0 = vld [vmem:[%s14109_s7 + $0x740] sm:$0xff]  }
 0x4db   :  { %10938 = vmatpush3.bf16.msra.mxu1 %v11524_v12  ;;  %v11558_v12 = vld [vmem:[%s14109_s7 + $0x648] sm:$0xff]  }
 0x4dc   :  { %10960 = vmatpush3.bf16.msra.mxu0 %v11525_v31  ;;  %10939 = vmatprep.subr.bf16.mxu1 %v11526_v39  ;;  %v11559_v31 = vld [vmem:[%s14109_s7 + $0x6c8] sm:$0xff]   ;;  %v5013_v39 = vrot.slane %v13855_v61, %v12343_v54  ;;  %v11563_v54 = vld [vmem:[%s14109_s7 + $0x6c0] sm:$0xff]  }
 0x4dd   :  { %10961 = vmatprep.subr.bf16.mxu0 %v11527_v13  ;;  %v6216_v13 = vadd.f32 %v13634_v4, %v4985_v9  ;;  %v11587_v9 = vld [vmem:[%s14109_s7 + $0x7d0] sm:$0xff]  }
 0x4de   :  { %v6341_v4 = vadd.f32 %v13708_v22, %v5013_v39  ;;  %v6374_v22 = vmax.f32 %v6300_v40, 0.0  ;;  %v11591_v39 = vld [vmem:[%s14109_s7 + $0x7c8] sm:$0xff]  }
 0x4df   :  { %10940 = vmatpush3.bf16.msra.mxu1 %v11528_v16  ;;  %v11564_v16 = vld [vmem:[%s14109_s7 + $0x600] sm:$0xff]   ;;  %v6369_v32 = vmax.f32 %v6216_v13, 0.0  ;;  %v11593_v13 = vld [vmem:[%s14109_s7 + $0x788] sm:$0xff]  }
 0x4e0   :  { %10962 = vmatpush3.bf16.msra.mxu0 %v11529_v7  ;;  %10941 = vmatprep.subr.bf16.mxu1 %v11530_v58  ;;  %v11566_v7 = vld [vmem:[%s14109_s7 + $0x778] sm:$0xff]   ;;  %v6371_v58 = vmax.f32 %v6257_v23, 0.0  ;;  %v6376_v27 = vmax.f32 %v6341_v4, 0.0  ;;  %v11597_v23 = vld [vmem:[%s14109_s7 + $0x780] sm:$0xff]  }
 0x4e1   :  { %10963 = vmatprep.subr.bf16.mxu0 %v11531_v59  ;;  %v11568_v59 = vld [vmem:[%s14109_s7 + $0x738] sm:$0xff]   ;;  %v10342_v51 = vpack.c.bf16 %v6369_v32, %v6369_v32 }
 0x4e2   :  { %v10349_v6 = vpack.c.bf16 %v6376_v27, %v6376_v27 }
 0x4e3   :  { %10942 = vmatpush3.bf16.msra.mxu1 %v11532_v10  ;;  %v10344_v10 = vpack.c.bf16 %v6371_v58, %v6371_v58 }
 0x4e4   :  { %10964 = vmatpush3.bf16.msra.mxu0 %v11533_v33  ;;  %10971 = vmatprep.subr.bf16.mxu1 %v11534_v52  ;;  %v10347_v33 = vpack.c.bf16 %v6374_v22, %v6374_v22 }
 0x4e5   :  { %10993 = vmatprep.subr.bf16.mxu0 %v11535_v38  ;;  %v11571_v38 = vld [vmem:[%s14109_s7 + $0x7f0] sm:$0xff]  }
 0x4e6   :  { %9137 = vmatmul.mubr.bf16.vlgmr.msra.gmra.mxu1 %v10338_v5 }
 0x4e7   :  { %9177 = vmatmul.mubr.bf16.vlgmr.msra.gmra.mxu0 %v10340_v20  ;;  %10972 = vmatpush3.bf16.msra.mxu1 %v11536_v17  ;;  %v9965_v17 = vld [vmem:[%s14110_s8] ss:$0 sm:$0xff]  ;;  %v11573_v20 = vld [vmem:[%s14109_s7 + $0x7b0] sm:$0xff]  }
 0x4e8   :  { %9216 = vmatprep.mubr.bf16.mxu1 %v10343_v29  ;;  %10994 = vmatpush3.bf16.msra.mxu0 %v11537_v19 }
 0x4e9   :  { %9256 = vmatprep.mubr.bf16.mxu0 %v10345_v41  ;;  %10973 = vmatprep.subr.bf16.mxu1 %v11538_v21  ;;  %v11574_v21 = vld [vmem:[%s14109_s7 + $0x768] sm:$0xff]  }
 0x4ea   :  { %10995 = vmatprep.subr.bf16.mxu0 %v11539_v37  ;;  %v11575_v41 = vld [vmem:[%s14109_s7 + $0x7e8] sm:$0xff]  }
 0x4eb   :  { %10974 = vmatpush3.bf16.msra.mxu1 %v11540_v46 }
 0x4ec   :  { %10996 = vmatpush3.bf16.msra.mxu0 %v11541_v44  ;;  %10975 = vmatprep.subr.bf16.mxu1 %v11542_v50 }
 0x4ed   :  { %10997 = vmatprep.subr.bf16.mxu0 %v11543_v43  ;;  %v11576_v43 = vld [vmem:[%s14109_s7 + $0x728] sm:$0xff]  }
 0x4ef   :  { %10976 = vmatpush3.bf16.msra.mxu1 %v11544_v60 }
 0x4f0   :  { %10998 = vmatpush3.bf16.msra.mxu0 %v11545_v62  ;;  %10977 = vmatprep.subr.bf16.mxu1 %v11546_v1  ;;  %v11577_v1 = vld [vmem:[%s14109_s7 + $0x7a8] sm:$0xff]  }
 0x4f1   :  { %10999 = vmatprep.subr.bf16.mxu0 %v11547_v3  ;;  %v11578_v3 = vld [vmem:[%s14109_s7 + $0x760] sm:$0xff]  }
 0x4f3   :  { %10978 = vmatpush3.bf16.msra.mxu1 %v11548_v28 }
 0x4f4   :  { %11000 = vmatpush3.bf16.msra.mxu0 %v11549_v53  ;;  %10979 = vmatprep.subr.bf16.mxu1 %v11550_v47  ;;  %v11579_v53 = vld [vmem:[%s14109_s7 + $0x7e0] sm:$0xff]  }
 0x4f5   :  { %11001 = vmatprep.subr.bf16.mxu0 %v11551_v14  ;;  %v11580_v47 = vld [vmem:[%s14109_s7 + $0x720] sm:$0xff]  }
 0x4f6   :  { %v11581_v14 = vld [vmem:[%s14109_s7 + $0x7a0] sm:$0xff]  }
 0x4f7   :  { %10980 = vmatpush3.bf16.msra.mxu1 %v11552_v34  ;;  %v11582_v34 = vld [vmem:[%s14109_s7 + $0x758] sm:$0xff]  }
 0x4f8   :  { %11002 = vmatpush3.bf16.msra.mxu0 %v11553_v36  ;;  %10981 = vmatprep.subr.bf16.mxu1 %v11554_v55  ;;  %v11583_v36 = vld [vmem:[%s14109_s7 + $0x7d8] sm:$0xff]  }
 0x4f9   :  { %11003 = vmatprep.subr.bf16.mxu0 %v11555_v15  ;;  %v11584_v55 = vld [vmem:[%s14109_s7 + $0x718] sm:$0xff]  }
 0x4fa   :  { %v11585_v15 = vld [vmem:[%s14109_s7 + $0x798] sm:$0xff]  }
 0x4fb   :  { %10982 = vmatpush3.bf16.msra.mxu1 %v11556_v35  ;;  %v11586_v35 = vld [vmem:[%s14109_s7 + $0x750] sm:$0xff]  }
 0x4fc   :  { %11004 = vmatpush3.bf16.msra.mxu0 %v11557_v24  ;;  %10983 = vmatprep.subr.bf16.mxu1 %v11558_v12  ;;  %v11588_v24 = vld [vmem:[%s14109_s7 + $0x710] sm:$0xff]   ;;  %v5001_v12 = vrot.slane %v13855_v61, %v12386_v63  ;;  %v11592_v63 = vld [vmem:[%s14109_s7 + $0x708] sm:$0xff]   ;;  %v6339_v61 = vadd.f32 %v13695_v49, %v5009_v56 }
 0x4fd   :  { %11005 = vmatprep.subr.bf16.mxu0 %v11559_v31  ;;  %v11590_v31 = vld [vmem:[%s14109_s7 + $0x748] sm:$0xff]  }
 0x4ff   :  { %10984 = vmatpush3.bf16.msra.mxu1 %v11560_v2  ;;  %v6298_v2 = vadd.f32 %v13693_v42, %v5001_v12  ;;  %v11596_v42 = vld [vmem:[%s14109_s7 + $0x700] sm:$0xff]  }
 0x500   :  { %11006 = vmatpush3.bf16.msra.mxu0 %v11561_v57  ;;  %10985 = vmatprep.subr.bf16.mxu1 %v11562_v26  ;;  %v11595_v57 = vld [vmem:[%s14109_s7 + $0x7c0] sm:$0xff]  }
 0x501   :  { %11007 = vmatprep.subr.bf16.mxu0 %v11563_v54  ;;  %v6373_v26 = vmax.f32 %v6298_v2, 0.0  ;;  %v6375_v54 = vmax.f32 %v6339_v61, 0.0 }
 0x503   :  { %10986 = vmatpush3.bf16.msra.mxu1 %v11564_v16  ;;  %v10346_v49 = vpack.c.bf16 %v6373_v26, %v6373_v26  ;;  %v10348_v40 = vpack.c.bf16 %v6375_v54, %v6375_v54 }
 0x504   :  { %11008 = vmatpush3.bf16.msra.mxu0 %v11565_v8  ;;  %11015 = vmatprep.subr.bf16.mxu1 %v11566_v7 }
 0x505   :  { %11037 = vmatprep.subr.bf16.mxu0 %v11567_v48 }
 0x506   :  { %9217 = vmatmul.mubr.bf16.vlgmr.msra.gmra.mxu1 %v10342_v51  ;;  %v10723_v52 = vpop.f32.mrf.mxu1  ;;  %v10745_v45 = vpop.f32.mrf.mxu0 }
 0x507   :  { %9257 = vmatmul.mubr.bf16.vlgmr.msra.gmra.mxu0 %v10344_v10  ;;  %11016 = vmatpush3.bf16.msra.mxu1 %v11568_v59 }
 0x508   :  { %9296 = vmatprep.mubr.bf16.mxu1 %v10347_v33  ;;  %11038 = vmatpush3.bf16.msra.mxu0 %v11569_v30  ;;  %v10724_v5 = vpop.f32.mrf.mxu1  ;;  %v10746_v19 = vpop.f32.mrf.mxu0 }
 0x509   :  { %9336 = vmatprep.mubr.bf16.mxu0 %v10349_v6  ;;  %v10725_v29 = vadd.f32 %v10724_v5, %v10723_v52  ;;  %v10747_v37 = vadd.f32 %v10746_v19, %v10745_v45  ;;  %11017 = vmatprep.subr.bf16.mxu1 %v11570_v11 }
 0x50a   :  { %11039 = vmatprep.subr.bf16.mxu0 %v11571_v38  ;;  %v10726_v46 = vpop.f32.mrf.mxu1  ;;  %v10748_v44 = vpop.f32.mrf.mxu0 }
 0x50b   :  { %v8739_v50 = vadd.f32 %v10725_v29, %v9965_v17  ;;  %11018 = vmatpush3.bf16.msra.mxu1 %v11572_v18 }
 0x50c   :  { %11040 = vmatpush3.bf16.msra.mxu0 %v11573_v20  ;;  %v10727_v60 = vpop.f32.mrf.mxu1  ;;  %v10749_v62 = vpop.f32.mrf.mxu0  ;;  %11019 = vmatprep.subr.bf16.mxu1 %v11574_v21 }
 0x50d   :  { %v8779_v28 = vadd.f32 %v10747_v37, %v8739_v50  ;;  %11041 = vmatprep.subr.bf16.mxu0 %v11575_v41 }
 0x50f   :  { %11020 = vmatpush3.bf16.msra.mxu1 %v11576_v43 }
 0x510   :  { %11042 = vmatpush3.bf16.msra.mxu0 %v11577_v1  ;;  %11021 = vmatprep.subr.bf16.mxu1 %v11578_v3 }
 0x511   :  { %11043 = vmatprep.subr.bf16.mxu0 %v11579_v53 }
 0x513   :  { %11022 = vmatpush3.bf16.msra.mxu1 %v11580_v47 }
 0x514   :  { %11044 = vmatpush3.bf16.msra.mxu0 %v11581_v14  ;;  %11023 = vmatprep.subr.bf16.mxu1 %v11582_v34 }
 0x515   :  { %11045 = vmatprep.subr.bf16.mxu0 %v11583_v36 }
 0x517   :  { %11024 = vmatpush3.bf16.msra.mxu1 %v11584_v55 }
 0x518   :  { %11046 = vmatpush3.bf16.msra.mxu0 %v11585_v15  ;;  %11025 = vmatprep.subr.bf16.mxu1 %v11586_v35 }
 0x519   :  { %11047 = vmatprep.subr.bf16.mxu0 %v11587_v9 }
 0x51b   :  { %11026 = vmatpush3.bf16.msra.mxu1 %v11588_v24 }
 0x51c   :  { %11048 = vmatpush3.bf16.msra.mxu0 %v11589_v25  ;;  %11027 = vmatprep.subr.bf16.mxu1 %v11590_v31 }
 0x51d   :  { %11049 = vmatprep.subr.bf16.mxu0 %v11591_v39 }
 0x51f   :  { %11028 = vmatpush3.bf16.msra.mxu1 %v11592_v63 }
 0x520   :  { %11050 = vmatpush3.bf16.msra.mxu0 %v11593_v13  ;;  %11029 = vmatprep.subr.bf16.mxu1 %v11594_v0 }
 0x521   :  { %11051 = vmatprep.subr.bf16.mxu0 %v11595_v57 }
 0x523   :  { %11030 = vmatpush3.bf16.msra.mxu1 %v11596_v42 }
 0x524   :  { %11052 = vmatpush3.bf16.msra.mxu0 %v11597_v23 }
 0x526   :  { %v10767_v4 = vpop.f32.mrf.mxu1  ;;  %v10789_v16 = vpop.f32.mrf.mxu0  ;;  %9297 = vmatmul.mubr.bf16.vlgmr.msra.gmra.mxu1 %v10346_v49 }
 0x527   :  { %9337 = vmatmul.mubr.bf16.vlgmr.msra.gmra.mxu0 %v10348_v40 }
 0x528   :  { %v10768_v32 = vpop.f32.mrf.mxu1  ;;  %v10790_v8 = vpop.f32.mrf.mxu0 }
 0x529   :  { %v10769_v7 = vadd.f32 %v10768_v32, %v10767_v4  ;;  %v10791_v58 = vadd.f32 %v10790_v8, %v10789_v16 }
 0x52a   :  { %v10770_v48 = vpop.f32.mrf.mxu1  ;;  %v10792_v22 = vpop.f32.mrf.mxu0 }
 0x52b   :  { %v8819_v27 = vadd.f32 %v10769_v7, %v8779_v28 }
 0x52c   :  { %v10771_v59 = vpop.f32.mrf.mxu1  ;;  %v10793_v51 = vpop.f32.mrf.mxu0 }
 0x52d   :  { %v8859_v30 = vadd.f32 %v10791_v58, %v8819_v27 }
 0x546   :  { %v10811_v10 = vpop.f32.mrf.mxu1 }
 0x547   :  { %v10833_v11 = vpop.f32.mrf.mxu0 }
 0x548   :  { %v10812_v33 = vpop.f32.mrf.mxu1 }
 0x549   :  { %v10813_v52 = vadd.f32 %v10812_v33, %v10811_v10  ;;  %v10834_v45 = vpop.f32.mrf.mxu0 }
 0x54a   :  { %v10835_v38 = vadd.f32 %v10834_v45, %v10833_v11  ;;  %v10814_v6 = vpop.f32.mrf.mxu1 }
 0x54b   :  { %v8899_v18 = vadd.f32 %v10813_v52, %v8859_v30  ;;  %v10836_v17 = vpop.f32.mrf.mxu0 }
 0x54c   :  { %v10815_v5 = vpop.f32.mrf.mxu1 }
 0x54d   :  { %v8939_v19 = vadd.f32 %v10835_v38, %v8899_v18  ;;  %v10837_v20 = vpop.f32.mrf.mxu0 }
 0x566   :  { %v10855_v21 = vpop.f32.mrf.mxu1 }
 0x567   :  { %v10877_v29 = vpop.f32.mrf.mxu0 }
 0x568   :  { %v10856_v37 = vpop.f32.mrf.mxu1 }
 0x569   :  { %v10857_v41 = vadd.f32 %v10856_v37, %v10855_v21  ;;  %v10878_v46 = vpop.f32.mrf.mxu0 }
 0x56a   :  { %v10879_v44 = vadd.f32 %v10878_v46, %v10877_v29  ;;  %v10858_v50 = vpop.f32.mrf.mxu1 }
 0x56b   :  { %v8979_v43 = vadd.f32 %v10857_v41, %v8939_v19  ;;  %v10880_v60 = vpop.f32.mrf.mxu0 }
 0x56c   :  { %v10859_v62 = vpop.f32.mrf.mxu1 }
 0x56d   :  { %v9019_v1 = vadd.f32 %v10879_v44, %v8979_v43  ;;  %v10881_v3 = vpop.f32.mrf.mxu0 }
 0x586   :  { %v10899_v28 = vpop.f32.mrf.mxu1 }
 0x587   :  { %v10921_v53 = vpop.f32.mrf.mxu0 }
 0x588   :  { %v10900_v47 = vpop.f32.mrf.mxu1 }
 0x589   :  { %v10901_v14 = vadd.f32 %v10900_v47, %v10899_v28  ;;  %v10922_v34 = vpop.f32.mrf.mxu0 }
 0x58a   :  { %v10923_v36 = vadd.f32 %v10922_v34, %v10921_v53  ;;  %v10902_v55 = vpop.f32.mrf.mxu1 }
 0x58b   :  { %v9059_v15 = vadd.f32 %v10901_v14, %v9019_v1  ;;  %v10924_v35 = vpop.f32.mrf.mxu0 }
 0x58c   :  { %v10903_v9 = vpop.f32.mrf.mxu1 }
 0x58d   :  { %v9099_v24 = vadd.f32 %v10923_v36, %v9059_v15  ;;  %v10925_v12 = vpop.f32.mrf.mxu0 }
 0x5a6   :  { %v10943_v25 = vpop.f32.mrf.mxu1 }
 0x5a7   :  { %v10965_v31 = vpop.f32.mrf.mxu0 }
 0x5a8   :  { %v10944_v56 = vpop.f32.mrf.mxu1 }
 0x5a9   :  { %v10966_v39 = vpop.f32.mrf.mxu0  ;;  %v10945_v4 = vadd.f32 %v10944_v56, %v10943_v25 }
 0x5aa   :  { %v10946_v63 = vpop.f32.mrf.mxu1  ;;  %v10967_v32 = vadd.f32 %v10966_v39, %v10965_v31 }
 0x5ab   :  { %v10968_v2 = vpop.f32.mrf.mxu0  ;;  %v9139_v16 = vadd.f32 %v10945_v4, %v9099_v24 }
 0x5ac   :  { %v10947_v13 = vpop.f32.mrf.mxu1 }
 0x5ad   :  { %v10969_v0 = vpop.f32.mrf.mxu0  ;;  %v9179_v7 = vadd.f32 %v10967_v32, %v9139_v16 }
 0x5c6   :  { %v10987_v61 = vpop.f32.mrf.mxu1 }
 0x5c7   :  { %v11009_v57 = vpop.f32.mrf.mxu0 }
 0x5c8   :  { %v10988_v42 = vpop.f32.mrf.mxu1 }
 0x5c9   :  { %v11010_v26 = vpop.f32.mrf.mxu0  ;;  %v10989_v8 = vadd.f32 %v10988_v42, %v10987_v61 }
 0x5ca   :  { %v10990_v23 = vpop.f32.mrf.mxu1  ;;  %v11011_v22 = vadd.f32 %v11010_v26, %v11009_v57 }
 0x5cb   :  { %v11012_v54 = vpop.f32.mrf.mxu0  ;;  %v9219_v58 = vadd.f32 %v10989_v8, %v9179_v7 }
 0x5cc   :  { %v10991_v49 = vpop.f32.mrf.mxu1 }
 0x5cd   :  { %v11013_v40 = vpop.f32.mrf.mxu0  ;;  %v9259_v51 = vadd.f32 %v11011_v22, %v9219_v58 }
 0x5e6   :  { %v11031_v48 = vpop.f32.mrf.mxu1 }
 0x5e7   :  { %v11053_v27 = vpop.f32.mrf.mxu0 }
 0x5e8   :  { %v11032_v59 = vpop.f32.mrf.mxu1 }
 0x5e9   :  { %v11033_v30 = vadd.f32 %v11032_v59, %v11031_v48  ;;  %v11054_v10 = vpop.f32.mrf.mxu0 }
 0x5ea   :  { %v11034_v11 = vpop.f32.mrf.mxu1  ;;  %v11055_v52 = vadd.f32 %v11054_v10, %v11053_v27 }
 0x5eb   :  { %v9299_v33 = vadd.f32 %v11033_v30, %v9259_v51  ;;  %v11056_v45 = vpop.f32.mrf.mxu0 }
 0x5ec   :  { %v11035_v38 = vpop.f32.mrf.mxu1 }
 0x5ed   :  { %v9339_v6 = vadd.f32 %v11055_v52, %v9299_v33  ;;  %v11057_v18 = vpop.f32.mrf.mxu0 }
 0x5ef   :  { %9344 = vst [vmem:[%s14111_s9] sm:$0xff] %v9339_v6 }
 0x5f0   :  { %9349 = vsyncpa [#allocation5], 1 }
 0x5f1   :  { %9350 = vsyncpa [#allocation7], 1 }
 0x5f2   :  { %9351 = vsyncpa [#allocation10], 1 }

</bundles_post_ra>
